<compile_context>
chip_gen: v6e
topology: v6e:2x2x1
jax: 0.10.0
libtpu: 0.0.40
codegen_flags: <defaults>
</compile_context>

<pallas_src>
import functools

import jax
import jax.numpy as jnp
from jax import lax
from jax.experimental import pallas as pl
from jax.experimental.pallas import tpu as pltpu
import numpy as np

EPS = 1e-5


def basic_block_kernel(x_ref, w1_ref, w2_ref, wsc_ref, bn_ref, o_ref,
                       p1_ref, p2_ref, *, N, H, W, Cin, P):
    # x_ref  : (N*H, W*Cin)      f32  input slab (unpadded, NHWC flattened per row)
    # w1_ref : (9*W*Cin, W*P)    bf16 tap-stacked block-diagonal conv1 weights
    # w2_ref : (9*W*P,   W*P)    bf16 tap-stacked block-diagonal conv2 weights
    # wsc_ref: (W*Cin,   W*P)    bf16 block-diagonal 1x1 shortcut weights
    # bn_ref : (6, W*P)          f32  lane-tiled [g1, b1, g2, b2, gsc, bsc]
    # o_ref  : (N*H, W*P)        f32  output slab (lane-dense store)
    # p1_ref : (N*H, 9*W*Cin)    f32  scratch: conv1 patch slab
    # p2_ref : (N*H, 9*W*P)      f32  scratch: conv2 patch slab
    NH = N * H
    inv_m = 1.0 / float(N * H * W)
    taps = [(dy, dx) for dy in (-1, 0, 1) for dx in (-1, 0, 1)]  # matches OIHW tap order

    # Row-validity masks for vertical taps (rows that would cross an image boundary).
    row_y = lax.broadcasted_iota(jnp.int32, (NH, 1), 0) % H
    can_down = row_y < (H - 1)   # dy = +1 is valid
    can_up = row_y > 0           # dy = -1 is valid

    def assemble_taps(a, C, p_ref):
        """Write the 9 shifted/masked tap views of slab `a` (NH, W*C) into p_ref."""
        wc = W * C
        for k, (dy, dx) in enumerate(taps):
            base = k * wc
            # Zero only the border strips this tap cannot cover (zero-padding semantics).
            if dx == 1:
                p_ref[:, base + (W - 1) * C: base + wc] = jnp.zeros((NH, C), a.dtype)
            elif dx == -1:
                p_ref[:, base: base + C] = jnp.zeros((NH, C), a.dtype)
            if dy == 1:
                p_ref[NH - 1: NH, base: base + wc] = jnp.zeros((1, wc), a.dtype)
            elif dy == -1:
                p_ref[0:1, base: base + wc] = jnp.zeros((1, wc), a.dtype)
            # Shifted view via static offset slices + offset store (no roll/concat/pad buffer).
            t_lo, t_hi = max(0, -dy), NH + min(0, -dy)           # destination rows
            s_lo, s_hi = max(0, dy), NH + min(0, dy)             # source rows
            d_lo, d_hi = max(0, -dx) * C, (W + min(0, -dx)) * C  # destination lanes (in block)
            l_lo, l_hi = max(0, dx) * C, (W + min(0, dx)) * C    # source lanes
            v = a[s_lo:s_hi, l_lo:l_hi]
            if dy == 1:
                v = jnp.where(can_down[t_lo:t_hi], v, jnp.zeros_like(v))
            elif dy == -1:
                v = jnp.where(can_up[t_lo:t_hi], v, jnp.zeros_like(v))
            p_ref[t_lo:t_hi, base + d_lo: base + d_hi] = v

    def group_sum(v):
        """(1, W*P) -> (1, W*P): every lane gets the sum over the W lanes of its channel.

        Uses lane rotations (XLU); summing over all W rotations by multiples of P is
        direction-independent because P*W == 128 (full lane width)."""
        acc = v
        for j in range(1, W):
            acc = acc + pltpu.roll(v, j * P, axis=1)
        return acc

    def bn_scale_shift(y, gamma_l, beta_l):
        """Single-pass training-mode BN folded into per-lane scale/shift (all (1, W*P))."""
        col_s = jnp.sum(y, axis=0, keepdims=True)
        col_q = jnp.sum(y * y, axis=0, keepdims=True)
        mean = group_sum(col_s) * inv_m
        var = group_sum(col_q) * inv_m - mean * mean          # biased variance (torch training)
        scale = gamma_l * lax.rsqrt(var + EPS)
        shift = beta_l - mean * scale
        return scale, shift

    x = x_ref[...]          # (NH, W*Cin) f32
    bn = bn_ref[...]        # (6, W*P)    f32

    # ---- conv1 (3x3) -> bn1 -> relu ----
    assemble_taps(x, Cin, p1_ref)
    out1 = jnp.dot(p1_ref[...].astype(jnp.bfloat16), w1_ref[...],
                   preferred_element_type=jnp.float32)        # (NH, W*P) f32
    s1, h1 = bn_scale_shift(out1, bn[0:1], bn[1:2])
    act1 = jnp.maximum(out1 * s1 + h1, 0.0)

    # ---- conv2 (3x3) -> bn2 ----
    assemble_taps(act1, P, p2_ref)
    out2 = jnp.dot(p2_ref[...].astype(jnp.bfloat16), w2_ref[...],
                   preferred_element_type=jnp.float32)
    s2, h2 = bn_scale_shift(out2, bn[2:3], bn[3:4])

    # ---- projection shortcut: 1x1 conv -> bn ----
    scp = jnp.dot(x.astype(jnp.bfloat16), wsc_ref[...],
                  preferred_element_type=jnp.float32)
    ss, hs = bn_scale_shift(scp, bn[4:5], bn[5:6])

    # ---- fused BN-apply + residual add + relu, dense lane-wide store ----
    o_ref[...] = jnp.maximum(out2 * s2 + h2 + scp * ss + hs, 0.0)


def basic_block_forward(x_nchw, params):
    """Wrapper: NCHW in / NCHW out, PyTorch-shaped parameters."""
    w1, g1, b1 = params["w1"], params["g1"], params["b1"]
    w2, g2, b2 = params["w2"], params["g2"], params["b2"]
    wsc, gsc, bsc = params["wsc"], params["gsc"], params["bsc"]

    N, Cin, H, W = x_nchw.shape
    P = w1.shape[0]
    NH, WC, WP = N * H, W * Cin, W * P
    # Toy-shape slab constraint: one image row (W * channels) fits in the 128 lanes.
    assert WC <= 128 and WP <= 128

    # NCHW -> lane-dense (N*H, W*C) slab (layout plumbing only).
    x_slab = jnp.transpose(x_nchw, (0, 2, 3, 1)).astype(jnp.float32).reshape(NH, WC)

    eye = jnp.eye(W, dtype=jnp.float32)

    def slab_weights(w):
        # OIHW (O, I, kh, kw) -> (kh*kw*W*I, W*O) tap-stacked block-diagonal, bf16.
        O, I, KH, KW = w.shape
        wk = jnp.transpose(w, (2, 3, 1, 0)).reshape(KH * KW, I, O)   # (k, ci, co)
        wb = jnp.einsum("xz,kio->kxizo", eye, wk)                    # (k, x, ci, xo, co)
        return wb.reshape(KH * KW * W * I, W * O).astype(jnp.bfloat16)

    w1b = slab_weights(w1)      # (9*W*Cin, W*P)
    w2b = slab_weights(w2)      # (9*W*P,   W*P)
    wscb = slab_weights(wsc)    # (W*Cin,   W*P)

    def lane_tile(v):           # (P,) -> (1, W*P), lane layout [x*P + c] = v[c]
        return jnp.tile(v.reshape(1, P), (1, W))

    bn = jnp.concatenate(
        [lane_tile(g1), lane_tile(b1), lane_tile(g2),
         lane_tile(b2), lane_tile(gsc), lane_tile(bsc)], axis=0).astype(jnp.float32)

    kernel = functools.partial(basic_block_kernel, N=N, H=H, W=W, Cin=Cin, P=P)
    vmem = pl.BlockSpec(memory_space=pltpu.MemorySpace.VMEM)

    out_slab = pl.pallas_call(
        kernel,
        out_shape=jax.ShapeDtypeStruct((NH, WP), jnp.float32),
        in_specs=[vmem] * 5,
        out_specs=vmem,
        scratch_shapes=[pltpu.VMEM((NH, 9 * WC), jnp.float32),
                        pltpu.VMEM((NH, 9 * WP), jnp.float32)],
        compiler_params=pltpu.CompilerParams(vmem_limit_bytes=32 * 1024 * 1024),
    )(x_slab, w1b, w2b, wscb, bn)

    out = out_slab.reshape(N, H, W, P)
    return jnp.transpose(out, (0, 3, 1, 2))


def basic_block_reference(x_nchw, params):
    """Pure-JAX reference (NCHW, f32) mirroring the PyTorch forward."""
    w1, g1, b1 = params["w1"], params["g1"], params["b1"]
    w2, g2, b2 = params["w2"], params["g2"], params["b2"]
    wsc, gsc, bsc = params["wsc"], params["gsc"], params["bsc"]

    def conv(x, w, pad):
        return lax.conv_general_dilated(
            x, w, window_strides=(1, 1), padding=[(pad, pad), (pad, pad)],
            dimension_numbers=("NCHW", "OIHW", "NCHW"))

    def bn(y, g, b):
        mean = y.mean(axis=(0, 2, 3), keepdims=True)
        var = ((y - mean) ** 2).mean(axis=(0, 2, 3), keepdims=True)
        return (y - mean) / jnp.sqrt(var + EPS) * g.reshape(1, -1, 1, 1) \
            + b.reshape(1, -1, 1, 1)

    out = jax.nn.relu(bn(conv(x_nchw, w1, 1), g1, b1))
    out = bn(conv(out, w2, 1), g2, b2)
    sc = bn(conv(x_nchw, wsc, 0), gsc, bsc)
    return jax.nn.relu(out + sc)


if __name__ == "__main__":
    key = jax.random.PRNGKey(0)
    ks = jax.random.split(key, 9)

    # Shapes consistent with BasicBlock(in_planes=4, planes=8, stride=1)
    N, Cin, P, H, W = 2, 4, 8, 16, 16

    x = jax.random.normal(ks[0], (N, Cin, H, W), jnp.float32)

    params = {
        "w1": 0.2 * jax.random.normal(ks[1], (P, Cin, 3, 3), jnp.float32),
        "g1": 1.0 + 0.1 * jax.random.normal(ks[2], (P,), jnp.float32),
        "b1": 0.1 * jax.random.normal(ks[3], (P,), jnp.float32),
        "w2": 0.2 * jax.random.normal(ks[4], (P, P, 3, 3), jnp.float32),
        "g2": 1.0 + 0.1 * jax.random.normal(ks[5], (P,), jnp.float32),
        "b2": 0.1 * jax.random.normal(ks[6], (P,), jnp.float32),
        "wsc": 0.2 * jax.random.normal(ks[7], (P, Cin, 1, 1), jnp.float32),
        "gsc": jnp.ones((P,), jnp.float32),
        "bsc": jnp.zeros((P,), jnp.float32),
    }

    out = jax.block_until_ready(basic_block_forward(x, params))
    ref = jax.block_until_ready(basic_block_reference(x, params))

    # bf16 MXU operands (f32 accumulation / f32 BN) => ~1e-2 relative agreement.
    np.testing.assert_allclose(np.asarray(out), np.asarray(ref), rtol=2e-2, atol=2e-2)
    print("KERNEL_OK")
</pallas_src>

<mosaic_0001>
module attributes {stable_mosaic.version = 11 : i64} {
  func.func @basic_block_kernel(%arg0: memref<32x64xf32, #tpu.memory_space<vmem>>, %arg1: memref<576x128xbf16, #tpu.memory_space<vmem>>, %arg2: memref<1152x128xbf16, #tpu.memory_space<vmem>>, %arg3: memref<64x128xbf16, #tpu.memory_space<vmem>>, %arg4: memref<6x128xf32, #tpu.memory_space<vmem>>, %arg5: memref<32x128xf32, #tpu.memory_space<vmem>>, %arg6: memref<32x576xf32, #tpu.memory_space<vmem>>, %arg7: memref<32x1152xf32, #tpu.memory_space<vmem>>) attributes {dimension_semantics = [], scalar_prefetch = 0 : i64, scratch_operands = 2 : i64, tpu.core_type = #tpu.core_type<tc>} {
    %0 = tpu.iota {dimensions = array<i32: 0>} : vector<32x1xi32>
    %c16_i32 = arith.constant 16 : i32
    %c0_i32 = arith.constant 0 : i32
    %1 = arith.cmpi eq, %c16_i32, %c0_i32 : i32
    %c1_i32 = arith.constant 1 : i32
    %2 = arith.select %1, %c1_i32, %c16_i32 : i32
    %3 = vector.broadcast %2 : i32 to vector<32x1xi32>
    %4 = arith.remsi %0, %3 : vector<32x1xi32>
    %c0_i32_0 = arith.constant 0 : i32
    %5 = vector.broadcast %c0_i32_0 : i32 to vector<32x1xi32>
    %6 = arith.cmpi ne, %4, %5 : vector<32x1xi32>
    %c0_i32_1 = arith.constant 0 : i32
    %7 = vector.broadcast %c0_i32_1 : i32 to vector<32x1xi32>
    %8 = arith.cmpi slt, %4, %7 : vector<32x1xi32>
    %c0_i32_2 = arith.constant 0 : i32
    %9 = arith.cmpi slt, %2, %c0_i32_2 : i32
    %10 = vector.broadcast %9 : i1 to vector<32x1xi1>
    %11 = vector.broadcast %10 : vector<32x1xi1> to vector<32x1xi1>
    %12 = arith.xori %8, %11 : vector<32x1xi1>
    %13 = arith.andi %12, %6 : vector<32x1xi1>
    %14 = vector.broadcast %2 : i32 to vector<32x1xi32>
    %15 = arith.addi %4, %14 : vector<32x1xi32>
    %16 = arith.select %13, %15, %4 : vector<32x1xi1>, vector<32x1xi32>
    %c15_i32 = arith.constant 15 : i32
    %17 = vector.broadcast %c15_i32 : i32 to vector<32x1xi32>
    %18 = arith.cmpi slt, %16, %17 : vector<32x1xi32>
    %c0_i32_3 = arith.constant 0 : i32
    %19 = vector.broadcast %c0_i32_3 : i32 to vector<32x1xi32>
    %20 = arith.cmpi sgt, %16, %19 : vector<32x1xi32>
    %c0 = arith.constant 0 : index
    %c0_4 = arith.constant 0 : index
    %21 = vector.load %arg0[%c0, %c0_4] : memref<32x64xf32, #tpu.memory_space<vmem>>, vector<32x64xf32>
    %c0_5 = arith.constant 0 : index
    %c0_6 = arith.constant 0 : index
    %22 = vector.load %arg4[%c0_5, %c0_6] : memref<6x128xf32, #tpu.memory_space<vmem>>, vector<6x128xf32>
    %cst = arith.constant 0.000000e+00 : f32
    %23 = vector.broadcast %cst : f32 to vector<32x4xf32>
    %c0_7 = arith.constant 0 : index
    %c0_8 = arith.constant 0 : index
    %24 = vector.load %arg6[%c0_7, %c0_8] : memref<32x576xf32, #tpu.memory_space<vmem>>, vector<32x4xf32>
    tpu.vector_store %arg6[%c0_7, %c0_8], %23 {strides = array<i32>} : memref<32x576xf32, #tpu.memory_space<vmem>>, vector<32x4xf32>,
    %cst_9 = arith.constant 0.000000e+00 : f32
    %25 = vector.broadcast %cst_9 : f32 to vector<1x64xf32>
    %c0_10 = arith.constant 0 : index
    %c0_11 = arith.constant 0 : index
    %26 = vector.load %arg6[%c0_10, %c0_11] : memref<32x576xf32, #tpu.memory_space<vmem>>, vector<1x64xf32>
    tpu.vector_store %arg6[%c0_10, %c0_11], %25 {strides = array<i32>} : memref<32x576xf32, #tpu.memory_space<vmem>>, vector<1x64xf32>,
    %27 = vector.extract_strided_slice %21 {offsets = [0, 0], sizes = [31, 60], strides = [1, 1]} : vector<32x64xf32> to vector<31x60xf32>
    %28 = vector.extract_strided_slice %20 {offsets = [1, 0], sizes = [31, 1], strides = [1, 1]} : vector<32x1xi1> to vector<31x1xi1>
    %cst_12 = arith.constant 0.000000e+00 : f32
    %29 = vector.broadcast %cst_12 : f32 to vector<31x60xf32>
    %30 = vector.shape_cast %28 : vector<31x1xi1> to vector<31x1xi1>
    %31 = vector.broadcast %30 : vector<31x1xi1> to vector<31x60xi1>
    %32 = arith.select %31, %27, %29 : vector<31x60xi1>, vector<31x60xf32>
    %c1 = arith.constant 1 : index
    %c4 = arith.constant 4 : index
    %33 = vector.load %arg6[%c1, %c4] : memref<32x576xf32, #tpu.memory_space<vmem>>, vector<31x60xf32>
    tpu.vector_store %arg6[%c1, %c4], %32 {strides = array<i32>} : memref<32x576xf32, #tpu.memory_space<vmem>>, vector<31x60xf32>,
    %cst_13 = arith.constant 0.000000e+00 : f32
    %34 = vector.broadcast %cst_13 : f32 to vector<1x64xf32>
    %c0_14 = arith.constant 0 : index
    %c64 = arith.constant 64 : index
    %35 = vector.load %arg6[%c0_14, %c64] : memref<32x576xf32, #tpu.memory_space<vmem>>, vector<1x64xf32>
    tpu.vector_store %arg6[%c0_14, %c64], %34 {strides = array<i32>} : memref<32x576xf32, #tpu.memory_space<vmem>>, vector<1x64xf32>,
    %36 = vector.extract_strided_slice %21 {offsets = [0, 0], sizes = [31, 64], strides = [1, 1]} : vector<32x64xf32> to vector<31x64xf32>
    %37 = vector.extract_strided_slice %20 {offsets = [1, 0], sizes = [31, 1], strides = [1, 1]} : vector<32x1xi1> to vector<31x1xi1>
    %cst_15 = arith.constant 0.000000e+00 : f32
    %38 = vector.broadcast %cst_15 : f32 to vector<31x64xf32>
    %39 = vector.shape_cast %37 : vector<31x1xi1> to vector<31x1xi1>
    %40 = vector.broadcast %39 : vector<31x1xi1> to vector<31x64xi1>
    %41 = arith.select %40, %36, %38 : vector<31x64xi1>, vector<31x64xf32>
    %c1_16 = arith.constant 1 : index
    %c64_17 = arith.constant 64 : index
    %42 = vector.load %arg6[%c1_16, %c64_17] : memref<32x576xf32, #tpu.memory_space<vmem>>, vector<31x64xf32>
    tpu.vector_store %arg6[%c1_16, %c64_17], %41 {strides = array<i32>} : memref<32x576xf32, #tpu.memory_space<vmem>>, vector<31x64xf32>,
    %cst_18 = arith.constant 0.000000e+00 : f32
    %43 = vector.broadcast %cst_18 : f32 to vector<32x4xf32>
    %c0_19 = arith.constant 0 : index
    %c188 = arith.constant 188 : index
    %44 = vector.load %arg6[%c0_19, %c188] : memref<32x576xf32, #tpu.memory_space<vmem>>, vector<32x4xf32>
    tpu.vector_store %arg6[%c0_19, %c188], %43 {strides = array<i32>} : memref<32x576xf32, #tpu.memory_space<vmem>>, vector<32x4xf32>,
    %cst_20 = arith.constant 0.000000e+00 : f32
    %45 = vector.broadcast %cst_20 : f32 to vector<1x64xf32>
    %c0_21 = arith.constant 0 : index
    %c128 = arith.constant 128 : index
    %46 = vector.load %arg6[%c0_21, %c128] : memref<32x576xf32, #tpu.memory_space<vmem>>, vector<1x64xf32>
    tpu.vector_store %arg6[%c0_21, %c128], %45 {strides = array<i32>} : memref<32x576xf32, #tpu.memory_space<vmem>>, vector<1x64xf32>,
    %47 = vector.extract_strided_slice %21 {offsets = [0, 4], sizes = [31, 60], strides = [1, 1]} : vector<32x64xf32> to vector<31x60xf32>
    %48 = vector.extract_strided_slice %20 {offsets = [1, 0], sizes = [31, 1], strides = [1, 1]} : vector<32x1xi1> to vector<31x1xi1>
    %cst_22 = arith.constant 0.000000e+00 : f32
    %49 = vector.broadcast %cst_22 : f32 to vector<31x60xf32>
    %50 = vector.shape_cast %48 : vector<31x1xi1> to vector<31x1xi1>
    %51 = vector.broadcast %50 : vector<31x1xi1> to vector<31x60xi1>
    %52 = arith.select %51, %47, %49 : vector<31x60xi1>, vector<31x60xf32>
    %c1_23 = arith.constant 1 : index
    %c128_24 = arith.constant 128 : index
    %53 = vector.load %arg6[%c1_23, %c128_24] : memref<32x576xf32, #tpu.memory_space<vmem>>, vector<31x60xf32>
    tpu.vector_store %arg6[%c1_23, %c128_24], %52 {strides = array<i32>} : memref<32x576xf32, #tpu.memory_space<vmem>>, vector<31x60xf32>,
    %cst_25 = arith.constant 0.000000e+00 : f32
    %54 = vector.broadcast %cst_25 : f32 to vector<32x4xf32>
    %c0_26 = arith.constant 0 : index
    %c192 = arith.constant 192 : index
    %55 = vector.load %arg6[%c0_26, %c192] : memref<32x576xf32, #tpu.memory_space<vmem>>, vector<32x4xf32>
    tpu.vector_store %arg6[%c0_26, %c192], %54 {strides = array<i32>} : memref<32x576xf32, #tpu.memory_space<vmem>>, vector<32x4xf32>,
    %56 = vector.extract_strided_slice %21 {offsets = [0, 0], sizes = [32, 60], strides = [1, 1]} : vector<32x64xf32> to vector<32x60xf32>
    %c0_27 = arith.constant 0 : index
    %c196 = arith.constant 196 : index
    %57 = vector.load %arg6[%c0_27, %c196] : memref<32x576xf32, #tpu.memory_space<vmem>>, vector<32x60xf32>
    tpu.vector_store %arg6[%c0_27, %c196], %56 {strides = array<i32>} : memref<32x576xf32, #tpu.memory_space<vmem>>, vector<32x60xf32>,
    %c0_28 = arith.constant 0 : index
    %c256 = arith.constant 256 : index
    %58 = vector.load %arg6[%c0_28, %c256] : memref<32x576xf32, #tpu.memory_space<vmem>>, vector<32x64xf32>
    tpu.vector_store %arg6[%c0_28, %c256], %21 {strides = array<i32>} : memref<32x576xf32, #tpu.memory_space<vmem>>, vector<32x64xf32>,
    %cst_29 = arith.constant 0.000000e+00 : f32
    %59 = vector.broadcast %cst_29 : f32 to vector<32x4xf32>
    %c0_30 = arith.constant 0 : index
    %c380 = arith.constant 380 : index
    %60 = vector.load %arg6[%c0_30, %c380] : memref<32x576xf32, #tpu.memory_space<vmem>>, vector<32x4xf32>
    tpu.vector_store %arg6[%c0_30, %c380], %59 {strides = array<i32>} : memref<32x576xf32, #tpu.memory_space<vmem>>, vector<32x4xf32>,
    %61 = vector.extract_strided_slice %21 {offsets = [0, 4], sizes = [32, 60], strides = [1, 1]} : vector<32x64xf32> to vector<32x60xf32>
    %c0_31 = arith.constant 0 : index
    %c320 = arith.constant 320 : index
    %62 = vector.load %arg6[%c0_31, %c320] : memref<32x576xf32, #tpu.memory_space<vmem>>, vector<32x60xf32>
    tpu.vector_store %arg6[%c0_31, %c320], %61 {strides = array<i32>} : memref<32x576xf32, #tpu.memory_space<vmem>>, vector<32x60xf32>,
    %cst_32 = arith.constant 0.000000e+00 : f32
    %63 = vector.broadcast %cst_32 : f32 to vector<32x4xf32>
    %c0_33 = arith.constant 0 : index
    %c384 = arith.constant 384 : index
    %64 = vector.load %arg6[%c0_33, %c384] : memref<32x576xf32, #tpu.memory_space<vmem>>, vector<32x4xf32>
    tpu.vector_store %arg6[%c0_33, %c384], %63 {strides = array<i32>} : memref<32x576xf32, #tpu.memory_space<vmem>>, vector<32x4xf32>,
    %cst_34 = arith.constant 0.000000e+00 : f32
    %65 = vector.broadcast %cst_34 : f32 to vector<1x64xf32>
    %c31 = arith.constant 31 : index
    %c384_35 = arith.constant 384 : index
    %66 = vector.load %arg6[%c31, %c384_35] : memref<32x576xf32, #tpu.memory_space<vmem>>, vector<1x64xf32>
    tpu.vector_store %arg6[%c31, %c384_35], %65 {strides = array<i32>} : memref<32x576xf32, #tpu.memory_space<vmem>>, vector<1x64xf32>,
    %67 = vector.extract_strided_slice %21 {offsets = [1, 0], sizes = [31, 60], strides = [1, 1]} : vector<32x64xf32> to vector<31x60xf32>
    %68 = vector.extract_strided_slice %18 {offsets = [0, 0], sizes = [31, 1], strides = [1, 1]} : vector<32x1xi1> to vector<31x1xi1>
    %cst_36 = arith.constant 0.000000e+00 : f32
    %69 = vector.broadcast %cst_36 : f32 to vector<31x60xf32>
    %70 = vector.shape_cast %68 : vector<31x1xi1> to vector<31x1xi1>
    %71 = vector.broadcast %70 : vector<31x1xi1> to vector<31x60xi1>
    %72 = arith.select %71, %67, %69 : vector<31x60xi1>, vector<31x60xf32>
    %c0_37 = arith.constant 0 : index
    %c388 = arith.constant 388 : index
    %73 = vector.load %arg6[%c0_37, %c388] : memref<32x576xf32, #tpu.memory_space<vmem>>, vector<31x60xf32>
    tpu.vector_store %arg6[%c0_37, %c388], %72 {strides = array<i32>} : memref<32x576xf32, #tpu.memory_space<vmem>>, vector<31x60xf32>,
    %cst_38 = arith.constant 0.000000e+00 : f32
    %74 = vector.broadcast %cst_38 : f32 to vector<1x64xf32>
    %c31_39 = arith.constant 31 : index
    %c448 = arith.constant 448 : index
    %75 = vector.load %arg6[%c31_39, %c448] : memref<32x576xf32, #tpu.memory_space<vmem>>, vector<1x64xf32>
    tpu.vector_store %arg6[%c31_39, %c448], %74 {strides = array<i32>} : memref<32x576xf32, #tpu.memory_space<vmem>>, vector<1x64xf32>,
    %76 = vector.extract_strided_slice %21 {offsets = [1, 0], sizes = [31, 64], strides = [1, 1]} : vector<32x64xf32> to vector<31x64xf32>
    %77 = vector.extract_strided_slice %18 {offsets = [0, 0], sizes = [31, 1], strides = [1, 1]} : vector<32x1xi1> to vector<31x1xi1>
    %cst_40 = arith.constant 0.000000e+00 : f32
    %78 = vector.broadcast %cst_40 : f32 to vector<31x64xf32>
    %79 = vector.shape_cast %77 : vector<31x1xi1> to vector<31x1xi1>
    %80 = vector.broadcast %79 : vector<31x1xi1> to vector<31x64xi1>
    %81 = arith.select %80, %76, %78 : vector<31x64xi1>, vector<31x64xf32>
    %c0_41 = arith.constant 0 : index
    %c448_42 = arith.constant 448 : index
    %82 = vector.load %arg6[%c0_41, %c448_42] : memref<32x576xf32, #tpu.memory_space<vmem>>, vector<31x64xf32>
    tpu.vector_store %arg6[%c0_41, %c448_42], %81 {strides = array<i32>} : memref<32x576xf32, #tpu.memory_space<vmem>>, vector<31x64xf32>,
    %cst_43 = arith.constant 0.000000e+00 : f32
    %83 = vector.broadcast %cst_43 : f32 to vector<32x4xf32>
    %c0_44 = arith.constant 0 : index
    %c572 = arith.constant 572 : index
    %84 = vector.load %arg6[%c0_44, %c572] : memref<32x576xf32, #tpu.memory_space<vmem>>, vector<32x4xf32>
    tpu.vector_store %arg6[%c0_44, %c572], %83 {strides = array<i32>} : memref<32x576xf32, #tpu.memory_space<vmem>>, vector<32x4xf32>,
    %cst_45 = arith.constant 0.000000e+00 : f32
    %85 = vector.broadcast %cst_45 : f32 to vector<1x64xf32>
    %c31_46 = arith.constant 31 : index
    %c512 = arith.constant 512 : index
    %86 = vector.load %arg6[%c31_46, %c512] : memref<32x576xf32, #tpu.memory_space<vmem>>, vector<1x64xf32>
    tpu.vector_store %arg6[%c31_46, %c512], %85 {strides = array<i32>} : memref<32x576xf32, #tpu.memory_space<vmem>>, vector<1x64xf32>,
    %87 = vector.extract_strided_slice %21 {offsets = [1, 4], sizes = [31, 60], strides = [1, 1]} : vector<32x64xf32> to vector<31x60xf32>
    %88 = vector.extract_strided_slice %18 {offsets = [0, 0], sizes = [31, 1], strides = [1, 1]} : vector<32x1xi1> to vector<31x1xi1>
    %cst_47 = arith.constant 0.000000e+00 : f32
    %89 = vector.broadcast %cst_47 : f32 to vector<31x60xf32>
    %90 = vector.shape_cast %88 : vector<31x1xi1> to vector<31x1xi1>
    %91 = vector.broadcast %90 : vector<31x1xi1> to vector<31x60xi1>
    %92 = arith.select %91, %87, %89 : vector<31x60xi1>, vector<31x60xf32>
    %c0_48 = arith.constant 0 : index
    %c512_49 = arith.constant 512 : index
    %93 = vector.load %arg6[%c0_48, %c512_49] : memref<32x576xf32, #tpu.memory_space<vmem>>, vector<31x60xf32>
    tpu.vector_store %arg6[%c0_48, %c512_49], %92 {strides = array<i32>} : memref<32x576xf32, #tpu.memory_space<vmem>>, vector<31x60xf32>,
    %c0_50 = arith.constant 0 : index
    %c0_51 = arith.constant 0 : index
    %94 = vector.load %arg6[%c0_50, %c0_51] : memref<32x576xf32, #tpu.memory_space<vmem>>, vector<32x576xf32>
    %95 = arith.truncf %94 : vector<32x576xf32> to vector<32x576xbf16>
    %c0_52 = arith.constant 0 : index
    %c0_53 = arith.constant 0 : index
    %96 = vector.load %arg1[%c0_52, %c0_53] : memref<576x128xbf16, #tpu.memory_space<vmem>>, vector<576x128xbf16>
    %cst_54 = arith.constant dense<0.000000e+00> : vector<32x128xf32>
    %97 = tpu.matmul %95, %96, %cst_54 {dimension_numbers = #tpu.dot_dimension_numbers<[1], [0], [0], [1], [0, 0, 1, 1], [], []>} : vector<32x576xbf16>, vector<576x128xbf16>, vector<32x128xf32> -> vector<32x128xf32>
    %98 = vector.extract_strided_slice %22 {offsets = [0, 0], sizes = [1, 128], strides = [1, 1]} : vector<6x128xf32> to vector<1x128xf32>
    %99 = vector.extract_strided_slice %22 {offsets = [1, 0], sizes = [1, 128], strides = [1, 1]} : vector<6x128xf32> to vector<1x128xf32>
    %cst_55 = arith.constant dense<0.000000e+00> : vector<128xf32>
    %100 = vector.multi_reduction <add>, %97, %cst_55 [0] : vector<32x128xf32> to vector<128xf32>
    %101 = vector.shape_cast %100 : vector<128xf32> to vector<1x128xf32>
    %102 = arith.mulf %97, %97 : vector<32x128xf32>
    %cst_56 = arith.constant dense<0.000000e+00> : vector<128xf32>
    %103 = vector.multi_reduction <add>, %102, %cst_56 [0] : vector<32x128xf32> to vector<128xf32>
    %104 = vector.shape_cast %103 : vector<128xf32> to vector<1x128xf32>
    %c8_i32 = arith.constant 8 : i32
    %105 = tpu.dynamic_rotate %101 by %c8_i32 dim 1 : vector<1x128xf32>, i32 -> vector<1x128xf32>
    %106 = arith.addf %101, %105 : vector<1x128xf32>
    %c16_i32_57 = arith.constant 16 : i32
    %107 = tpu.dynamic_rotate %101 by %c16_i32_57 dim 1 : vector<1x128xf32>, i32 -> vector<1x128xf32>
    %108 = arith.addf %106, %107 : vector<1x128xf32>
    %c24_i32 = arith.constant 24 : i32
    %109 = tpu.dynamic_rotate %101 by %c24_i32 dim 1 : vector<1x128xf32>, i32 -> vector<1x128xf32>
    %110 = arith.addf %108, %109 : vector<1x128xf32>
    %c32_i32 = arith.constant 32 : i32
    %111 = tpu.dynamic_rotate %101 by %c32_i32 dim 1 : vector<1x128xf32>, i32 -> vector<1x128xf32>
    %112 = arith.addf %110, %111 : vector<1x128xf32>
    %c40_i32 = arith.constant 40 : i32
    %113 = tpu.dynamic_rotate %101 by %c40_i32 dim 1 : vector<1x128xf32>, i32 -> vector<1x128xf32>
    %114 = arith.addf %112, %113 : vector<1x128xf32>
    %c48_i32 = arith.constant 48 : i32
    %115 = tpu.dynamic_rotate %101 by %c48_i32 dim 1 : vector<1x128xf32>, i32 -> vector<1x128xf32>
    %116 = arith.addf %114, %115 : vector<1x128xf32>
    %c56_i32 = arith.constant 56 : i32
    %117 = tpu.dynamic_rotate %101 by %c56_i32 dim 1 : vector<1x128xf32>, i32 -> vector<1x128xf32>
    %118 = arith.addf %116, %117 : vector<1x128xf32>
    %c64_i32 = arith.constant 64 : i32
    %119 = tpu.dynamic_rotate %101 by %c64_i32 dim 1 : vector<1x128xf32>, i32 -> vector<1x128xf32>
    %120 = arith.addf %118, %119 : vector<1x128xf32>
    %c72_i32 = arith.constant 72 : i32
    %121 = tpu.dynamic_rotate %101 by %c72_i32 dim 1 : vector<1x128xf32>, i32 -> vector<1x128xf32>
    %122 = arith.addf %120, %121 : vector<1x128xf32>
    %c80_i32 = arith.constant 80 : i32
    %123 = tpu.dynamic_rotate %101 by %c80_i32 dim 1 : vector<1x128xf32>, i32 -> vector<1x128xf32>
    %124 = arith.addf %122, %123 : vector<1x128xf32>
    %c88_i32 = arith.constant 88 : i32
    %125 = tpu.dynamic_rotate %101 by %c88_i32 dim 1 : vector<1x128xf32>, i32 -> vector<1x128xf32>
    %126 = arith.addf %124, %125 : vector<1x128xf32>
    %c96_i32 = arith.constant 96 : i32
    %127 = tpu.dynamic_rotate %101 by %c96_i32 dim 1 : vector<1x128xf32>, i32 -> vector<1x128xf32>
    %128 = arith.addf %126, %127 : vector<1x128xf32>
    %c104_i32 = arith.constant 104 : i32
    %129 = tpu.dynamic_rotate %101 by %c104_i32 dim 1 : vector<1x128xf32>, i32 -> vector<1x128xf32>
    %130 = arith.addf %128, %129 : vector<1x128xf32>
    %c112_i32 = arith.constant 112 : i32
    %131 = tpu.dynamic_rotate %101 by %c112_i32 dim 1 : vector<1x128xf32>, i32 -> vector<1x128xf32>
    %132 = arith.addf %130, %131 : vector<1x128xf32>
    %c120_i32 = arith.constant 120 : i32
    %133 = tpu.dynamic_rotate %101 by %c120_i32 dim 1 : vector<1x128xf32>, i32 -> vector<1x128xf32>
    %134 = arith.addf %132, %133 : vector<1x128xf32>
    %cst_58 = arith.constant 0.001953125 : f32
    %135 = vector.broadcast %cst_58 : f32 to vector<1x128xf32>
    %136 = arith.mulf %134, %135 : vector<1x128xf32>
    %c8_i32_59 = arith.constant 8 : i32
    %137 = tpu.dynamic_rotate %104 by %c8_i32_59 dim 1 : vector<1x128xf32>, i32 -> vector<1x128xf32>
    %138 = arith.addf %104, %137 : vector<1x128xf32>
    %c16_i32_60 = arith.constant 16 : i32
    %139 = tpu.dynamic_rotate %104 by %c16_i32_60 dim 1 : vector<1x128xf32>, i32 -> vector<1x128xf32>
    %140 = arith.addf %138, %139 : vector<1x128xf32>
    %c24_i32_61 = arith.constant 24 : i32
    %141 = tpu.dynamic_rotate %104 by %c24_i32_61 dim 1 : vector<1x128xf32>, i32 -> vector<1x128xf32>
    %142 = arith.addf %140, %141 : vector<1x128xf32>
    %c32_i32_62 = arith.constant 32 : i32
    %143 = tpu.dynamic_rotate %104 by %c32_i32_62 dim 1 : vector<1x128xf32>, i32 -> vector<1x128xf32>
    %144 = arith.addf %142, %143 : vector<1x128xf32>
    %c40_i32_63 = arith.constant 40 : i32
    %145 = tpu.dynamic_rotate %104 by %c40_i32_63 dim 1 : vector<1x128xf32>, i32 -> vector<1x128xf32>
    %146 = arith.addf %144, %145 : vector<1x128xf32>
    %c48_i32_64 = arith.constant 48 : i32
    %147 = tpu.dynamic_rotate %104 by %c48_i32_64 dim 1 : vector<1x128xf32>, i32 -> vector<1x128xf32>
    %148 = arith.addf %146, %147 : vector<1x128xf32>
    %c56_i32_65 = arith.constant 56 : i32
    %149 = tpu.dynamic_rotate %104 by %c56_i32_65 dim 1 : vector<1x128xf32>, i32 -> vector<1x128xf32>
    %150 = arith.addf %148, %149 : vector<1x128xf32>
    %c64_i32_66 = arith.constant 64 : i32
    %151 = tpu.dynamic_rotate %104 by %c64_i32_66 dim 1 : vector<1x128xf32>, i32 -> vector<1x128xf32>
    %152 = arith.addf %150, %151 : vector<1x128xf32>
    %c72_i32_67 = arith.constant 72 : i32
    %153 = tpu.dynamic_rotate %104 by %c72_i32_67 dim 1 : vector<1x128xf32>, i32 -> vector<1x128xf32>
    %154 = arith.addf %152, %153 : vector<1x128xf32>
    %c80_i32_68 = arith.constant 80 : i32
    %155 = tpu.dynamic_rotate %104 by %c80_i32_68 dim 1 : vector<1x128xf32>, i32 -> vector<1x128xf32>
    %156 = arith.addf %154, %155 : vector<1x128xf32>
    %c88_i32_69 = arith.constant 88 : i32
    %157 = tpu.dynamic_rotate %104 by %c88_i32_69 dim 1 : vector<1x128xf32>, i32 -> vector<1x128xf32>
    %158 = arith.addf %156, %157 : vector<1x128xf32>
    %c96_i32_70 = arith.constant 96 : i32
    %159 = tpu.dynamic_rotate %104 by %c96_i32_70 dim 1 : vector<1x128xf32>, i32 -> vector<1x128xf32>
    %160 = arith.addf %158, %159 : vector<1x128xf32>
    %c104_i32_71 = arith.constant 104 : i32
    %161 = tpu.dynamic_rotate %104 by %c104_i32_71 dim 1 : vector<1x128xf32>, i32 -> vector<1x128xf32>
    %162 = arith.addf %160, %161 : vector<1x128xf32>
    %c112_i32_72 = arith.constant 112 : i32
    %163 = tpu.dynamic_rotate %104 by %c112_i32_72 dim 1 : vector<1x128xf32>, i32 -> vector<1x128xf32>
    %164 = arith.addf %162, %163 : vector<1x128xf32>
    %c120_i32_73 = arith.constant 120 : i32
    %165 = tpu.dynamic_rotate %104 by %c120_i32_73 dim 1 : vector<1x128xf32>, i32 -> vector<1x128xf32>
    %166 = arith.addf %164, %165 : vector<1x128xf32>
    %cst_74 = arith.constant 0.001953125 : f32
    %167 = vector.broadcast %cst_74 : f32 to vector<1x128xf32>
    %168 = arith.mulf %166, %167 : vector<1x128xf32>
    %169 = arith.mulf %136, %136 : vector<1x128xf32>
    %170 = arith.subf %168, %169 : vector<1x128xf32>
    %cst_75 = arith.constant 9.99999974E-6 : f32
    %171 = vector.broadcast %cst_75 : f32 to vector<1x128xf32>
    %172 = arith.addf %170, %171 : vector<1x128xf32>
    %173 = math.rsqrt %172 : vector<1x128xf32>
    %174 = arith.mulf %98, %173 : vector<1x128xf32>
    %175 = arith.mulf %136, %174 : vector<1x128xf32>
    %176 = arith.subf %99, %175 : vector<1x128xf32>
    %177 = vector.broadcast %174 : vector<1x128xf32> to vector<32x128xf32>
    %178 = arith.mulf %97, %177 : vector<32x128xf32>
    %179 = vector.broadcast %176 : vector<1x128xf32> to vector<32x128xf32>
    %180 = arith.addf %178, %179 : vector<32x128xf32>
    %cst_76 = arith.constant 0.000000e+00 : f32
    %181 = vector.broadcast %cst_76 : f32 to vector<32x128xf32>
    %182 = arith.maximumf %180, %181 : vector<32x128xf32>
    %cst_77 = arith.constant 0.000000e+00 : f32
    %183 = vector.broadcast %cst_77 : f32 to vector<32x8xf32>
    %c0_78 = arith.constant 0 : index
    %c0_79 = arith.constant 0 : index
    %184 = vector.load %arg7[%c0_78, %c0_79] : memref<32x1152xf32, #tpu.memory_space<vmem>>, vector<32x8xf32>
    tpu.vector_store %arg7[%c0_78, %c0_79], %183 {strides = array<i32>} : memref<32x1152xf32, #tpu.memory_space<vmem>>, vector<32x8xf32>,
    %cst_80 = arith.constant 0.000000e+00 : f32
    %185 = vector.broadcast %cst_80 : f32 to vector<1x128xf32>
    %c0_81 = arith.constant 0 : index
    %c0_82 = arith.constant 0 : index
    %186 = vector.load %arg7[%c0_81, %c0_82] : memref<32x1152xf32, #tpu.memory_space<vmem>>, vector<1x128xf32>
    tpu.vector_store %arg7[%c0_81, %c0_82], %185 {strides = array<i32>} : memref<32x1152xf32, #tpu.memory_space<vmem>>, vector<1x128xf32>,
    %187 = vector.extract_strided_slice %182 {offsets = [0, 0], sizes = [31, 120], strides = [1, 1]} : vector<32x128xf32> to vector<31x120xf32>
    %188 = vector.extract_strided_slice %20 {offsets = [1, 0], sizes = [31, 1], strides = [1, 1]} : vector<32x1xi1> to vector<31x1xi1>
    %cst_83 = arith.constant 0.000000e+00 : f32
    %189 = vector.broadcast %cst_83 : f32 to vector<31x120xf32>
    %190 = vector.shape_cast %188 : vector<31x1xi1> to vector<31x1xi1>
    %191 = vector.broadcast %190 : vector<31x1xi1> to vector<31x120xi1>
    %192 = arith.select %191, %187, %189 : vector<31x120xi1>, vector<31x120xf32>
    %c1_84 = arith.constant 1 : index
    %c8 = arith.constant 8 : index
    %193 = vector.load %arg7[%c1_84, %c8] : memref<32x1152xf32, #tpu.memory_space<vmem>>, vector<31x120xf32>
    tpu.vector_store %arg7[%c1_84, %c8], %192 {strides = array<i32>} : memref<32x1152xf32, #tpu.memory_space<vmem>>, vector<31x120xf32>,
    %cst_85 = arith.constant 0.000000e+00 : f32
    %194 = vector.broadcast %cst_85 : f32 to vector<1x128xf32>
    %c0_86 = arith.constant 0 : index
    %c128_87 = arith.constant 128 : index
    %195 = vector.load %arg7[%c0_86, %c128_87] : memref<32x1152xf32, #tpu.memory_space<vmem>>, vector<1x128xf32>
    tpu.vector_store %arg7[%c0_86, %c128_87], %194 {strides = array<i32>} : memref<32x1152xf32, #tpu.memory_space<vmem>>, vector<1x128xf32>,
    %196 = vector.extract_strided_slice %182 {offsets = [0, 0], sizes = [31, 128], strides = [1, 1]} : vector<32x128xf32> to vector<31x128xf32>
    %197 = vector.extract_strided_slice %20 {offsets = [1, 0], sizes = [31, 1], strides = [1, 1]} : vector<32x1xi1> to vector<31x1xi1>
    %cst_88 = arith.constant 0.000000e+00 : f32
    %198 = vector.broadcast %cst_88 : f32 to vector<31x128xf32>
    %199 = vector.shape_cast %197 : vector<31x1xi1> to vector<31x1xi1>
    %200 = vector.broadcast %199 : vector<31x1xi1> to vector<31x128xi1>
    %201 = arith.select %200, %196, %198 : vector<31x128xi1>, vector<31x128xf32>
    %c1_89 = arith.constant 1 : index
    %c128_90 = arith.constant 128 : index
    %202 = vector.load %arg7[%c1_89, %c128_90] : memref<32x1152xf32, #tpu.memory_space<vmem>>, vector<31x128xf32>
    tpu.vector_store %arg7[%c1_89, %c128_90], %201 {strides = array<i32>} : memref<32x1152xf32, #tpu.memory_space<vmem>>, vector<31x128xf32>,
    %cst_91 = arith.constant 0.000000e+00 : f32
    %203 = vector.broadcast %cst_91 : f32 to vector<32x8xf32>
    %c0_92 = arith.constant 0 : index
    %c376 = arith.constant 376 : index
    %204 = vector.load %arg7[%c0_92, %c376] : memref<32x1152xf32, #tpu.memory_space<vmem>>, vector<32x8xf32>
    tpu.vector_store %arg7[%c0_92, %c376], %203 {strides = array<i32>} : memref<32x1152xf32, #tpu.memory_space<vmem>>, vector<32x8xf32>,
    %cst_93 = arith.constant 0.000000e+00 : f32
    %205 = vector.broadcast %cst_93 : f32 to vector<1x128xf32>
    %c0_94 = arith.constant 0 : index
    %c256_95 = arith.constant 256 : index
    %206 = vector.load %arg7[%c0_94, %c256_95] : memref<32x1152xf32, #tpu.memory_space<vmem>>, vector<1x128xf32>
    tpu.vector_store %arg7[%c0_94, %c256_95], %205 {strides = array<i32>} : memref<32x1152xf32, #tpu.memory_space<vmem>>, vector<1x128xf32>,
    %207 = vector.extract_strided_slice %182 {offsets = [0, 8], sizes = [31, 120], strides = [1, 1]} : vector<32x128xf32> to vector<31x120xf32>
    %208 = vector.extract_strided_slice %20 {offsets = [1, 0], sizes = [31, 1], strides = [1, 1]} : vector<32x1xi1> to vector<31x1xi1>
    %cst_96 = arith.constant 0.000000e+00 : f32
    %209 = vector.broadcast %cst_96 : f32 to vector<31x120xf32>
    %210 = vector.shape_cast %208 : vector<31x1xi1> to vector<31x1xi1>
    %211 = vector.broadcast %210 : vector<31x1xi1> to vector<31x120xi1>
    %212 = arith.select %211, %207, %209 : vector<31x120xi1>, vector<31x120xf32>
    %c1_97 = arith.constant 1 : index
    %c256_98 = arith.constant 256 : index
    %213 = vector.load %arg7[%c1_97, %c256_98] : memref<32x1152xf32, #tpu.memory_space<vmem>>, vector<31x120xf32>
    tpu.vector_store %arg7[%c1_97, %c256_98], %212 {strides = array<i32>} : memref<32x1152xf32, #tpu.memory_space<vmem>>, vector<31x120xf32>,
    %cst_99 = arith.constant 0.000000e+00 : f32
    %214 = vector.broadcast %cst_99 : f32 to vector<32x8xf32>
    %c0_100 = arith.constant 0 : index
    %c384_101 = arith.constant 384 : index
    %215 = vector.load %arg7[%c0_100, %c384_101] : memref<32x1152xf32, #tpu.memory_space<vmem>>, vector<32x8xf32>
    tpu.vector_store %arg7[%c0_100, %c384_101], %214 {strides = array<i32>} : memref<32x1152xf32, #tpu.memory_space<vmem>>, vector<32x8xf32>,
    %216 = vector.extract_strided_slice %182 {offsets = [0, 0], sizes = [32, 120], strides = [1, 1]} : vector<32x128xf32> to vector<32x120xf32>
    %c0_102 = arith.constant 0 : index
    %c392 = arith.constant 392 : index
    %217 = vector.load %arg7[%c0_102, %c392] : memref<32x1152xf32, #tpu.memory_space<vmem>>, vector<32x120xf32>
    tpu.vector_store %arg7[%c0_102, %c392], %216 {strides = array<i32>} : memref<32x1152xf32, #tpu.memory_space<vmem>>, vector<32x120xf32>,
    %c0_103 = arith.constant 0 : index
    %c512_104 = arith.constant 512 : index
    %218 = vector.load %arg7[%c0_103, %c512_104] : memref<32x1152xf32, #tpu.memory_space<vmem>>, vector<32x128xf32>
    tpu.vector_store %arg7[%c0_103, %c512_104], %182 {strides = array<i32>} : memref<32x1152xf32, #tpu.memory_space<vmem>>, vector<32x128xf32>,
    %cst_105 = arith.constant 0.000000e+00 : f32
    %219 = vector.broadcast %cst_105 : f32 to vector<32x8xf32>
    %c0_106 = arith.constant 0 : index
    %c760 = arith.constant 760 : index
    %220 = vector.load %arg7[%c0_106, %c760] : memref<32x1152xf32, #tpu.memory_space<vmem>>, vector<32x8xf32>
    tpu.vector_store %arg7[%c0_106, %c760], %219 {strides = array<i32>} : memref<32x1152xf32, #tpu.memory_space<vmem>>, vector<32x8xf32>,
    %221 = vector.extract_strided_slice %182 {offsets = [0, 8], sizes = [32, 120], strides = [1, 1]} : vector<32x128xf32> to vector<32x120xf32>
    %c0_107 = arith.constant 0 : index
    %c640 = arith.constant 640 : index
    %222 = vector.load %arg7[%c0_107, %c640] : memref<32x1152xf32, #tpu.memory_space<vmem>>, vector<32x120xf32>
    tpu.vector_store %arg7[%c0_107, %c640], %221 {strides = array<i32>} : memref<32x1152xf32, #tpu.memory_space<vmem>>, vector<32x120xf32>,
    %cst_108 = arith.constant 0.000000e+00 : f32
    %223 = vector.broadcast %cst_108 : f32 to vector<32x8xf32>
    %c0_109 = arith.constant 0 : index
    %c768 = arith.constant 768 : index
    %224 = vector.load %arg7[%c0_109, %c768] : memref<32x1152xf32, #tpu.memory_space<vmem>>, vector<32x8xf32>
    tpu.vector_store %arg7[%c0_109, %c768], %223 {strides = array<i32>} : memref<32x1152xf32, #tpu.memory_space<vmem>>, vector<32x8xf32>,
    %cst_110 = arith.constant 0.000000e+00 : f32
    %225 = vector.broadcast %cst_110 : f32 to vector<1x128xf32>
    %c31_111 = arith.constant 31 : index
    %c768_112 = arith.constant 768 : index
    %226 = vector.load %arg7[%c31_111, %c768_112] : memref<32x1152xf32, #tpu.memory_space<vmem>>, vector<1x128xf32>
    tpu.vector_store %arg7[%c31_111, %c768_112], %225 {strides = array<i32>} : memref<32x1152xf32, #tpu.memory_space<vmem>>, vector<1x128xf32>,
    %227 = vector.extract_strided_slice %182 {offsets = [1, 0], sizes = [31, 120], strides = [1, 1]} : vector<32x128xf32> to vector<31x120xf32>
    %228 = vector.extract_strided_slice %18 {offsets = [0, 0], sizes = [31, 1], strides = [1, 1]} : vector<32x1xi1> to vector<31x1xi1>
    %cst_113 = arith.constant 0.000000e+00 : f32
    %229 = vector.broadcast %cst_113 : f32 to vector<31x120xf32>
    %230 = vector.shape_cast %228 : vector<31x1xi1> to vector<31x1xi1>
    %231 = vector.broadcast %230 : vector<31x1xi1> to vector<31x120xi1>
    %232 = arith.select %231, %227, %229 : vector<31x120xi1>, vector<31x120xf32>
    %c0_114 = arith.constant 0 : index
    %c776 = arith.constant 776 : index
    %233 = vector.load %arg7[%c0_114, %c776] : memref<32x1152xf32, #tpu.memory_space<vmem>>, vector<31x120xf32>
    tpu.vector_store %arg7[%c0_114, %c776], %232 {strides = array<i32>} : memref<32x1152xf32, #tpu.memory_space<vmem>>, vector<31x120xf32>,
    %cst_115 = arith.constant 0.000000e+00 : f32
    %234 = vector.broadcast %cst_115 : f32 to vector<1x128xf32>
    %c31_116 = arith.constant 31 : index
    %c896 = arith.constant 896 : index
    %235 = vector.load %arg7[%c31_116, %c896] : memref<32x1152xf32, #tpu.memory_space<vmem>>, vector<1x128xf32>
    tpu.vector_store %arg7[%c31_116, %c896], %234 {strides = array<i32>} : memref<32x1152xf32, #tpu.memory_space<vmem>>, vector<1x128xf32>,
    %236 = vector.extract_strided_slice %182 {offsets = [1, 0], sizes = [31, 128], strides = [1, 1]} : vector<32x128xf32> to vector<31x128xf32>
    %237 = vector.extract_strided_slice %18 {offsets = [0, 0], sizes = [31, 1], strides = [1, 1]} : vector<32x1xi1> to vector<31x1xi1>
    %cst_117 = arith.constant 0.000000e+00 : f32
    %238 = vector.broadcast %cst_117 : f32 to vector<31x128xf32>
    %239 = vector.shape_cast %237 : vector<31x1xi1> to vector<31x1xi1>
    %240 = vector.broadcast %239 : vector<31x1xi1> to vector<31x128xi1>
    %241 = arith.select %240, %236, %238 : vector<31x128xi1>, vector<31x128xf32>
    %c0_118 = arith.constant 0 : index
    %c896_119 = arith.constant 896 : index
    %242 = vector.load %arg7[%c0_118, %c896_119] : memref<32x1152xf32, #tpu.memory_space<vmem>>, vector<31x128xf32>
    tpu.vector_store %arg7[%c0_118, %c896_119], %241 {strides = array<i32>} : memref<32x1152xf32, #tpu.memory_space<vmem>>, vector<31x128xf32>,
    %cst_120 = arith.constant 0.000000e+00 : f32
    %243 = vector.broadcast %cst_120 : f32 to vector<32x8xf32>
    %c0_121 = arith.constant 0 : index
    %c1144 = arith.constant 1144 : index
    %244 = vector.load %arg7[%c0_121, %c1144] : memref<32x1152xf32, #tpu.memory_space<vmem>>, vector<32x8xf32>
    tpu.vector_store %arg7[%c0_121, %c1144], %243 {strides = array<i32>} : memref<32x1152xf32, #tpu.memory_space<vmem>>, vector<32x8xf32>,
    %cst_122 = arith.constant 0.000000e+00 : f32
    %245 = vector.broadcast %cst_122 : f32 to vector<1x128xf32>
    %c31_123 = arith.constant 31 : index
    %c1024 = arith.constant 1024 : index
    %246 = vector.load %arg7[%c31_123, %c1024] : memref<32x1152xf32, #tpu.memory_space<vmem>>, vector<1x128xf32>
    tpu.vector_store %arg7[%c31_123, %c1024], %245 {strides = array<i32>} : memref<32x1152xf32, #tpu.memory_space<vmem>>, vector<1x128xf32>,
    %247 = vector.extract_strided_slice %182 {offsets = [1, 8], sizes = [31, 120], strides = [1, 1]} : vector<32x128xf32> to vector<31x120xf32>
    %248 = vector.extract_strided_slice %18 {offsets = [0, 0], sizes = [31, 1], strides = [1, 1]} : vector<32x1xi1> to vector<31x1xi1>
    %cst_124 = arith.constant 0.000000e+00 : f32
    %249 = vector.broadcast %cst_124 : f32 to vector<31x120xf32>
    %250 = vector.shape_cast %248 : vector<31x1xi1> to vector<31x1xi1>
    %251 = vector.broadcast %250 : vector<31x1xi1> to vector<31x120xi1>
    %252 = arith.select %251, %247, %249 : vector<31x120xi1>, vector<31x120xf32>
    %c0_125 = arith.constant 0 : index
    %c1024_126 = arith.constant 1024 : index
    %253 = vector.load %arg7[%c0_125, %c1024_126] : memref<32x1152xf32, #tpu.memory_space<vmem>>, vector<31x120xf32>
    tpu.vector_store %arg7[%c0_125, %c1024_126], %252 {strides = array<i32>} : memref<32x1152xf32, #tpu.memory_space<vmem>>, vector<31x120xf32>,
    %c0_127 = arith.constant 0 : index
    %c0_128 = arith.constant 0 : index
    %254 = vector.load %arg7[%c0_127, %c0_128] : memref<32x1152xf32, #tpu.memory_space<vmem>>, vector<32x1152xf32>
    %255 = arith.truncf %254 : vector<32x1152xf32> to vector<32x1152xbf16>
    %c0_129 = arith.constant 0 : index
    %c0_130 = arith.constant 0 : index
    %256 = vector.load %arg2[%c0_129, %c0_130] : memref<1152x128xbf16, #tpu.memory_space<vmem>>, vector<1152x128xbf16>
    %cst_131 = arith.constant dense<0.000000e+00> : vector<32x128xf32>
    %257 = tpu.matmul %255, %256, %cst_131 {dimension_numbers = #tpu.dot_dimension_numbers<[1], [0], [0], [1], [0, 0, 1, 1], [], []>} : vector<32x1152xbf16>, vector<1152x128xbf16>, vector<32x128xf32> -> vector<32x128xf32>
    %258 = vector.extract_strided_slice %22 {offsets = [2, 0], sizes = [1, 128], strides = [1, 1]} : vector<6x128xf32> to vector<1x128xf32>
    %259 = vector.extract_strided_slice %22 {offsets = [3, 0], sizes = [1, 128], strides = [1, 1]} : vector<6x128xf32> to vector<1x128xf32>
    %cst_132 = arith.constant dense<0.000000e+00> : vector<128xf32>
    %260 = vector.multi_reduction <add>, %257, %cst_132 [0] : vector<32x128xf32> to vector<128xf32>
    %261 = vector.shape_cast %260 : vector<128xf32> to vector<1x128xf32>
    %262 = arith.mulf %257, %257 : vector<32x128xf32>
    %cst_133 = arith.constant dense<0.000000e+00> : vector<128xf32>
    %263 = vector.multi_reduction <add>, %262, %cst_133 [0] : vector<32x128xf32> to vector<128xf32>
    %264 = vector.shape_cast %263 : vector<128xf32> to vector<1x128xf32>
    %c8_i32_134 = arith.constant 8 : i32
    %265 = tpu.dynamic_rotate %261 by %c8_i32_134 dim 1 : vector<1x128xf32>, i32 -> vector<1x128xf32>
    %266 = arith.addf %261, %265 : vector<1x128xf32>
    %c16_i32_135 = arith.constant 16 : i32
    %267 = tpu.dynamic_rotate %261 by %c16_i32_135 dim 1 : vector<1x128xf32>, i32 -> vector<1x128xf32>
    %268 = arith.addf %266, %267 : vector<1x128xf32>
    %c24_i32_136 = arith.constant 24 : i32
    %269 = tpu.dynamic_rotate %261 by %c24_i32_136 dim 1 : vector<1x128xf32>, i32 -> vector<1x128xf32>
    %270 = arith.addf %268, %269 : vector<1x128xf32>
    %c32_i32_137 = arith.constant 32 : i32
    %271 = tpu.dynamic_rotate %261 by %c32_i32_137 dim 1 : vector<1x128xf32>, i32 -> vector<1x128xf32>
    %272 = arith.addf %270, %271 : vector<1x128xf32>
    %c40_i32_138 = arith.constant 40 : i32
    %273 = tpu.dynamic_rotate %261 by %c40_i32_138 dim 1 : vector<1x128xf32>, i32 -> vector<1x128xf32>
    %274 = arith.addf %272, %273 : vector<1x128xf32>
    %c48_i32_139 = arith.constant 48 : i32
    %275 = tpu.dynamic_rotate %261 by %c48_i32_139 dim 1 : vector<1x128xf32>, i32 -> vector<1x128xf32>
    %276 = arith.addf %274, %275 : vector<1x128xf32>
    %c56_i32_140 = arith.constant 56 : i32
    %277 = tpu.dynamic_rotate %261 by %c56_i32_140 dim 1 : vector<1x128xf32>, i32 -> vector<1x128xf32>
    %278 = arith.addf %276, %277 : vector<1x128xf32>
    %c64_i32_141 = arith.constant 64 : i32
    %279 = tpu.dynamic_rotate %261 by %c64_i32_141 dim 1 : vector<1x128xf32>, i32 -> vector<1x128xf32>
    %280 = arith.addf %278, %279 : vector<1x128xf32>
    %c72_i32_142 = arith.constant 72 : i32
    %281 = tpu.dynamic_rotate %261 by %c72_i32_142 dim 1 : vector<1x128xf32>, i32 -> vector<1x128xf32>
    %282 = arith.addf %280, %281 : vector<1x128xf32>
    %c80_i32_143 = arith.constant 80 : i32
    %283 = tpu.dynamic_rotate %261 by %c80_i32_143 dim 1 : vector<1x128xf32>, i32 -> vector<1x128xf32>
    %284 = arith.addf %282, %283 : vector<1x128xf32>
    %c88_i32_144 = arith.constant 88 : i32
    %285 = tpu.dynamic_rotate %261 by %c88_i32_144 dim 1 : vector<1x128xf32>, i32 -> vector<1x128xf32>
    %286 = arith.addf %284, %285 : vector<1x128xf32>
    %c96_i32_145 = arith.constant 96 : i32
    %287 = tpu.dynamic_rotate %261 by %c96_i32_145 dim 1 : vector<1x128xf32>, i32 -> vector<1x128xf32>
    %288 = arith.addf %286, %287 : vector<1x128xf32>
    %c104_i32_146 = arith.constant 104 : i32
    %289 = tpu.dynamic_rotate %261 by %c104_i32_146 dim 1 : vector<1x128xf32>, i32 -> vector<1x128xf32>
    %290 = arith.addf %288, %289 : vector<1x128xf32>
    %c112_i32_147 = arith.constant 112 : i32
    %291 = tpu.dynamic_rotate %261 by %c112_i32_147 dim 1 : vector<1x128xf32>, i32 -> vector<1x128xf32>
    %292 = arith.addf %290, %291 : vector<1x128xf32>
    %c120_i32_148 = arith.constant 120 : i32
    %293 = tpu.dynamic_rotate %261 by %c120_i32_148 dim 1 : vector<1x128xf32>, i32 -> vector<1x128xf32>
    %294 = arith.addf %292, %293 : vector<1x128xf32>
    %cst_149 = arith.constant 0.001953125 : f32
    %295 = vector.broadcast %cst_149 : f32 to vector<1x128xf32>
    %296 = arith.mulf %294, %295 : vector<1x128xf32>
    %c8_i32_150 = arith.constant 8 : i32
    %297 = tpu.dynamic_rotate %264 by %c8_i32_150 dim 1 : vector<1x128xf32>, i32 -> vector<1x128xf32>
    %298 = arith.addf %264, %297 : vector<1x128xf32>
    %c16_i32_151 = arith.constant 16 : i32
    %299 = tpu.dynamic_rotate %264 by %c16_i32_151 dim 1 : vector<1x128xf32>, i32 -> vector<1x128xf32>
    %300 = arith.addf %298, %299 : vector<1x128xf32>
    %c24_i32_152 = arith.constant 24 : i32
    %301 = tpu.dynamic_rotate %264 by %c24_i32_152 dim 1 : vector<1x128xf32>, i32 -> vector<1x128xf32>
    %302 = arith.addf %300, %301 : vector<1x128xf32>
    %c32_i32_153 = arith.constant 32 : i32
    %303 = tpu.dynamic_rotate %264 by %c32_i32_153 dim 1 : vector<1x128xf32>, i32 -> vector<1x128xf32>
    %304 = arith.addf %302, %303 : vector<1x128xf32>
    %c40_i32_154 = arith.constant 40 : i32
    %305 = tpu.dynamic_rotate %264 by %c40_i32_154 dim 1 : vector<1x128xf32>, i32 -> vector<1x128xf32>
    %306 = arith.addf %304, %305 : vector<1x128xf32>
    %c48_i32_155 = arith.constant 48 : i32
    %307 = tpu.dynamic_rotate %264 by %c48_i32_155 dim 1 : vector<1x128xf32>, i32 -> vector<1x128xf32>
    %308 = arith.addf %306, %307 : vector<1x128xf32>
    %c56_i32_156 = arith.constant 56 : i32
    %309 = tpu.dynamic_rotate %264 by %c56_i32_156 dim 1 : vector<1x128xf32>, i32 -> vector<1x128xf32>
    %310 = arith.addf %308, %309 : vector<1x128xf32>
    %c64_i32_157 = arith.constant 64 : i32
    %311 = tpu.dynamic_rotate %264 by %c64_i32_157 dim 1 : vector<1x128xf32>, i32 -> vector<1x128xf32>
    %312 = arith.addf %310, %311 : vector<1x128xf32>
    %c72_i32_158 = arith.constant 72 : i32
    %313 = tpu.dynamic_rotate %264 by %c72_i32_158 dim 1 : vector<1x128xf32>, i32 -> vector<1x128xf32>
    %314 = arith.addf %312, %313 : vector<1x128xf32>
    %c80_i32_159 = arith.constant 80 : i32
    %315 = tpu.dynamic_rotate %264 by %c80_i32_159 dim 1 : vector<1x128xf32>, i32 -> vector<1x128xf32>
    %316 = arith.addf %314, %315 : vector<1x128xf32>
    %c88_i32_160 = arith.constant 88 : i32
    %317 = tpu.dynamic_rotate %264 by %c88_i32_160 dim 1 : vector<1x128xf32>, i32 -> vector<1x128xf32>
    %318 = arith.addf %316, %317 : vector<1x128xf32>
    %c96_i32_161 = arith.constant 96 : i32
    %319 = tpu.dynamic_rotate %264 by %c96_i32_161 dim 1 : vector<1x128xf32>, i32 -> vector<1x128xf32>
    %320 = arith.addf %318, %319 : vector<1x128xf32>
    %c104_i32_162 = arith.constant 104 : i32
    %321 = tpu.dynamic_rotate %264 by %c104_i32_162 dim 1 : vector<1x128xf32>, i32 -> vector<1x128xf32>
    %322 = arith.addf %320, %321 : vector<1x128xf32>
    %c112_i32_163 = arith.constant 112 : i32
    %323 = tpu.dynamic_rotate %264 by %c112_i32_163 dim 1 : vector<1x128xf32>, i32 -> vector<1x128xf32>
    %324 = arith.addf %322, %323 : vector<1x128xf32>
    %c120_i32_164 = arith.constant 120 : i32
    %325 = tpu.dynamic_rotate %264 by %c120_i32_164 dim 1 : vector<1x128xf32>, i32 -> vector<1x128xf32>
    %326 = arith.addf %324, %325 : vector<1x128xf32>
    %cst_165 = arith.constant 0.001953125 : f32
    %327 = vector.broadcast %cst_165 : f32 to vector<1x128xf32>
    %328 = arith.mulf %326, %327 : vector<1x128xf32>
    %329 = arith.mulf %296, %296 : vector<1x128xf32>
    %330 = arith.subf %328, %329 : vector<1x128xf32>
    %cst_166 = arith.constant 9.99999974E-6 : f32
    %331 = vector.broadcast %cst_166 : f32 to vector<1x128xf32>
    %332 = arith.addf %330, %331 : vector<1x128xf32>
    %333 = math.rsqrt %332 : vector<1x128xf32>
    %334 = arith.mulf %258, %333 : vector<1x128xf32>
    %335 = arith.mulf %296, %334 : vector<1x128xf32>
    %336 = arith.subf %259, %335 : vector<1x128xf32>
    %337 = arith.truncf %21 : vector<32x64xf32> to vector<32x64xbf16>
    %c0_167 = arith.constant 0 : index
    %c0_168 = arith.constant 0 : index
    %338 = vector.load %arg3[%c0_167, %c0_168] : memref<64x128xbf16, #tpu.memory_space<vmem>>, vector<64x128xbf16>
    %cst_169 = arith.constant dense<0.000000e+00> : vector<32x128xf32>
    %339 = tpu.matmul %337, %338, %cst_169 {dimension_numbers = #tpu.dot_dimension_numbers<[1], [0], [0], [1], [0, 0, 1, 1], [], []>} : vector<32x64xbf16>, vector<64x128xbf16>, vector<32x128xf32> -> vector<32x128xf32>
    %340 = vector.extract_strided_slice %22 {offsets = [4, 0], sizes = [1, 128], strides = [1, 1]} : vector<6x128xf32> to vector<1x128xf32>
    %341 = vector.extract_strided_slice %22 {offsets = [5, 0], sizes = [1, 128], strides = [1, 1]} : vector<6x128xf32> to vector<1x128xf32>
    %cst_170 = arith.constant dense<0.000000e+00> : vector<128xf32>
    %342 = vector.multi_reduction <add>, %339, %cst_170 [0] : vector<32x128xf32> to vector<128xf32>
    %343 = vector.shape_cast %342 : vector<128xf32> to vector<1x128xf32>
    %344 = arith.mulf %339, %339 : vector<32x128xf32>
    %cst_171 = arith.constant dense<0.000000e+00> : vector<128xf32>
    %345 = vector.multi_reduction <add>, %344, %cst_171 [0] : vector<32x128xf32> to vector<128xf32>
    %346 = vector.shape_cast %345 : vector<128xf32> to vector<1x128xf32>
    %c8_i32_172 = arith.constant 8 : i32
    %347 = tpu.dynamic_rotate %343 by %c8_i32_172 dim 1 : vector<1x128xf32>, i32 -> vector<1x128xf32>
    %348 = arith.addf %343, %347 : vector<1x128xf32>
    %c16_i32_173 = arith.constant 16 : i32
    %349 = tpu.dynamic_rotate %343 by %c16_i32_173 dim 1 : vector<1x128xf32>, i32 -> vector<1x128xf32>
    %350 = arith.addf %348, %349 : vector<1x128xf32>
    %c24_i32_174 = arith.constant 24 : i32
    %351 = tpu.dynamic_rotate %343 by %c24_i32_174 dim 1 : vector<1x128xf32>, i32 -> vector<1x128xf32>
    %352 = arith.addf %350, %351 : vector<1x128xf32>
    %c32_i32_175 = arith.constant 32 : i32
    %353 = tpu.dynamic_rotate %343 by %c32_i32_175 dim 1 : vector<1x128xf32>, i32 -> vector<1x128xf32>
    %354 = arith.addf %352, %353 : vector<1x128xf32>
    %c40_i32_176 = arith.constant 40 : i32
    %355 = tpu.dynamic_rotate %343 by %c40_i32_176 dim 1 : vector<1x128xf32>, i32 -> vector<1x128xf32>
    %356 = arith.addf %354, %355 : vector<1x128xf32>
    %c48_i32_177 = arith.constant 48 : i32
    %357 = tpu.dynamic_rotate %343 by %c48_i32_177 dim 1 : vector<1x128xf32>, i32 -> vector<1x128xf32>
    %358 = arith.addf %356, %357 : vector<1x128xf32>
    %c56_i32_178 = arith.constant 56 : i32
    %359 = tpu.dynamic_rotate %343 by %c56_i32_178 dim 1 : vector<1x128xf32>, i32 -> vector<1x128xf32>
    %360 = arith.addf %358, %359 : vector<1x128xf32>
    %c64_i32_179 = arith.constant 64 : i32
    %361 = tpu.dynamic_rotate %343 by %c64_i32_179 dim 1 : vector<1x128xf32>, i32 -> vector<1x128xf32>
    %362 = arith.addf %360, %361 : vector<1x128xf32>
    %c72_i32_180 = arith.constant 72 : i32
    %363 = tpu.dynamic_rotate %343 by %c72_i32_180 dim 1 : vector<1x128xf32>, i32 -> vector<1x128xf32>
    %364 = arith.addf %362, %363 : vector<1x128xf32>
    %c80_i32_181 = arith.constant 80 : i32
    %365 = tpu.dynamic_rotate %343 by %c80_i32_181 dim 1 : vector<1x128xf32>, i32 -> vector<1x128xf32>
    %366 = arith.addf %364, %365 : vector<1x128xf32>
    %c88_i32_182 = arith.constant 88 : i32
    %367 = tpu.dynamic_rotate %343 by %c88_i32_182 dim 1 : vector<1x128xf32>, i32 -> vector<1x128xf32>
    %368 = arith.addf %366, %367 : vector<1x128xf32>
    %c96_i32_183 = arith.constant 96 : i32
    %369 = tpu.dynamic_rotate %343 by %c96_i32_183 dim 1 : vector<1x128xf32>, i32 -> vector<1x128xf32>
    %370 = arith.addf %368, %369 : vector<1x128xf32>
    %c104_i32_184 = arith.constant 104 : i32
    %371 = tpu.dynamic_rotate %343 by %c104_i32_184 dim 1 : vector<1x128xf32>, i32 -> vector<1x128xf32>
    %372 = arith.addf %370, %371 : vector<1x128xf32>
    %c112_i32_185 = arith.constant 112 : i32
    %373 = tpu.dynamic_rotate %343 by %c112_i32_185 dim 1 : vector<1x128xf32>, i32 -> vector<1x128xf32>
    %374 = arith.addf %372, %373 : vector<1x128xf32>
    %c120_i32_186 = arith.constant 120 : i32
    %375 = tpu.dynamic_rotate %343 by %c120_i32_186 dim 1 : vector<1x128xf32>, i32 -> vector<1x128xf32>
    %376 = arith.addf %374, %375 : vector<1x128xf32>
    %cst_187 = arith.constant 0.001953125 : f32
    %377 = vector.broadcast %cst_187 : f32 to vector<1x128xf32>
    %378 = arith.mulf %376, %377 : vector<1x128xf32>
    %c8_i32_188 = arith.constant 8 : i32
    %379 = tpu.dynamic_rotate %346 by %c8_i32_188 dim 1 : vector<1x128xf32>, i32 -> vector<1x128xf32>
    %380 = arith.addf %346, %379 : vector<1x128xf32>
    %c16_i32_189 = arith.constant 16 : i32
    %381 = tpu.dynamic_rotate %346 by %c16_i32_189 dim 1 : vector<1x128xf32>, i32 -> vector<1x128xf32>
    %382 = arith.addf %380, %381 : vector<1x128xf32>
    %c24_i32_190 = arith.constant 24 : i32
    %383 = tpu.dynamic_rotate %346 by %c24_i32_190 dim 1 : vector<1x128xf32>, i32 -> vector<1x128xf32>
    %384 = arith.addf %382, %383 : vector<1x128xf32>
    %c32_i32_191 = arith.constant 32 : i32
    %385 = tpu.dynamic_rotate %346 by %c32_i32_191 dim 1 : vector<1x128xf32>, i32 -> vector<1x128xf32>
    %386 = arith.addf %384, %385 : vector<1x128xf32>
    %c40_i32_192 = arith.constant 40 : i32
    %387 = tpu.dynamic_rotate %346 by %c40_i32_192 dim 1 : vector<1x128xf32>, i32 -> vector<1x128xf32>
    %388 = arith.addf %386, %387 : vector<1x128xf32>
    %c48_i32_193 = arith.constant 48 : i32
    %389 = tpu.dynamic_rotate %346 by %c48_i32_193 dim 1 : vector<1x128xf32>, i32 -> vector<1x128xf32>
    %390 = arith.addf %388, %389 : vector<1x128xf32>
    %c56_i32_194 = arith.constant 56 : i32
    %391 = tpu.dynamic_rotate %346 by %c56_i32_194 dim 1 : vector<1x128xf32>, i32 -> vector<1x128xf32>
    %392 = arith.addf %390, %391 : vector<1x128xf32>
    %c64_i32_195 = arith.constant 64 : i32
    %393 = tpu.dynamic_rotate %346 by %c64_i32_195 dim 1 : vector<1x128xf32>, i32 -> vector<1x128xf32>
    %394 = arith.addf %392, %393 : vector<1x128xf32>
    %c72_i32_196 = arith.constant 72 : i32
    %395 = tpu.dynamic_rotate %346 by %c72_i32_196 dim 1 : vector<1x128xf32>, i32 -> vector<1x128xf32>
    %396 = arith.addf %394, %395 : vector<1x128xf32>
    %c80_i32_197 = arith.constant 80 : i32
    %397 = tpu.dynamic_rotate %346 by %c80_i32_197 dim 1 : vector<1x128xf32>, i32 -> vector<1x128xf32>
    %398 = arith.addf %396, %397 : vector<1x128xf32>
    %c88_i32_198 = arith.constant 88 : i32
    %399 = tpu.dynamic_rotate %346 by %c88_i32_198 dim 1 : vector<1x128xf32>, i32 -> vector<1x128xf32>
    %400 = arith.addf %398, %399 : vector<1x128xf32>
    %c96_i32_199 = arith.constant 96 : i32
    %401 = tpu.dynamic_rotate %346 by %c96_i32_199 dim 1 : vector<1x128xf32>, i32 -> vector<1x128xf32>
    %402 = arith.addf %400, %401 : vector<1x128xf32>
    %c104_i32_200 = arith.constant 104 : i32
    %403 = tpu.dynamic_rotate %346 by %c104_i32_200 dim 1 : vector<1x128xf32>, i32 -> vector<1x128xf32>
    %404 = arith.addf %402, %403 : vector<1x128xf32>
    %c112_i32_201 = arith.constant 112 : i32
    %405 = tpu.dynamic_rotate %346 by %c112_i32_201 dim 1 : vector<1x128xf32>, i32 -> vector<1x128xf32>
    %406 = arith.addf %404, %405 : vector<1x128xf32>
    %c120_i32_202 = arith.constant 120 : i32
    %407 = tpu.dynamic_rotate %346 by %c120_i32_202 dim 1 : vector<1x128xf32>, i32 -> vector<1x128xf32>
    %408 = arith.addf %406, %407 : vector<1x128xf32>
    %cst_203 = arith.constant 0.001953125 : f32
    %409 = vector.broadcast %cst_203 : f32 to vector<1x128xf32>
    %410 = arith.mulf %408, %409 : vector<1x128xf32>
    %411 = arith.mulf %378, %378 : vector<1x128xf32>
    %412 = arith.subf %410, %411 : vector<1x128xf32>
    %cst_204 = arith.constant 9.99999974E-6 : f32
    %413 = vector.broadcast %cst_204 : f32 to vector<1x128xf32>
    %414 = arith.addf %412, %413 : vector<1x128xf32>
    %415 = math.rsqrt %414 : vector<1x128xf32>
    %416 = arith.mulf %340, %415 : vector<1x128xf32>
    %417 = arith.mulf %378, %416 : vector<1x128xf32>
    %418 = arith.subf %341, %417 : vector<1x128xf32>
    %419 = vector.broadcast %334 : vector<1x128xf32> to vector<32x128xf32>
    %420 = arith.mulf %257, %419 : vector<32x128xf32>
    %421 = vector.broadcast %336 : vector<1x128xf32> to vector<32x128xf32>
    %422 = arith.addf %420, %421 : vector<32x128xf32>
    %423 = vector.broadcast %416 : vector<1x128xf32> to vector<32x128xf32>
    %424 = arith.mulf %339, %423 : vector<32x128xf32>
    %425 = arith.addf %422, %424 : vector<32x128xf32>
    %426 = vector.broadcast %418 : vector<1x128xf32> to vector<32x128xf32>
    %427 = arith.addf %425, %426 : vector<32x128xf32>
    %cst_205 = arith.constant 0.000000e+00 : f32
    %428 = vector.broadcast %cst_205 : f32 to vector<32x128xf32>
    %429 = arith.maximumf %427, %428 : vector<32x128xf32>
    %c0_206 = arith.constant 0 : index
    %c0_207 = arith.constant 0 : index
    %430 = vector.load %arg5[%c0_206, %c0_207] : memref<32x128xf32, #tpu.memory_space<vmem>>, vector<32x128xf32>
    tpu.vector_store %arg5[%c0_206, %c0_207], %429 {strides = array<i32>} : memref<32x128xf32, #tpu.memory_space<vmem>>, vector<32x128xf32>,
    return
  }
}

</mosaic_0001>

<bundles_post_ra>
// kernel: tpu_custom_call.1
= control target key start
LH: loop header
LB: loop body
LE: loop exit
PB: predicated region body
PF: predicated region fallthrough
CT: control target
= control target key end

     0   :  { %10 = vsyncpa [#allocation5], 0  ;;  %s3898_s0 = inlined_call_operand.hbm [shape: f32[32,64], index: 0, kind: input, shape index: {}]   ;;  %s3899_s1 = inlined_call_operand.hbm [shape: bf16[576,128], index: 1, kind: input, shape index: {}]   ;;  %s3900_s2 = inlined_call_operand.hbm [shape: bf16[1152,128], index: 2, kind: input, shape index: {}]   ;;  %s3901_s3 = inlined_call_operand.hbm [shape: bf16[64,128], index: 3, kind: input, shape index: {}]   ;;  %s3902_s4 = inlined_call_operand.hbm [shape: f32[6,128], index: 4, kind: input, shape index: {}]   ;;  %s3903_s5 = inlined_call_operand.hbm [shape: f32[32,128], index: 5, kind: output, shape index: {}]  }
   0x1   :  { %11 = vsyncpa [#allocation8], 0 }
   0x2   :  { %12 = vsyncpa [#allocation11], 0 }
   0x3   :  { %13 = vsyncpa [#allocation6], 0  ;;  %s3130_s18 = smov [#allocation7]  }
   0x4   :  { %s31_s19 = sshll.u32 %s3130_s18, 4  ;;  %s32_s19 = int_to_ptr.vmem [resolvable:$true] %s31_s19 }
   0x5   :  { %s3010_s20 = scalar_lea.vmem %s32_s19, 4608  ;;  %p3015_p1 = scmp.lt.s32.totalorder %s32_s19, %s32_s19 }
   0x6   :  { %p3011_p0 = scmp.ne.s32.totalorder %s32_s19, %s3010_s20  ;;  %p3016_p2 = scmp.lt.s32.totalorder %s3010_s20, %s3010_s20 }
   0x8   :  { %p3017_p3 = por %p3016_p2, %p3015_p1 }
   0xa   :  { %p3018_p4 = pnand %p3017_p3, %p3011_p0 }
   0xc   :  { %3021 = shalt.err (!%p3018_p4)
}
   0xd   :  { %s3131_s21 = smov 64   ;;  %s3132_s22 = smov 4  }
   0xe   :  { %37 = dma.hbm_to_vmem [thread:$0]  %s3899_s1, 4608, %s32_s19, [#allocation8], %s3131_s21, %s3131_s21, %s3132_s22  }
   0xf   :  { %s3133_s25 = smov [#allocation10]   ;;  %s3134_s27 = smov [#allocation4]  }
  0x10   :  { %s55_s26 = sshll.u32 %s3133_s25, 4  ;;  %s19_s28 = sshll.u32 %s3134_s27, 4  ;;  %s56_s26 = int_to_ptr.vmem [resolvable:$true] %s55_s26  ;;  %s20_s28 = int_to_ptr.vmem [resolvable:$true] %s19_s28 }
  0x11   :  { %s3030_s29 = scalar_lea.vmem %s56_s26, 512  ;;  %p3035_p6 = scmp.lt.s32.totalorder %s56_s26, %s56_s26 }
  0x12   :  { %p3031_p5 = scmp.ne.s32.totalorder %s56_s26, %s3030_s29  ;;  %p3036_p7 = scmp.lt.s32.totalorder %s3030_s29, %s3030_s29 }
  0x14   :  { %p3037_p8 = por %p3036_p7, %p3035_p6 }
  0x16   :  { %p3038_p9 = pnand %p3037_p8, %p3031_p5 }
  0x18   :  { %3041 = shalt.err (!%p3038_p9)
}
  0x19   :  { %61 = dma.hbm_to_vmem [thread:$0]  %s3901_s3, 512, %s56_s26, [#allocation11], %s3131_s21, %s3131_s21, %s3132_s22  }
  0x1a   :  { %s3050_s1 = scalar_lea.vmem %s20_s28, 512  ;;  %p3055_p11 = scmp.lt.s32.totalorder %s20_s28, %s20_s28 }
  0x1b   :  { %p3051_p10 = scmp.ne.s32.totalorder %s20_s28, %s3050_s1  ;;  %p3056_p12 = scmp.lt.s32.totalorder %s3050_s1, %s3050_s1 }
  0x1d   :  { %p3057_p13 = por %p3056_p12, %p3055_p11 }
  0x1f   :  { %p3058_p0 = pnand %p3057_p13, %p3051_p10 }
  0x21   :  { %3061 = shalt.err (!%p3058_p0)
}
  0x22   :  { %s3135_s7 = smov 128   ;;  %s3136_s8 = smov 8  }
  0x23   :  { %25 = dma.hbm_to_vmem [thread:$0]  %s3898_s0, 512, %s20_s28, [#allocation5], %s3135_s7, %s3135_s7, %s3136_s8  }
  0x24   :  { %s3137_s11 = smov [#allocation9]   ;;  %s3138_s3 = smov [#allocation12]  }
  0x25   :  { %s43_s12 = sshll.u32 %s3137_s11, 4  ;;  %s68_s13 = sshll.u32 %s3138_s3, 4  ;;  %s44_s12 = int_to_ptr.vmem [resolvable:$true] %s43_s12  ;;  %s69_s13 = int_to_ptr.vmem [resolvable:$true] %s68_s13 }
  0x26   :  { %s3070_s14 = scalar_lea.vmem %s44_s12, 9216  ;;  %p3075_p2 = scmp.lt.s32.totalorder %s44_s12, %s44_s12 }
  0x27   :  { %p3071_p1 = scmp.ne.s32.totalorder %s44_s12, %s3070_s14  ;;  %p3076_p3 = scmp.lt.s32.totalorder %s3070_s14, %s3070_s14 }
  0x29   :  { %p3077_p4 = por %p3076_p3, %p3075_p2 }
  0x2b   :  { %p3078_p5 = pnand %p3077_p4, %p3071_p1 }
  0x2d   :  { %3081 = shalt.err (!%p3078_p5)
}
  0x2e   :  { %49 = dma.hbm_to_vmem [thread:$0]  %s3900_s2, 9216, %s44_s12, [#allocation8], %s3131_s21, %s3131_s21, %s3132_s22  }
  0x2f   :  { %s3090_s0 = scalar_lea.vmem %s69_s13, 128  ;;  %p3095_p7 = scmp.lt.s32.totalorder %s69_s13, %s69_s13 }
  0x30   :  { %p3091_p6 = scmp.ne.s32.totalorder %s69_s13, %s3090_s0  ;;  %p3096_p8 = scmp.lt.s32.totalorder %s3090_s0, %s3090_s0 }
  0x32   :  { %p3097_p9 = por %p3096_p8, %p3095_p7 }
  0x34   :  { %p3098_p10 = pnand %p3097_p9, %p3091_p6 }
  0x36   :  { %3101 = shalt.err (!%p3098_p10)
}
  0x37   :  { %71 = dma.hbm_to_vmem [thread:$0]  %s3902_s4, 128, %s69_s13, [#allocation11]  }
  0x38   :  { %3122 = dma.done.wait [#allocation5], 512  }
  0x39   :  { %3123 = vsyncadd [#allocation5], 4294966784 }
  0x3a   :  { %3124 = dma.done.wait [#allocation8], 13824  }
  0x3b   :  { %3125 = vsyncadd [#allocation8], 4294953472 }
  0x3c   :  { %3126 = dma.done.wait [#allocation11], 640  }
  0x3d   :  { %3127 = vsyncadd [#allocation11], 4294966656  ;;  %v88_v0 = vlaneseq  ;;  %vm159_vm0 = vcmask 516096   ;;  %vm231_vm1 = vcmask 523744   ;;  %v3139_v2 = vmov 0.0   ;;  %v3246_v4 = vld [vmem:[#allocation4 + $0x8] sm:$0xff] }
  0x3e   :  { %232 = vst.msk [vmem:[#allocation2 + $0x8] sm:$0xff] %vm231_vm1, %v3139_v2  ;;  %233 = vst.msk [vmem:[#allocation2 + $0x30] sm:$0xff] %vm231_vm1, %v3139_v2  ;;  %vm154_vm2 = vcmask 31744   ;;  %vm211_vm3 = vcmask 1040896   ;;  %v3248_v5 = vld [vmem:[#allocation4] sm:$0xff]  ;;  %s3140_s2 = smov 68  }
  0x3f   :  { %v3215_v1 = vshrl.u32 %v88_v0, 7  ;;  %234 = vst.msk [vmem:[#allocation2 + $0x58] sm:$0xff] %vm231_vm1, %v3139_v2  ;;  %235 = vst.msk [vmem:[#allocation2 + $0x80] sm:$0xff] %vm231_vm1, %v3139_v2  ;;  %266 = vrot.lane.b32.xlu1 %v3246_v4, %s3140_s2  ;;  %264 = vrot.lane.b32.xlu0 %v3248_v5, %s3140_s2  ;;  %v174_v7 = vrot.slane %v3248_v5, 7  ;;  %v2877_v8 = vld [vmem:[#allocation7 + $0x78] sm:$0xff]   ;;  %v175_v9 = vrot.slane %v3246_v4, 7 }
  0x40   :  { %376 = vst.msk [vmem:[#allocation2 + $0x20] sm:$0xff] %vm231_vm1, %v3139_v2  ;;  %377 = vst.msk [vmem:[#allocation2 + $0x48] sm:$0xff] %vm231_vm1, %v3139_v2  ;;  %vm173_vm5 = vcmask 1040384   ;;  %2616 = vmatprep.subr.bf16.mxu0 %v2877_v8  ;;  %v3262_v11 = vld [vmem:[#allocation4 + $0x10] sm:$0xff]  ;;  %v2878_v13 = vld [vmem:[#allocation7 + $0x38] sm:$0xff]   ;;  %s3141_s4 = smov 124  }
  0x41   :  { %378 = vst.msk [vmem:[#allocation2 + $0x70] sm:$0xff] %vm231_vm1, %v3139_v2  ;;  %379 = vst.msk [vmem:[#allocation2 + $0x98] sm:$0xff] %vm231_vm1, %v3139_v2  ;;  %v97_v3 = vand.u32 15, %v3215_v1  ;;  %v90_v12 = vadd.s32 8, %v3215_v1  ;;  %v3267_v14 = vld [vmem:[#allocation4 + $0x18] sm:$0xff]  ;;  %v2879_v15 = vld [vmem:[#allocation7 + $0x70] sm:$0xff]   ;;  %v176_v16 = vsel %vm173_vm5, %v174_v7, %v175_v9  ;;  %2617 = vmatpush3.bf16.msra.mxu0 %v2878_v13 }
  0x42   :  { %1064 = vst [vmem:[#allocation3 + $0x8] sm:$0x1] %v3139_v2  ;;  %1182 = vst [vmem:[#allocation3 + $0x117] sm:$0x1] %v3139_v2  ;;  %v2880_v17 = vld [vmem:[#allocation7 + $0x30] sm:$0xff]   ;;  %2618 = vmatprep.subr.bf16.mxu0 %v2879_v15  ;;  %v2881_v18 = vld [vmem:[#allocation7 + $0x68] sm:$0xff]  }
  0x43   :  { %236 = vst.msk [vmem:[#allocation2 + $0x8] sm:$0x1] %vm159_vm0, %v3139_v2  ;;  %380 = vst.msk [vmem:[#allocation2 + $0x9f] sm:$0x1] %vm159_vm0, %v3139_v2  ;;  %vm3250_vm4 = vcmp.gt.s32.totalorder %v97_v3, 0  ;;  %237 = vrot.lane.b32.xlu0 %v174_v7, %s3141_s4  ;;  %v104_v19 = vand.u32 15, %v90_v12 }
  0x44   :  { %155 = vst.msk [vmem:[#allocation2] sm:$0xff] %vm154_vm2, %v3139_v2  ;;  %156 = vst.msk [vmem:[#allocation2 + $0x28] sm:$0xff] %vm154_vm2, %v3139_v2  ;;  %v185_v10 = vsel %vm3250_vm4, %v174_v7, 0.0  ;;  %v91_v20 = vadd.s32 16, %v3215_v1  ;;  %v177_v21 = vrot.slane %v3262_v11, 7  ;;  %v179_v22 = vrot.slane %v3267_v14, 7 }
  0x45   :  { %157 = vst.msk [vmem:[#allocation2 + $0x50] sm:$0xff] %vm154_vm2, %v3139_v2  ;;  %158 = vst.msk [vmem:[#allocation2 + $0x78] sm:$0xff] %vm154_vm2, %v3139_v2  ;;  %193 = vrot.lane.b32.xlu1 %v185_v10, %s3132_s22  ;;  %v323_v23 = vrot.slane %v3246_v4, 1  ;;  %2619 = vmatpush3.bf16.msra.mxu0 %v2880_v17  ;;  %v2882_v24 = vld [vmem:[#allocation7 + $0x28] sm:$0xff]   ;;  %v325_v25 = vrot.slane %v3262_v11, 1  ;;  %v2883_v26 = vld [vmem:[#allocation7 + $0x60] sm:$0xff]  }
  0x46   :  { %308 = vst.msk [vmem:[#allocation2 + $0x18] sm:$0xff] %vm154_vm2, %v3139_v2  ;;  %309 = vst.msk [vmem:[#allocation2 + $0x40] sm:$0xff] %vm154_vm2, %v3139_v2  ;;  %2620 = vmatprep.subr.bf16.mxu0 %v2881_v18  ;;  %vm321_vm6 = vcmask 1046528   ;;  %v111_v27 = vand.u32 15, %v91_v20  ;;  %v3280_v28 = vsel %vm173_vm5, %v177_v21, %v179_v22  ;;  %v178_v29 = vsel %vm173_vm5, %v175_v9, %v177_v21  ;;  %v2884_v31 = vld [vmem:[#allocation7 + $0x20] sm:$0xff]   ;;  %v2885_v34 = vld [vmem:[#allocation7 + $0x58] sm:$0xff]  }
  0x47   :  { %310 = vst.msk [vmem:[#allocation2 + $0x68] sm:$0xff] %vm154_vm2, %v3139_v2  ;;  %311 = vst.msk [vmem:[#allocation2 + $0x90] sm:$0xff] %vm154_vm2, %v3139_v2  ;;  %239 = vrot.lane.b32.xlu0 %v176_v16, %s3141_s4  ;;  %v322_v30 = vrot.slane %v3248_v5, 1  ;;  %vm3284_vm7 = vcmp.lt.s32.totalorder %v104_v19, 15  ;;  %v3291_v33 = vsel %vm321_vm6, %v323_v23, %v325_v25  ;;  %v2886_v35 = vld [vmem:[#allocation7 + $0x18] sm:$0xff]   ;;  %v2887_v40 = vld [vmem:[#allocation7 + $0x50] sm:$0xff]  }
  0x48   :  { %160 = vst.msk [vmem:[#allocation2] sm:$0x1] %vm159_vm0, %v3139_v2  ;;  %312 = vst.msk [vmem:[#allocation2 + $0x97] sm:$0x1] %vm159_vm0, %v3139_v2  ;;  %v334_v36 = vsel %vm3284_vm7, %v3291_v33, 0.0  ;;  %v2892_v38 = vld [vmem:[#allocation7 + $0xf8] sm:$0xff]  }
  0x49   :  { %212 = vst.msk [vmem:[#allocation2] sm:$0x1] %vm211_vm3, %v3139_v2  ;;  %358 = vst.msk [vmem:[#allocation2 + $0x97] sm:$0x1] %vm211_vm3, %v3139_v2  ;;  %195 = vrot.lane.b32.xlu1 %v176_v16, %s3132_s22  ;;  %2621 = vmatpush3.bf16.msra.mxu0 %v2882_v24  ;;  %v3300_v37 = vsel %vm321_vm6, %v322_v30, %v323_v23  ;;  %vm3302_vm8 = vcmp.gt.s32.totalorder %v111_v27, 0  ;;  %v2888_v41 = vld [vmem:[#allocation7 + $0x10] sm:$0xff]  }
  0x4a   :  { %2622 = vmatprep.subr.bf16.mxu0 %v2883_v26  ;;  %2644 = vmatprep.subr.bf16.mxu1 %v2892_v38  ;;  %v2894_v42 = vld [vmem:[#allocation7 + $0xb8] sm:$0xff]   ;;  %v2889_v43 = vld [vmem:[#allocation7 + $0x48] sm:$0xff]   ;;  %v2895_v44 = vld [vmem:[#allocation7 + $0xf0] sm:$0xff]   ;;  %v187_v45 = vsel %vm3302_vm8, %v178_v29, 0.0  ;;  %v92_v48 = vadd.s32 24, %v3215_v1  ;;  %vm281_vm9 = vcmask 523264  }
  0x4b   :  { %213 = vrot.lane.b32.xlu0 %v185_v10, %s3131_s21  ;;  %2645 = vmatpush3.bf16.msra.mxu1 %v2894_v42  ;;  %v2896_v46 = vld [vmem:[#allocation7 + $0xb0] sm:$0xff]   ;;  %v2897_v47 = vld [vmem:[#allocation7 + $0xe8] sm:$0xff]   ;;  %v2891_v50 = vld [vmem:[#allocation7 + $0x40] sm:$0xff]   ;;  %283 = vst.msk [vmem:[#allocation2 + $0x38] sm:$0xff] %vm281_vm9, %v3246_v4  ;;  %vm286_vm10 = vcmask 1048544   ;;  %v327_v59 = vrot.slane %v3267_v14, 1 }
  0x4c   :  { %2646 = vmatprep.subr.bf16.mxu1 %v2895_v44  ;;  %v2890_v49 = vld [vmem:[#allocation7 + $0x8] sm:$0xff]   ;;  %282 = vst.msk [vmem:[#allocation2 + $0x10] sm:$0xff] %vm281_vm9, %v3248_v5  ;;  %284 = vst.msk [vmem:[#allocation2 + $0x60] sm:$0xff] %vm281_vm9, %v3262_v11  ;;  %v2899_v52 = vld [vmem:[#allocation7 + $0xe0] sm:$0xff]   ;;  %v118_v53 = vand.u32 15, %v92_v48  ;;  %s3142_s19 = smov 60  }
  0x4d   :  { %215 = vrot.lane.b32.xlu1 %v176_v16, %s3131_s21  ;;  %2623 = vmatpush3.bf16.msra.mxu0 %v2884_v31  ;;  %v2898_v51 = vld [vmem:[#allocation7 + $0xa8] sm:$0xff]   ;;  %285 = vst.msk [vmem:[#allocation2 + $0x88] sm:$0xff] %vm281_vm9, %v3267_v14  ;;  %v2893_v54 = vld [vmem:[#allocation7] sm:$0xff]   ;;  %v2901_v56 = vld [vmem:[#allocation7 + $0xd8] sm:$0xff]   ;;  %v328_v8 = vsel %vm321_vm6, %v325_v25, %v327_v59  ;;  %vm205_vm12 = vcmask 523297   ;;  %vm253_vm13 = vcmask 490497  }
  0x4e   :  { %2624 = vmatprep.subr.bf16.mxu0 %v2885_v34  ;;  %288 = vst.msk [vmem:[#allocation2 + $0x38] sm:$0xff] %vm286_vm10, %v3139_v2  ;;  %287 = vst.msk [vmem:[#allocation2 + $0x10] sm:$0xff] %vm286_vm10, %v3139_v2  ;;  %v2900_v55 = vld [vmem:[#allocation7 + $0xa0] sm:$0xff]   ;;  %vm3334_vm11 = vcmp.lt.s32.totalorder %v118_v53, 15  ;;  %v2902_v58 = vld [vmem:[#allocation7 + $0x98] sm:$0xff]   ;;  %vm259_vm14 = vcmask 556544  }
  0x4f   :  { %241 = vrot.lane.b32.xlu0 %v178_v29, %s3141_s4  ;;  %2647 = vmatpush3.bf16.msra.mxu1 %v2896_v46  ;;  %289 = vst.msk [vmem:[#allocation2 + $0x60] sm:$0xff] %vm286_vm10, %v3139_v2  ;;  %290 = vst.msk [vmem:[#allocation2 + $0x88] sm:$0xff] %vm286_vm10, %v3139_v2  ;;  %v2903_v60 = vld [vmem:[#allocation7 + $0xd0] sm:$0xff]   ;;  %v2905_v62 = vld [vmem:[#allocation7 + $0xc8] sm:$0xff]   ;;  %v336_v63 = vsel %vm3334_vm11, %v327_v59, 0.0  ;;  %vm276_vm15 = vcmask 1048096  }
  0x50   :  { %2648 = vmatprep.subr.bf16.mxu1 %v2897_v47  ;;  %v2904_v61 = vld [vmem:[#allocation7 + $0x90] sm:$0xff]   ;;  %v2906_v0 = vld [vmem:[#allocation7 + $0x88] sm:$0xff]   ;;  %v3344_v3 = vld [vmem:[#allocation7 + $0x118] sm:$0xff]   ;;  %vm207_vm0 = vcmask 523296   ;;  %vm255_vm1 = vcmask 490496   ;;  %vm227_vm2 = vcmask 1048064  }
  0x51   :  { %243 = vrot.lane.b32.xlu1 %v3280_v28, %s3141_s4  ;;  %2625 = vmatpush3.bf16.msra.mxu0 %v2886_v35  ;;  %v2907_v7 = vld [vmem:[#allocation7 + $0xc0] sm:$0xff]   ;;  %vm225_vm3 = vcmask 1048065   ;;  %vm303_vm10 = vcmask 1015296   ;;  %s3143_s20 = smov 16   ;;  %s3145_s23 = smov 32  }
  0x52   :  { %2626 = vmatprep.subr.bf16.mxu0 %v2887_v40  ;;  %v2908_v9 = vld [vmem:[#allocation7 + $0x80] sm:$0xff]   ;;  %s3146_s24 = smov 40   ;;  %s3147_s25 = smov 48  }
  0x53   :  { %341 = vrot.lane.b32.xlu0 %v3300_v37, %s3132_s22  ;;  %2649 = vmatpush3.bf16.msra.mxu1 %v2898_v51  ;;  %v2912_v40 = vld [vmem:[#allocation7 + $0x100] sm:$0xff]   ;;  %s3148_s26 = smov 56   ;;  %s3149_s27 = smov 72  }
  0x54   :  { %2650 = vmatprep.subr.bf16.mxu1 %v2899_v52  ;;  %s3150_s28 = smov 80   ;;  %s3151_s29 = smov 88  }
  0x55   :  { %343 = vrot.lane.b32.xlu1 %v334_v36, %s3132_s22  ;;  %2627 = vmatpush3.bf16.msra.mxu0 %v2888_v41  ;;  %s3152_s30 = smov 96   ;;  %s3153_s6 = smov 104  }
  0x56   :  { %2628 = vmatprep.subr.bf16.mxu0 %v2889_v43  ;;  %s3154_s1 = smov 112   ;;  %s3155_s9 = smov 120  }
  0x57   :  { %197 = vrot.lane.b32.xlu0 %v187_v45, %s3132_s22  ;;  %2651 = vmatpush3.bf16.msra.mxu1 %v2900_v55 }
  0x58   :  { %2652 = vmatprep.subr.bf16.mxu1 %v2901_v56 }
  0x59   :  { %199 = vrot.lane.b32.xlu1 %v3280_v28, %s3132_s22  ;;  %2629 = vmatpush3.bf16.msra.mxu0 %v2890_v49 }
  0x5a   :  { %2630 = vmatprep.subr.bf16.mxu0 %v2891_v50 }
  0x5b   :  { %268 = vrot.lane.b32.xlu0 %v3262_v11, %s3140_s2  ;;  %2653 = vmatpush3.bf16.msra.mxu1 %v2902_v58 }
  0x5c   :  { %2654 = vmatprep.subr.bf16.mxu1 %v2903_v60 }
  0x5d   :  { %270 = vrot.lane.b32.xlu1 %v3267_v14, %s3140_s2  ;;  %2631 = vmatpush3.bf16.msra.mxu0 %v2893_v54 }
  0x5e   :  { %2806 = vmatprep.subr.bf16.mxu0 %v3344_v3 }
  0x5f   :  { %359 = vrot.lane.b32.xlu0 %v3300_v37, %s3131_s21  ;;  %2655 = vmatpush3.bf16.msra.mxu1 %v2904_v61 }
  0x60   :  { %2656 = vmatprep.subr.bf16.mxu1 %v2905_v62 }
  0x61   :  { %361 = vrot.lane.b32.xlu1 %v334_v36, %s3131_s21  ;;  %v2911_v36 = vld [vmem:[#allocation7 + $0x108] sm:$0xff]  }
  0x63   :  { %217 = vrot.lane.b32.xlu0 %v187_v45, %s3131_s21  ;;  %2657 = vmatpush3.bf16.msra.mxu1 %v2906_v0 }
  0x64   :  { %2658 = vmatprep.subr.bf16.mxu1 %v2907_v7 }
  0x65   :  { %219 = vrot.lane.b32.xlu1 %v3280_v28, %s3131_s21 }
  0x67   :  { %291 = vrot.lane.b32.xlu0 %v3248_v5, %s3142_s19  ;;  %2659 = vmatpush3.bf16.msra.mxu1 %v2908_v9 }
  0x69   :  { %293 = vrot.lane.b32.xlu1 %v3246_v4, %s3142_s19 }
  0x6b   :  { %345 = vrot.lane.b32.xlu0 %v328_v8, %s3132_s22 }
  0x6d   :  { %347 = vrot.lane.b32.xlu1 %v336_v63, %s3132_s22  ;;  %s3144_s22 = smov 24  }
  0x6f   :  { %383 = vrot.lane.b32.xlu0 %v3291_v33, %s3141_s4  ;;  %v2910_v33 = vld [vmem:[#allocation7 + $0x110] sm:$0xff]  }
  0x71   :  { %363 = vrot.lane.b32.xlu1 %v328_v8, %s3131_s21 }
  0x73   :  { %365 = vrot.lane.b32.xlu0 %v336_v63, %s3131_s21 }
  0x75   :  { %381 = vrot.lane.b32.xlu1 %v3300_v37, %s3141_s4 }
  0x77   :  { %387 = vrot.lane.b32.xlu0 %v327_v59, %s3141_s4 }
  0x79   :  { %295 = vrot.lane.b32.xlu1 %v3262_v11, %s3142_s19 }
  0x7b   :  { %297 = vrot.lane.b32.xlu0 %v3267_v14, %s3142_s19 }
  0x7d   :  { %385 = vrot.lane.b32.xlu1 %v328_v8, %s3141_s4 }
  0xb1   :  { %v267_v10 = vpop.permute.xlu1 %266  ;;  %v265_v12 = vpop.permute.xlu0 %264 }
  0xb5   :  { %v238_v13 = vpop.permute.xlu0 %237 }
  0xb6   :  { %v249_v16 = vsel %vm3250_vm4, %v238_v13, 0.0 }
  0xb7   :  { %v194_v15 = vpop.permute.xlu1 %193  ;;  %254 = vst.msk [vmem:[#allocation2 + $0x8] sm:$0xfe] %vm253_vm13, %v249_v16  ;;  %vm374_vm13 = vcmask 1047040  }
  0xb8   :  { %206 = vst.msk [vmem:[#allocation2] sm:$0xfe] %vm205_vm12, %v194_v15  ;;  %vm356_vm12 = vcmask 522272  }
  0xb9   :  { %260 = vst.msk [vmem:[#allocation2 + $0x8] sm:$0xff] %vm259_vm14, %v3139_v2  ;;  %v240_v18 = vpop.permute.xlu0 %239 }
  0xba   :  { %277 = vst.msk [vmem:[#allocation2 + $0x8] sm:$0xff] %vm276_vm15, %v265_v12 }
  0xbb   :  { %v196_v17 = vpop.permute.xlu1 %195  ;;  %256 = vst.msk [vmem:[#allocation2 + $0x30] sm:$0xff] %vm255_vm1, %v240_v18 }
  0xbc   :  { %208 = vst.msk [vmem:[#allocation2 + $0x28] sm:$0xff] %vm207_vm0, %v196_v17 }
  0xbd   :  { %261 = vst.msk [vmem:[#allocation2 + $0x30] sm:$0xff] %vm259_vm14, %v3139_v2  ;;  %v214_v20 = vpop.permute.xlu0 %213 }
  0xbe   :  { %278 = vst.msk [vmem:[#allocation2 + $0x30] sm:$0xff] %vm276_vm15, %v267_v10 }
  0xbf   :  { %v216_v19 = vpop.permute.xlu1 %215  ;;  %226 = vst.msk [vmem:[#allocation2] sm:$0xfe] %vm225_vm3, %v214_v20 }
  0xc0   :  { %228 = vst.msk [vmem:[#allocation2 + $0x28] sm:$0xff] %vm227_vm2, %v216_v19 }
  0xc1   :  { %v242_v22 = vpop.permute.xlu0 %241  ;;  %v403_v24 = vld [vmem:[#allocation2 + $0x8] sm:$0xff] }
  0xc2   :  { %v251_v23 = vsel %vm3302_vm8, %v242_v22, 0.0 }
  0xc3   :  { %v244_v21 = vpop.permute.xlu1 %243  ;;  %257 = vst.msk [vmem:[#allocation2 + $0x58] sm:$0xff] %vm255_vm1, %v251_v23 }
  0xc4   :  { %258 = vst.msk [vmem:[#allocation2 + $0x80] sm:$0xff] %vm255_vm1, %v244_v21 }
  0xc5   :  { %263 = vst.msk [vmem:[#allocation2 + $0x80] sm:$0xff] %vm259_vm14, %v3139_v2  ;;  %v408_v25 = vld [vmem:[#allocation2 + $0x30] sm:$0xff]  ;;  %262 = vst.msk [vmem:[#allocation2 + $0x58] sm:$0xff] %vm259_vm14, %v3139_v2  ;;  %v342_v28 = vpop.permute.xlu0 %341  ;;  %vm400_vm14 = vcmask 489472  }
  0xc6   :  { %v423_v26 = vpack.c.bf16 %v408_v25, %v403_v24  ;;  %v402_v29 = vld [vmem:[#allocation2] sm:$0xff]  ;;  %353 = vst.msk [vmem:[#allocation2 + $0x18] sm:$0xff] %vm207_vm0, %v342_v28 }
  0xc7   :  { %v344_v27 = vpop.permute.xlu1 %343  ;;  %v407_v30 = vld [vmem:[#allocation2 + $0x28] sm:$0xff] }
  0xc8   :  { %354 = vst.msk [vmem:[#allocation2 + $0x40] sm:$0xff] %vm207_vm0, %v344_v27  ;;  %758 = vmatprep.mubr.bf16.mxu0 %v423_v26  ;;  %v422_v31 = vpack.c.bf16 %v407_v30, %v402_v29 }
  0xc9   :  { %v198_v35 = vpop.permute.xlu0 %197 }
  0xca   :  { %759 = vmatmul.mubr.bf16.vlgmr.msra.gmra.mxu0 %v422_v31  ;;  %209 = vst.msk [vmem:[#allocation2 + $0x50] sm:$0xff] %vm207_vm0, %v198_v35 }
  0xcb   :  { %v200_v34 = vpop.permute.xlu1 %199  ;;  %2807 = vmatpush3.bf16.msra.mxu0 %v3344_v3 }
  0xcc   :  { %210 = vst.msk [vmem:[#allocation2 + $0x78] sm:$0xff] %vm207_vm0, %v200_v34  ;;  %2808 = vmatprep.subr.bf16.mxu0 %v2910_v33 }
  0xcd   :  { %v269_v38 = vpop.permute.xlu0 %268 }
  0xce   :  { %279 = vst.msk [vmem:[#allocation2 + $0x58] sm:$0xff] %vm276_vm15, %v269_v38 }
  0xcf   :  { %v271_v37 = vpop.permute.xlu1 %270  ;;  %2809 = vmatpush3.bf16.msra.mxu0 %v2910_v33 }
  0xd0   :  { %280 = vst.msk [vmem:[#allocation2 + $0x80] sm:$0xff] %vm276_vm15, %v271_v37  ;;  %2810 = vmatprep.subr.bf16.mxu0 %v2911_v36  ;;  %vm1017_vm15 = vcmask 64512  }
  0xd1   :  { %v360_v42 = vpop.permute.xlu0 %359  ;;  %1018 = vst.msk [vmem:[#allocation3] sm:$0xff] %vm1017_vm15, %v3139_v2  ;;  %1019 = vst.msk [vmem:[#allocation3 + $0x48] sm:$0xff] %vm1017_vm15, %v3139_v2 }
  0xd2   :  { %371 = vst.msk [vmem:[#allocation2 + $0x18] sm:$0xff] %vm227_vm2, %v360_v42  ;;  %1022 = vst [vmem:[#allocation3] sm:$0x1] %v3139_v2 }
  0xd3   :  { %v362_v41 = vpop.permute.xlu1 %361  ;;  %2811 = vmatpush3.bf16.msra.mxu0 %v2911_v36  ;;  %1020 = vst.msk [vmem:[#allocation3 + $0x90] sm:$0xff] %vm1017_vm15, %v3139_v2  ;;  %1021 = vst.msk [vmem:[#allocation3 + $0xd8] sm:$0xff] %vm1017_vm15, %v3139_v2 }
  0xd4   :  { %372 = vst.msk [vmem:[#allocation2 + $0x40] sm:$0xff] %vm227_vm2, %v362_v41  ;;  %2812 = vmatprep.subr.bf16.mxu0 %v2912_v40 }
  0xd5   :  { %v218_v44 = vpop.permute.xlu0 %217  ;;  %v413_v45 = vld [vmem:[#allocation2 + $0x58] sm:$0xff]  ;;  %1097 = vst.msk [vmem:[#allocation3 + $0x18] sm:$0xff] %vm1017_vm15, %v3139_v2  ;;  %1098 = vst.msk [vmem:[#allocation3 + $0x60] sm:$0xff] %vm1017_vm15, %v3139_v2 }
  0xd6   :  { %229 = vst.msk [vmem:[#allocation2 + $0x50] sm:$0xff] %vm227_vm2, %v218_v44 }
  0xd7   :  { %v220_v43 = vpop.permute.xlu1 %219  ;;  %v418_v46 = vld [vmem:[#allocation2 + $0x80] sm:$0xff]  ;;  %2813 = vmatpush3.bf16.msra.mxu0 %v2912_v40  ;;  %1099 = vst.msk [vmem:[#allocation3 + $0xa8] sm:$0xff] %vm1017_vm15, %v3139_v2  ;;  %1100 = vst.msk [vmem:[#allocation3 + $0xf0] sm:$0xff] %vm1017_vm15, %v3139_v2 }
  0xd8   :  { %230 = vst.msk [vmem:[#allocation2 + $0x78] sm:$0xff] %vm227_vm2, %v220_v43  ;;  %v428_v47 = vpack.c.bf16 %v418_v46, %v413_v45 }
  0xd9   :  { %v292_v49 = vpop.permute.xlu0 %291  ;;  %v405_v50 = vld [vmem:[#allocation2 + $0x18] sm:$0xff]  ;;  %1141 = vst.msk [vmem:[#allocation3 + $0x30] sm:$0xff] %vm1017_vm15, %v3139_v2  ;;  %1142 = vst.msk [vmem:[#allocation3 + $0x78] sm:$0xff] %vm1017_vm15, %v3139_v2 }
  0xda   :  { %766 = vmatprep.mubr.bf16.mxu0 %v428_v47  ;;  %304 = vst.msk [vmem:[#allocation2 + $0x10] sm:$0xff] %vm303_vm10, %v292_v49 }
  0xdb   :  { %v294_v48 = vpop.permute.xlu1 %293  ;;  %v410_v51 = vld [vmem:[#allocation2 + $0x40] sm:$0xff]  ;;  %1143 = vst.msk [vmem:[#allocation3 + $0xc0] sm:$0xff] %vm1017_vm15, %v3139_v2  ;;  %1144 = vst.msk [vmem:[#allocation3 + $0x108] sm:$0xff] %vm1017_vm15, %v3139_v2 }
  0xdc   :  { %305 = vst.msk [vmem:[#allocation2 + $0x38] sm:$0xff] %vm303_vm10, %v294_v48  ;;  %v425_v52 = vpack.c.bf16 %v410_v51, %v405_v50  ;;  %1145 = vst [vmem:[#allocation3 + $0x10f] sm:$0x1] %v3139_v2 }
  0xdd   :  { %v346_v54 = vpop.permute.xlu0 %345  ;;  %v412_v55 = vld [vmem:[#allocation2 + $0x50] sm:$0xff] }
  0xde   :  { %807 = vmatprep.mubr.bf16.mxu1 %v425_v52  ;;  %355 = vst.msk [vmem:[#allocation2 + $0x68] sm:$0xff] %vm207_vm0, %v346_v54  ;;  %vm1069_vm0 = vcmask 1048512  }
  0xdf   :  { %v348_v53 = vpop.permute.xlu1 %347  ;;  %v417_v56 = vld [vmem:[#allocation2 + $0x78] sm:$0xff]  ;;  %1070 = vst.msk [vmem:[#allocation3 + $0x10] sm:$0xff] %vm1069_vm0, %v3139_v2  ;;  %1071 = vst.msk [vmem:[#allocation3 + $0x58] sm:$0xff] %vm1069_vm0, %v3139_v2 }
  0xe0   :  { %357 = vst.msk [vmem:[#allocation2 + $0x90] sm:$0x7f] %vm356_vm12, %v348_v53  ;;  %v427_v58 = vpack.c.bf16 %v417_v56, %v412_v55  ;;  %1074 = vst [vmem:[#allocation3 + $0x10] sm:$0x1] %v3139_v2  ;;  %vm1211_vm12 = vcmask 980992  }
  0xe1   :  { %v384_v60 = vpop.permute.xlu0 %383  ;;  %v404_v61 = vld [vmem:[#allocation2 + $0x10] sm:$0xff]  ;;  %1072 = vst.msk [vmem:[#allocation3 + $0xa0] sm:$0xff] %vm1069_vm0, %v3139_v2  ;;  %1073 = vst.msk [vmem:[#allocation3 + $0xe8] sm:$0xff] %vm1069_vm0, %v3139_v2 }
  0xe2   :  { %767 = vmatmul.mubr.bf16.gmra.mxu0 %v427_v58  ;;  %v394_v63 = vsel %vm3284_vm7, %v384_v60, 0.0  ;;  %1121 = vst.msk [vmem:[#allocation3 + $0x28] sm:$0xff] %vm1069_vm0, %v3139_v2  ;;  %1122 = vst.msk [vmem:[#allocation3 + $0x70] sm:$0xff] %vm1069_vm0, %v3139_v2 }
  0xe3   :  { %v364_v59 = vpop.permute.xlu1 %363  ;;  %v409_v62 = vld [vmem:[#allocation2 + $0x38] sm:$0xff]  ;;  %398 = vst.msk [vmem:[#allocation2 + $0x48] sm:$0xff] %vm255_vm1, %v394_v63 }
  0xe4   :  { %373 = vst.msk [vmem:[#allocation2 + $0x68] sm:$0xff] %vm227_vm2, %v364_v59  ;;  %v424_v0 = vpack.c.bf16 %v409_v62, %v404_v61  ;;  %vm1093_vm2 = vcmask 982016  }
  0xe5   :  { %v366_v7 = vpop.permute.xlu0 %365  ;;  %1123 = vst.msk [vmem:[#allocation3 + $0xb8] sm:$0xff] %vm1069_vm0, %v3139_v2  ;;  %1124 = vst.msk [vmem:[#allocation3 + $0x100] sm:$0xff] %vm1069_vm0, %v3139_v2 }
  0xe6   :  { %808 = vmatmul.mubr.bf16.vlgmr.msra.gmra.mxu1 %v424_v0  ;;  %375 = vst.msk [vmem:[#allocation2 + $0x90] sm:$0x7f] %vm374_vm13, %v366_v7 }
  0xe7   :  { %v382_v3 = vpop.permute.xlu1 %381  ;;  %1187 = vst.msk [vmem:[#allocation3 + $0x40] sm:$0xff] %vm1069_vm0, %v3139_v2  ;;  %1188 = vst.msk [vmem:[#allocation3 + $0x88] sm:$0xff] %vm1069_vm0, %v3139_v2 }
  0xe8   :  { %397 = vst.msk [vmem:[#allocation2 + $0x20] sm:$0xff] %vm255_vm1, %v382_v3 }
  0xe9   :  { %v388_v9 = vpop.permute.xlu0 %387  ;;  %1189 = vst.msk [vmem:[#allocation3 + $0xd0] sm:$0xff] %vm1069_vm0, %v3139_v2  ;;  %1190 = vst.msk [vmem:[#allocation3 + $0x118] sm:$0xff] %vm1069_vm0, %v3139_v2 }
  0xea   :  { %v396_v10 = vsel %vm3334_vm11, %v388_v9, 0.0  ;;  %v411_v18 = vld [vmem:[#allocation2 + $0x48] sm:$0xff]  ;;  %1191 = vst [vmem:[#allocation3 + $0x11f] sm:$0x1] %v3139_v2 }
  0xeb   :  { %v296_v8 = vpop.permute.xlu1 %295  ;;  %401 = vst.msk [vmem:[#allocation2 + $0x98] sm:$0x7f] %vm400_vm14, %v396_v10  ;;  %v415_v12 = vld [vmem:[#allocation2 + $0x68] sm:$0xff] }
  0xec   :  { %306 = vst.msk [vmem:[#allocation2 + $0x60] sm:$0xff] %vm303_vm10, %v296_v8 }
  0xed   :  { %v298_v15 = vpop.permute.xlu0 %297  ;;  %v420_v16 = vld [vmem:[#allocation2 + $0x90] sm:$0xff] }
  0xee   :  { %307 = vst.msk [vmem:[#allocation2 + $0x88] sm:$0xff] %vm303_vm10, %v298_v15  ;;  %v430_v19 = vpack.c.bf16 %v420_v16, %v415_v12 }
  0xef   :  { %v386_v13 = vpop.permute.xlu1 %385  ;;  %v406_v17 = vld [vmem:[#allocation2 + $0x20] sm:$0xff] }
  0xf0   :  { %399 = vst.msk [vmem:[#allocation2 + $0x70] sm:$0xff] %vm255_vm1, %v386_v13  ;;  %v426_v20 = vpack.c.bf16 %v411_v18, %v406_v17  ;;  %815 = vmatprep.mubr.bf16.mxu1 %v430_v19  ;;  %vm1091_vm1 = vcmask 982017  }
  0xf2   :  { %2814 = vmatprep.mubr.msk.bf16.mxu0 %vm281_vm9, %v426_v20  ;;  %v421_v24 = vld [vmem:[#allocation2 + $0x98] sm:$0xff] }
  0xf3   :  { %v414_v21 = vld [vmem:[#allocation2 + $0x60] sm:$0xff] }
  0xf5   :  { %v419_v22 = vld [vmem:[#allocation2 + $0x88] sm:$0xff] }
  0xf6   :  { %v429_v25 = vpack.c.bf16 %v419_v22, %v414_v21 }
  0xf7   :  { %v416_v23 = vld [vmem:[#allocation2 + $0x70] sm:$0xff] }
  0xf8   :  { %v431_v26 = vpack.c.bf16 %v421_v24, %v416_v23  ;;  %816 = vmatmul.mubr.bf16.gmra.mxu1 %v429_v25 }
  0xfa   :  { %2815 = vmatmul.mubr.msk.bf16.vlgmr.msra.gmra.mxu0 %vm281_vm9, %v431_v26 }
 0x18a   :  { %v2632_v27 = vpop.f32.mrf.mxu0 }
 0x18c   :  { %v2633_v28 = vpop.f32.mrf.mxu0 }
 0x18d   :  { %v2634_v44 = vadd.f32 %v2633_v28, %v2632_v27 }
 0x18e   :  { %v2635_v29 = vpop.f32.mrf.mxu0 }
 0x190   :  { %v2636_v30 = vpop.f32.mrf.mxu0 }
 0x191   :  { %v2637_v48 = vadd.f32 %v2636_v30, %v2635_v29 }
 0x1a2   :  { %v2638_v31 = vpop.f32.mrf.mxu0 }
 0x1a4   :  { %v2639_v34 = vpop.f32.mrf.mxu0 }
 0x1a5   :  { %v2640_v49 = vadd.f32 %v2639_v34, %v2638_v31 }
 0x1a6   :  { %v2660_v33 = vpop.f32.mrf.mxu1  ;;  %v2641_v36 = vpop.f32.mrf.mxu0 }
 0x1a8   :  { %v2661_v35 = vpop.f32.mrf.mxu1  ;;  %v2642_v38 = vpop.f32.mrf.mxu0 }
 0x1a9   :  { %v2662_v41 = vadd.f32 %v2661_v35, %v2660_v33  ;;  %v2643_v60 = vadd.f32 %v2642_v38, %v2641_v36 }
 0x1aa   :  { %v2663_v37 = vpop.f32.mrf.mxu1 }
 0x1ab   :  { %v810_v51 = vadd.f32 %v2662_v41, %v2634_v44  ;;  %v2913_v41 = vld [vmem:[#allocation9 + $0x78] sm:$0xff]  }
 0x1ac   :  { %v2664_v40 = vpop.f32.mrf.mxu1  ;;  %2678 = vmatprep.subr.bf16.mxu1 %v2913_v41 }
 0x1ad   :  { %v2665_v45 = vadd.f32 %v2664_v40, %v2663_v37 }
 0x1af   :  { %v813_v56 = vadd.f32 %v2665_v45, %v2637_v48  ;;  %v2916_v48 = vld [vmem:[#allocation9 + $0x30] sm:$0xff]  }
 0x1b8   :  { %v2666_v42 = vpop.f32.mrf.mxu1 }
 0x1ba   :  { %v2816_v43 = vpop.f32.mrf.mxu0  ;;  %v2667_v46 = vpop.f32.mrf.mxu1 }
 0x1bb   :  { %v2668_v50 = vadd.f32 %v2667_v46, %v2666_v42  ;;  %v2914_v42 = vld [vmem:[#allocation9 + $0x38] sm:$0xff]  }
 0x1bc   :  { %v858_v47 = vpop.f32.mrf.mxu0  ;;  %v2669_v52 = vpop.f32.mrf.mxu1  ;;  %v2919_v46 = vld [vmem:[#allocation9 + $0xf8] sm:$0xff]   ;;  %2679 = vmatpush3.bf16.msra.mxu1 %v2914_v42 }
 0x1bd   :  { %v818_v54 = vadd.f32 %v2668_v50, %v2640_v49  ;;  %v3409_v55 = vadd.f32 %v858_v47, %v810_v51  ;;  %v2920_v47 = vld [vmem:[#allocation9 + $0xb8] sm:$0xff]   ;;  %v2923_v49 = vld [vmem:[#allocation9 + $0xf0] sm:$0xff]   ;;  %v2917_v50 = vld [vmem:[#allocation9 + $0x68] sm:$0xff]   ;;  %2706 = vmatprep.subr.bf16.mxu0 %v2919_v46 }
 0x1be   :  { %v2817_v53 = vpop.f32.mrf.mxu0  ;;  %v2670_v58 = vpop.f32.mrf.mxu1  ;;  %2707 = vmatpush3.bf16.msra.mxu0 %v2920_v47  ;;  %v2924_v51 = vld [vmem:[#allocation9 + $0xb0] sm:$0xff]  }
 0x1bf   :  { %v3411_v61 = vadd.f32 %v2816_v43, %v818_v54  ;;  %v2671_v62 = vadd.f32 %v2670_v58, %v2669_v52  ;;  %v882_v0 = vmul.f32 %v3409_v55, %v3409_v55  ;;  %v2915_v43 = vld [vmem:[#allocation9 + $0x70] sm:$0xff]   ;;  %2708 = vmatprep.subr.bf16.mxu0 %v2923_v49  ;;  %v2927_v54 = vld [vmem:[#allocation9 + $0xe8] sm:$0xff]  }
 0x1c0   :  { %v861_v59 = vpop.f32.mrf.mxu0  ;;  %2680 = vmatprep.subr.bf16.mxu1 %v2915_v43  ;;  %v2918_v58 = vld [vmem:[#allocation9 + $0x28] sm:$0xff]  }
 0x1c1   :  { %v3413_v63 = vadd.f32 %v861_v59, %v813_v56  ;;  %v821_v3 = vadd.f32 %v2671_v62, %v2643_v60  ;;  %v884_v9 = vmul.f32 %v3411_v61, %v3411_v61  ;;  %2681 = vmatpush3.bf16.msra.mxu1 %v2916_v48  ;;  %v2921_v59 = vld [vmem:[#allocation9 + $0x60] sm:$0xff]   ;;  %v2928_v60 = vld [vmem:[#allocation9 + $0xa8] sm:$0xff]  }
 0x1c2   :  { %2682 = vmatprep.subr.bf16.mxu1 %v2917_v50  ;;  %2709 = vmatpush3.bf16.msra.mxu0 %v2924_v51 }
 0x1c3   :  { %v873_v7 = vadd.f32 %v3413_v63, %v3409_v55  ;;  %v883_v8 = vmul.f32 %v3413_v63, %v3413_v63  ;;  %v3423_v10 = vadd.f32 %v2817_v53, %v821_v3  ;;  %2710 = vmatprep.subr.bf16.mxu0 %v2927_v54  ;;  %v2931_v3 = vld [vmem:[#allocation9 + $0xe0] sm:$0xff]  }
 0x1c5   :  { %v874_v12 = vadd.f32 %v873_v7, %v3411_v61  ;;  %v886_v13 = vadd.f32 %v883_v8, %v882_v0  ;;  %v885_v15 = vmul.f32 %v3423_v10, %v3423_v10  ;;  %2683 = vmatpush3.bf16.msra.mxu1 %v2918_v58  ;;  %v2922_v8 = vld [vmem:[#allocation9 + $0x20] sm:$0xff]  }
 0x1c6   :  { %2684 = vmatprep.subr.bf16.mxu1 %v2921_v59  ;;  %2711 = vmatpush3.bf16.msra.mxu0 %v2928_v60 }
 0x1c7   :  { %v875_v16 = vadd.f32 %v874_v12, %v3423_v10  ;;  %v887_v17 = vadd.f32 %v886_v13, %v884_v9  ;;  %v2925_v9 = vld [vmem:[#allocation9 + $0x58] sm:$0xff]   ;;  %v2932_v12 = vld [vmem:[#allocation9 + $0xa0] sm:$0xff]   ;;  %2712 = vmatprep.subr.bf16.mxu0 %v2931_v3 }
 0x1c9   :  { %v876_v18 = vrot.slane %v875_v16, 4  ;;  %v888_v19 = vadd.f32 %v887_v17, %v885_v15  ;;  %2685 = vmatpush3.bf16.msra.mxu1 %v2922_v8  ;;  %v2926_v17 = vld [vmem:[#allocation9 + $0x18] sm:$0xff]  }
 0x1ca   :  { %2686 = vmatprep.subr.bf16.mxu1 %v2925_v9  ;;  %2713 = vmatpush3.bf16.msra.mxu0 %v2932_v12 }
 0x1cb   :  { %v877_v20 = vadd.f32 %v876_v18, %v875_v16  ;;  %v889_v21 = vrot.slane %v888_v19, 4  ;;  %v2929_v18 = vld [vmem:[#allocation9 + $0x50] sm:$0xff]  }
 0x1cd   :  { %v878_v22 = vrot.slane %v877_v20, 2  ;;  %v890_v23 = vadd.f32 %v889_v21, %v888_v19  ;;  %2687 = vmatpush3.bf16.msra.mxu1 %v2926_v17 }
 0x1ce   :  { %2688 = vmatprep.subr.bf16.mxu1 %v2929_v18  ;;  %v999_v18 = vsub.s32 0, %v3215_v1 }
 0x1cf   :  { %v879_v24 = vadd.f32 %v878_v22, %v877_v20  ;;  %v891_v25 = vrot.slane %v890_v23, 2 }
 0x1d1   :  { %v880_v26 = vrot.slane %v879_v24, 1  ;;  %v892_v27 = vadd.f32 %v891_v25, %v890_v23  ;;  %v2930_v25 = vld [vmem:[#allocation9 + $0x10] sm:$0xff]  }
 0x1d2   :  { %2689 = vmatpush3.bf16.msra.mxu1 %v2930_v25  ;;  %v2934_v25 = vld [vmem:[#allocation9 + $0x8] sm:$0xff]  }
 0x1d3   :  { %v3429_v28 = vadd.f32 %v880_v26, %v879_v24  ;;  %v893_v29 = vrot.slane %v892_v27, 1 }
 0x1d5   :  { %898 = vrot.lane.b32.xlu1 %v3429_v28, %s3143_s20  ;;  %895 = vrot.lane.b32.xlu0 %v3429_v28, %s3136_s8  ;;  %v3435_v30 = vadd.f32 %v893_v29, %v892_v27 }
 0x1d9   :  { %901 = vrot.lane.b32.xlu1 %v3429_v28, %s3144_s22  ;;  %941 = vrot.lane.b32.xlu0 %v3435_v30, %s3136_s8 }
 0x1dd   :  { %904 = vrot.lane.b32.xlu1 %v3429_v28, %s3145_s23  ;;  %944 = vrot.lane.b32.xlu0 %v3435_v30, %s3143_s20 }
 0x1e1   :  { %907 = vrot.lane.b32.xlu1 %v3429_v28, %s3146_s24  ;;  %947 = vrot.lane.b32.xlu0 %v3435_v30, %s3144_s22 }
 0x1e5   :  { %910 = vrot.lane.b32.xlu1 %v3429_v28, %s3147_s25  ;;  %950 = vrot.lane.b32.xlu0 %v3435_v30, %s3145_s23 }
 0x1e9   :  { %913 = vrot.lane.b32.xlu1 %v3429_v28, %s3148_s26  ;;  %953 = vrot.lane.b32.xlu0 %v3435_v30, %s3146_s24 }
 0x1ed   :  { %916 = vrot.lane.b32.xlu1 %v3429_v28, %s3131_s21  ;;  %956 = vrot.lane.b32.xlu0 %v3435_v30, %s3147_s25 }
 0x1f1   :  { %919 = vrot.lane.b32.xlu1 %v3429_v28, %s3149_s27  ;;  %959 = vrot.lane.b32.xlu0 %v3435_v30, %s3148_s26 }
 0x1f5   :  { %922 = vrot.lane.b32.xlu1 %v3429_v28, %s3150_s28  ;;  %962 = vrot.lane.b32.xlu0 %v3435_v30, %s3131_s21 }
 0x1f9   :  { %925 = vrot.lane.b32.xlu1 %v3429_v28, %s3151_s29  ;;  %965 = vrot.lane.b32.xlu0 %v3435_v30, %s3149_s27 }
 0x1fd   :  { %928 = vrot.lane.b32.xlu1 %v3429_v28, %s3152_s30  ;;  %968 = vrot.lane.b32.xlu0 %v3435_v30, %s3150_s28 }
 0x201   :  { %931 = vrot.lane.b32.xlu1 %v3429_v28, %s3153_s6  ;;  %971 = vrot.lane.b32.xlu0 %v3435_v30, %s3151_s29 }
 0x205   :  { %934 = vrot.lane.b32.xlu1 %v3429_v28, %s3154_s1  ;;  %974 = vrot.lane.b32.xlu0 %v3435_v30, %s3152_s30 }
 0x209   :  { %937 = vrot.lane.b32.xlu1 %v3429_v28, %s3155_s9  ;;  %977 = vrot.lane.b32.xlu0 %v3435_v30, %s3153_s6 }
 0x20d   :  { %983 = vrot.lane.b32.xlu1 %v3435_v30, %s3155_s9  ;;  %980 = vrot.lane.b32.xlu0 %v3435_v30, %s3154_s1 }
 0x247   :  { %v899_v31 = vpop.permute.xlu1 %898  ;;  %v896_v33 = vpop.permute.xlu0 %895 }
 0x248   :  { %v897_v56 = vadd.f32 %v896_v33, %v3429_v28 }
 0x24a   :  { %v900_v7 = vadd.f32 %v899_v31, %v897_v56 }
 0x24b   :  { %v902_v34 = vpop.permute.xlu1 %901  ;;  %v3493_v35 = vpop.permute.xlu0 %941 }
 0x24c   :  { %v903_v16 = vadd.f32 %v902_v34, %v900_v7  ;;  %v943_v19 = vadd.f32 %v3493_v35, %v3435_v30 }
 0x24f   :  { %v3495_v36 = vpop.permute.xlu1 %904  ;;  %v3497_v37 = vpop.permute.xlu0 %944 }
 0x250   :  { %v906_v20 = vadd.f32 %v3495_v36, %v903_v16  ;;  %v946_v23 = vadd.f32 %v3497_v37, %v943_v19  ;;  %v153_v16 = vld [vmem:[#allocation12] sm:$0x3f] }
 0x253   :  { %v3499_v38 = vpop.permute.xlu1 %907  ;;  %v3501_v40 = vpop.permute.xlu0 %947 }
 0x254   :  { %v909_v24 = vadd.f32 %v3499_v38, %v906_v20  ;;  %v949_v26 = vadd.f32 %v3501_v40, %v946_v23  ;;  %v1007_v23 = vsub.s32 1, %v3215_v1 }
 0x257   :  { %v911_v44 = vpop.permute.xlu1 %910  ;;  %v951_v45 = vpop.permute.xlu0 %950 }
 0x258   :  { %v912_v27 = vadd.f32 %v911_v44, %v909_v24  ;;  %v952_v31 = vadd.f32 %v951_v45, %v949_v26  ;;  %v2933_v24 = vld [vmem:[#allocation9 + $0x48] sm:$0xff]   ;;  %v2935_v26 = vld [vmem:[#allocation9 + $0xd8] sm:$0xff]  }
 0x259   :  { %2690 = vmatprep.subr.bf16.mxu1 %v2933_v24  ;;  %2714 = vmatprep.subr.bf16.mxu0 %v2935_v26 }
 0x25a   :  { %2691 = vmatpush3.bf16.msra.mxu1 %v2934_v25 }
 0x25b   :  { %v914_v52 = vpop.permute.xlu1 %913  ;;  %v954_v53 = vpop.permute.xlu0 %953 }
 0x25c   :  { %v915_v33 = vadd.f32 %v914_v52, %v912_v27  ;;  %v955_v30 = vadd.f32 %v954_v53, %v952_v31  ;;  %v2936_v27 = vld [vmem:[#allocation9 + $0x98] sm:$0xff]  }
 0x25d   :  { %2715 = vmatpush3.bf16.msra.mxu0 %v2936_v27 }
 0x25f   :  { %v917_v62 = vpop.permute.xlu1 %916  ;;  %v957_v0 = vpop.permute.xlu0 %956 }
 0x260   :  { %v918_v34 = vadd.f32 %v917_v62, %v915_v33  ;;  %v958_v41 = vadd.f32 %v957_v0, %v955_v30 }
 0x263   :  { %v920_v13 = vpop.permute.xlu1 %919  ;;  %v960_v15 = vpop.permute.xlu0 %959 }
 0x264   :  { %v921_v42 = vadd.f32 %v920_v13, %v918_v34  ;;  %v961_v37 = vadd.f32 %v960_v15, %v958_v41  ;;  %v2939_v41 = vld [vmem:[#allocation9 + $0xd0] sm:$0xff]  }
 0x265   :  { %2716 = vmatprep.subr.bf16.mxu0 %v2939_v41  ;;  %v2950_v41 = vld [vmem:[#allocation9 + $0x128] sm:$0xff]  }
 0x267   :  { %v923_v21 = vpop.permute.xlu1 %922  ;;  %v963_v22 = vpop.permute.xlu0 %962 }
 0x268   :  { %v924_v43 = vadd.f32 %v923_v21, %v921_v42  ;;  %v964_v47 = vadd.f32 %v963_v22, %v961_v37 }
 0x26b   :  { %v926_v28 = vpop.permute.xlu1 %925  ;;  %v966_v29 = vpop.permute.xlu0 %965 }
 0x26c   :  { %v927_v48 = vadd.f32 %v926_v28, %v924_v43  ;;  %v967_v49 = vadd.f32 %v966_v29, %v964_v47 }
 0x26f   :  { %v929_v35 = vpop.permute.xlu1 %928  ;;  %v969_v36 = vpop.permute.xlu0 %968 }
 0x270   :  { %v930_v40 = vadd.f32 %v929_v35, %v927_v48  ;;  %v970_v51 = vadd.f32 %v969_v36, %v967_v49  ;;  %v2937_v35 = vld [vmem:[#allocation9 + $0x40] sm:$0xff]  }
 0x271   :  { %v2938_v36 = vld [vmem:[#allocation9] sm:$0xff]   ;;  %2692 = vmatprep.subr.bf16.mxu1 %v2937_v35  ;;  %v2949_v35 = vld [vmem:[#allocation9 + $0x168] sm:$0xff]  }
 0x272   :  { %2693 = vmatpush3.bf16.msra.mxu1 %v2938_v36 }
 0x273   :  { %v932_v38 = vpop.permute.xlu1 %931  ;;  %v972_v46 = vpop.permute.xlu0 %971 }
 0x274   :  { %v933_v45 = vadd.f32 %v932_v38, %v930_v40  ;;  %v973_v52 = vadd.f32 %v972_v46, %v970_v51  ;;  %v2940_v38 = vld [vmem:[#allocation9 + $0x90] sm:$0xff]  }
 0x275   :  { %2717 = vmatpush3.bf16.msra.mxu0 %v2940_v38 }
 0x277   :  { %v935_v44 = vpop.permute.xlu1 %934  ;;  %v975_v50 = vpop.permute.xlu0 %974 }
 0x278   :  { %v936_v54 = vadd.f32 %v935_v44, %v933_v45  ;;  %v976_v58 = vadd.f32 %v975_v50, %v973_v52  ;;  %v2942_v44 = vld [vmem:[#allocation9 + $0xc8] sm:$0xff]  }
 0x279   :  { %2718 = vmatprep.subr.bf16.mxu0 %v2942_v44 }
 0x27b   :  { %v938_v53 = vpop.permute.xlu1 %937  ;;  %v978_v56 = vpop.permute.xlu0 %977 }
 0x27c   :  { %v939_v59 = vadd.f32 %v938_v53, %v936_v54  ;;  %v979_v60 = vadd.f32 %v978_v56, %v976_v58  ;;  %v2944_v54 = vld [vmem:[#allocation9 + $0x88] sm:$0xff]  }
 0x27d   :  { %2719 = vmatpush3.bf16.msra.mxu0 %v2944_v54 }
 0x27e   :  { %v940_v0 = vmul.f32 0.001953125, %v939_v59 }
 0x27f   :  { %v981_v62 = vpop.permute.xlu0 %980  ;;  %v984_v7 = vpop.permute.xlu1 %983 }
 0x280   :  { %v982_v3 = vadd.f32 %v981_v62, %v979_v60  ;;  %v987_v9 = vmul.f32 %v940_v0, %v940_v0  ;;  %v2946_v60 = vld [vmem:[#allocation9 + $0xc0] sm:$0xff]  }
 0x281   :  { %2720 = vmatprep.subr.bf16.mxu0 %v2946_v60 }
 0x282   :  { %v985_v8 = vadd.f32 %v984_v7, %v982_v3 }
 0x284   :  { %v986_v12 = vmul.f32 0.001953125, %v985_v8 }
 0x286   :  { %v988_v13 = vsub.f32 %v986_v12, %v987_v9 }
 0x288   :  { %v989_v15 = vadd.f32 1e-05, %v988_v13  ;;  %v2948_v13 = vld [vmem:[#allocation9 + $0x80] sm:$0xff]  }
 0x289   :  { %2721 = vmatpush3.bf16.msra.mxu0 %v2948_v13 }
 0x28a   :  { %2989 = vrsqrt.f32 %v989_v15 }
 0x297   :  { %v2990_v17 = vpop.eup %2989 }
 0x298   :  { %v991_v19 = vmul.f32 %v2990_v17, %v153_v16 }
 0x29a   :  { %v992_v20 = vmul.f32 %v991_v19, %v940_v0  ;;  %v1000_v21 = vrot.slane %v991_v19, %v999_v18 }
 0x29c   :  { %v994_v22 = vrot.slane %v992_v20, 7  ;;  %v1001_v29 = vmul.f32 %v1000_v21, %v3409_v55  ;;  %v1002_v33 = vmul.f32 %v1000_v21, %v3413_v63  ;;  %v1003_v30 = vmul.f32 %v1000_v21, %v3411_v61  ;;  %v2941_v61 = vld [vmem:[#allocation9 + $0x178] sm:$0xff]  }
 0x29d   :  { %v1004_v34 = vmul.f32 %v1000_v21, %v3423_v10  ;;  %2734 = vmatprep.subr.bf16.mxu1 %v2941_v61 }
 0x29e   :  { %v996_v28 = vsub.f32 %v153_v16, %v994_v22  ;;  %v2951_v16 = vld [vmem:[#allocation9 + $0x1f8] sm:$0xff]  }
 0x29f   :  { %2762 = vmatprep.subr.bf16.mxu0 %v2951_v16  ;;  %v2960_v16 = vld [vmem:[#allocation9 + $0x1a8] sm:$0xff]  }
 0x2a0   :  { %v1008_v31 = vrot.slane %v996_v28, %v1007_v23  ;;  %v2943_v28 = vld [vmem:[#allocation9 + $0x138] sm:$0xff]  }
 0x2a2   :  { %v1009_v42 = vadd.f32 %v1008_v31, %v1001_v29  ;;  %v1010_v37 = vadd.f32 %v1008_v31, %v1002_v33  ;;  %v1011_v43 = vadd.f32 %v1008_v31, %v1003_v30  ;;  %v1012_v55 = vadd.f32 %v1008_v31, %v1004_v34  ;;  %v2945_v31 = vld [vmem:[#allocation9 + $0x170] sm:$0xff]  }
 0x2a3   :  { %v2947_v34 = vld [vmem:[#allocation9 + $0x130] sm:$0xff]  }
 0x2a4   :  { %v3544_v46 = vmax.f32 %v1009_v42, 0.0  ;;  %v3546_v2 = vmax.f32 %v1010_v37, 0.0  ;;  %v3548_v47 = vmax.f32 %v1011_v43, 0.0  ;;  %v3550_v63 = vmax.f32 %v1012_v55, 0.0 }
 0x2a6   :  { %v1027_v10 = vrot.slane %v3544_v46, 7  ;;  %v1028_v48 = vrot.slane %v3546_v2, 7  ;;  %v1030_v49 = vrot.slane %v3548_v47, 7  ;;  %v1032_v40 = vrot.slane %v3550_v63, 7 }
 0x2a7   :  { %v1146_v50 = vrot.slane %v3544_v46, 1  ;;  %v1147_v51 = vrot.slane %v3546_v2, 1  ;;  %v1149_v45 = vrot.slane %v3548_v47, 1  ;;  %v1151_v52 = vrot.slane %v3550_v63, 1 }
 0x2a8   :  { %v1038_v53 = vsel %vm3250_vm4, %v1027_v10, 0.0  ;;  %v1029_v56 = vsel %vm173_vm5, %v1027_v10, %v1028_v48  ;;  %v3564_v58 = vsel %vm173_vm5, %v1028_v48, %v1030_v49  ;;  %v3567_v59 = vsel %vm173_vm5, %v1030_v49, %v1032_v40  ;;  %v2952_v48 = vld [vmem:[#allocation9 + $0x1b8] sm:$0xff]   ;;  %v2953_v49 = vld [vmem:[#allocation9 + $0x160] sm:$0xff]   ;;  %v2955_v40 = vld [vmem:[#allocation9 + $0x1f0] sm:$0xff]  }
 0x2a9   :  { %1046 = vrot.lane.b32.xlu0 %v1038_v53, %s3136_s8  ;;  %1065 = vst [vmem:[#allocation3 + $0x8] sm:$0xfe] %v1038_v53  ;;  %1048 = vrot.lane.b32.xlu1 %v1029_v56, %s3136_s8  ;;  %v1040_v62 = vsel %vm3302_vm8, %v3564_v58, 0.0  ;;  %v3575_v0 = vsel %vm321_vm6, %v1146_v50, %v1147_v51  ;;  %v3578_v3 = vsel %vm321_vm6, %v1147_v51, %v1149_v45  ;;  %v1160_v9 = vsel %vm3334_vm11, %v1151_v52, 0.0 }
 0x2aa   :  { %v3581_v7 = vsel %vm321_vm6, %v1149_v45, %v1151_v52  ;;  %v1158_v8 = vsel %vm3284_vm7, %v3578_v3, 0.0  ;;  %v1253_v12 = vpack.c.bf16 %v3546_v2, %v3544_v46  ;;  %1186 = vst [vmem:[#allocation3 + $0x110] sm:$0x7f] %v1160_v9  ;;  %v1262_v15 = vpack.c.bf16 %v3550_v63, %v3548_v47 }
 0x2ab   :  { %vm1058_vm5 = vcmask 1047617   ;;  %vm1060_vm6 = vcmask 1047616   ;;  %v2997_v30 = vpack.c.bf16 %v3567_v59, %v3564_v58 }
 0x2ad   :  { %1075 = vrot.lane.b32.xlu0 %v1027_v10, %s3155_s9  ;;  %1101 = vrot.lane.b32.xlu1 %v3544_v46, %s3136_s8 }
 0x2b0   :  { %v1214_v17 = vld [vmem:[#allocation3 + $0x8] sm:$0xff] }
 0x2b1   :  { %1103 = vrot.lane.b32.xlu0 %v3546_v2, %s3136_s8  ;;  %1077 = vrot.lane.b32.xlu1 %v1029_v56, %s3155_s9  ;;  %v1250_v18 = vpack.c.bf16 %v1029_v56, %v1214_v17  ;;  %v2956_v56 = vld [vmem:[#allocation9 + $0x1b0] sm:$0xff]  }
 0x2b2   :  { %v2961_v17 = vld [vmem:[#allocation9 + $0x150] sm:$0xff]  }
 0x2b3   :  { %1875 = vmatprep.mubr.bf16.mxu1 %v1250_v18  ;;  %v2963_v18 = vld [vmem:[#allocation9 + $0x1e0] sm:$0xff]  }
 0x2b5   :  { %1050 = vrot.lane.b32.xlu0 %v1040_v62, %s3136_s8  ;;  %1052 = vrot.lane.b32.xlu1 %v3567_v59, %s3136_s8 }
 0x2b9   :  { %1125 = vrot.lane.b32.xlu0 %v3544_v46, %s3155_s9  ;;  %1127 = vrot.lane.b32.xlu1 %v3546_v2, %s3155_s9  ;;  %v1247_v46 = vld [vmem:[#allocation3 + $0x110] sm:$0xff] }
 0x2bd   :  { %1079 = vrot.lane.b32.xlu0 %v3564_v58, %s3155_s9  ;;  %1105 = vrot.lane.b32.xlu1 %v3548_v47, %s3136_s8  ;;  %v2957_v58 = vld [vmem:[#allocation9 + $0x158] sm:$0xff]  }
 0x2c1   :  { %1107 = vrot.lane.b32.xlu0 %v3550_v63, %s3136_s8  ;;  %1081 = vrot.lane.b32.xlu1 %v3567_v59, %s3155_s9  ;;  %v2959_v59 = vld [vmem:[#allocation9 + $0x1e8] sm:$0xff]  }
 0x2c5   :  { %1165 = vrot.lane.b32.xlu0 %v3575_v0, %s3136_s8  ;;  %1131 = vrot.lane.b32.xlu1 %v3550_v63, %s3155_s9 }
 0x2c9   :  { %1129 = vrot.lane.b32.xlu0 %v3548_v47, %s3155_s9  ;;  %1167 = vrot.lane.b32.xlu1 %v1158_v8, %s3136_s8  ;;  %v2958_v8 = vld [vmem:[#allocation9 + $0x118] sm:$0xff]   ;;  %v2218_v47 = vpack.c.bf16 %v3246_v4, %v3248_v5 }
 0x2cd   :  { %1169 = vrot.lane.b32.xlu0 %v3581_v7, %s3136_s8  ;;  %1171 = vrot.lane.b32.xlu1 %v1160_v9, %s3136_s8 }
 0x2d1   :  { %1194 = vrot.lane.b32.xlu0 %v3578_v3, %s3155_s9  ;;  %1192 = vrot.lane.b32.xlu1 %v3575_v0, %s3155_s9 }
 0x2d5   :  { %1198 = vrot.lane.b32.xlu0 %v1151_v52, %s3155_s9  ;;  %1196 = vrot.lane.b32.xlu1 %v3581_v7, %s3155_s9  ;;  %v2954_v52 = vld [vmem:[#allocation9 + $0x120] sm:$0xff]  }
 0x31b   :  { %v1047_v19 = vpop.permute.xlu0 %1046  ;;  %v1049_v20 = vpop.permute.xlu1 %1048 }
 0x31c   :  { %1059 = vst.msk [vmem:[#allocation3] sm:$0xfe] %vm1058_vm5, %v1047_v19 }
 0x31d   :  { %1061 = vst.msk [vmem:[#allocation3 + $0x48] sm:$0xff] %vm1060_vm6, %v1049_v20 }
 0x31f   :  { %v1076_v21 = vpop.permute.xlu0 %1075  ;;  %v1102_v22 = vpop.permute.xlu1 %1101 }
 0x320   :  { %v1087_v23 = vsel %vm3250_vm4, %v1076_v21, 0.0  ;;  %1113 = vst.msk [vmem:[#allocation3 + $0x18] sm:$0xff] %vm1060_vm6, %v1102_v22  ;;  %vm3156_vm4 = vmmov 1   ;;  %v2962_v21 = vld [vmem:[#allocation9 + $0x110] sm:$0xff]   ;;  %v2964_v22 = vld [vmem:[#allocation9 + $0x1a0] sm:$0xff]  }
 0x321   :  { %1092 = vst.msk [vmem:[#allocation3 + $0x10] sm:$0xfe] %vm1091_vm1, %v1087_v23  ;;  %vm2996_vm3 = vmpackc.low %vm3156_vm4, %vm3302_vm8  ;;  %v2965_v23 = vld [vmem:[#allocation9 + $0x148] sm:$0xff]  }
 0x322   :  { %vm2999_vm10 = vmpackc.low %vm3284_vm7, %vm3156_vm4 }
 0x323   :  { %v1104_v24 = vpop.permute.xlu0 %1103  ;;  %v1078_v25 = vpop.permute.xlu1 %1077  ;;  %v1213_v26 = vld [vmem:[#allocation3] sm:$0xff] }
 0x324   :  { %v1222_v27 = vld [vmem:[#allocation3 + $0x48] sm:$0xff]  ;;  %1114 = vst.msk [vmem:[#allocation3 + $0x60] sm:$0xff] %vm1060_vm6, %v1104_v24  ;;  %v2967_v24 = vld [vmem:[#allocation9 + $0x1d8] sm:$0xff]  }
 0x325   :  { %1094 = vst.msk [vmem:[#allocation3 + $0x58] sm:$0xff] %vm1093_vm2, %v1078_v25  ;;  %v1249_v29 = vpack.c.bf16 %v1222_v27, %v1213_v26  ;;  %v2966_v26 = vld [vmem:[#allocation9 + $0x108] sm:$0xff]  }
 0x327   :  { %1876 = vmatmul.mubr.bf16.vlgmr.msra.gmra.mxu1 %v1249_v29  ;;  %v1051_v33 = vpop.permute.xlu0 %1050  ;;  %v1053_v6 = vpop.permute.xlu1 %1052  ;;  %v1216_v36 = vld [vmem:[#allocation3 + $0x18] sm:$0xff] }
 0x328   :  { %2735 = vmatpush3.bf16.msra.mxu1 %v2943_v28  ;;  %2998 = vmatprep.mubr.msk.bf16.mxu1 %vm2996_vm3, %v2997_v30  ;;  %1062 = vst.msk [vmem:[#allocation3 + $0x90] sm:$0xff] %vm1060_vm6, %v1051_v33  ;;  %1063 = vst.msk [vmem:[#allocation3 + $0xd8] sm:$0xff] %vm1060_vm6, %v1053_v6  ;;  %v1215_v55 = vld [vmem:[#allocation3 + $0x10] sm:$0xff] }
 0x329   :  { %2736 = vmatprep.subr.bf16.mxu1 %v2945_v31 }
 0x32b   :  { %v1126_v42 = vpop.permute.xlu0 %1125  ;;  %v1128_v37 = vpop.permute.xlu1 %1127  ;;  %v1225_v43 = vld [vmem:[#allocation3 + $0x60] sm:$0xff] }
 0x32c   :  { %2737 = vmatpush3.bf16.msra.mxu1 %v2947_v34  ;;  %v1224_v38 = vld [vmem:[#allocation3 + $0x58] sm:$0xff]  ;;  %1137 = vst.msk [vmem:[#allocation3 + $0x28] sm:$0xff] %vm1093_vm2, %v1126_v42  ;;  %1138 = vst.msk [vmem:[#allocation3 + $0x70] sm:$0xff] %vm1093_vm2, %v1128_v37  ;;  %v1252_v61 = vpack.c.bf16 %v1225_v43, %v1216_v36  ;;  %v2971_v36 = vld [vmem:[#allocation9 + $0x1d0] sm:$0xff]   ;;  %v3000_v43 = vpack.c.bf16 %v3578_v3, %v3575_v0 }
 0x32d   :  { %2738 = vmatprep.subr.bf16.mxu1 %v2949_v35  ;;  %v1251_v10 = vpack.c.bf16 %v1224_v38, %v1215_v55  ;;  %v2968_v34 = vld [vmem:[#allocation9 + $0x198] sm:$0xff]   ;;  %v2969_v35 = vld [vmem:[#allocation9 + $0x140] sm:$0xff]   ;;  %v2972_v55 = vld [vmem:[#allocation9 + $0x190] sm:$0xff]  }
 0x32e   :  { %1924 = vmatprep.mubr.bf16.mxu0 %v1252_v61  ;;  %v2970_v37 = vld [vmem:[#allocation9 + $0x100] sm:$0xff]   ;;  %v2973_v38 = vld [vmem:[#allocation9 + $0x238] sm:$0xff]   ;;  %v2974_v61 = vld [vmem:[#allocation9 + $0x1c8] sm:$0xff]  }
 0x32f   :  { %v1080_v44 = vpop.permute.xlu0 %1079  ;;  %1925 = vmatmul.mubr.bf16.vlgmr.msra.gmra.mxu0 %v1251_v10  ;;  %v1106_v50 = vpop.permute.xlu1 %1105  ;;  %v1231_v51 = vld [vmem:[#allocation3 + $0x90] sm:$0xff]  ;;  %v1240_v45 = vld [vmem:[#allocation3 + $0xd8] sm:$0xff]  ;;  %v2975_v0 = vld [vmem:[#allocation9 + $0x188] sm:$0xff]  }
 0x330   :  { %2739 = vmatpush3.bf16.msra.mxu1 %v2950_v41  ;;  %v1089_v54 = vsel %vm3302_vm8, %v1080_v44, 0.0  ;;  %2763 = vmatpush3.bf16.msra.mxu0 %v2952_v48  ;;  %1115 = vst.msk [vmem:[#allocation3 + $0xa8] sm:$0xff] %vm1060_vm6, %v1106_v50  ;;  %v1258_v53 = vpack.c.bf16 %v1240_v45, %v1231_v51  ;;  %vm1180_vm8 = vcmask 1046592   ;;  %v2976_v3 = vld [vmem:[#allocation9 + $0x230] sm:$0xff]   ;;  %v2977_v51 = vld [vmem:[#allocation9 + $0x1c0] sm:$0xff]  }
 0x331   :  { %2740 = vmatprep.subr.bf16.mxu1 %v2953_v49  ;;  %1095 = vst.msk [vmem:[#allocation3 + $0xa0] sm:$0xff] %vm1093_vm2, %v1089_v54  ;;  %2764 = vmatprep.subr.bf16.mxu0 %v2955_v40  ;;  %v2978_v54 = vld [vmem:[#allocation9 + $0x180] sm:$0xff]  }
 0x332   :  { %1884 = vmatmul.mubr.bf16.gmra.mxu1 %v1258_v53  ;;  %v2979_v53 = vld [vmem:[#allocation9 + $0x228] sm:$0xff]  }
 0x333   :  { %v1108_v60 = vpop.permute.xlu0 %1107  ;;  %v1082_v62 = vpop.permute.xlu1 %1081  ;;  %v1218_v9 = vld [vmem:[#allocation3 + $0x28] sm:$0xff]  ;;  %v1227_v13 = vld [vmem:[#allocation3 + $0x70] sm:$0xff] }
 0x334   :  { %2741 = vmatpush3.bf16.msra.mxu1 %v2954_v52  ;;  %1116 = vst.msk [vmem:[#allocation3 + $0xf0] sm:$0xff] %vm1060_vm6, %v1108_v60  ;;  %2765 = vmatpush3.bf16.msra.mxu0 %v2956_v56  ;;  %v1254_v39 = vpack.c.bf16 %v1227_v13, %v1218_v9  ;;  %v2980_v56 = vld [vmem:[#allocation10 + $0x18] sm:$0xff]   ;;  %v2982_v9 = vld [vmem:[#allocation10 + $0x10] sm:$0xff]  }
 0x335   :  { %1096 = vst.msk [vmem:[#allocation3 + $0xe8] sm:$0xff] %vm1093_vm2, %v1082_v62  ;;  %2742 = vmatprep.subr.bf16.mxu1 %v2957_v58  ;;  %2766 = vmatprep.subr.bf16.mxu0 %v2959_v59  ;;  %v2981_v62 = vld [vmem:[#allocation9 + $0x220] sm:$0xff]   ;;  %v2983_v13 = vld [vmem:[#allocation9 + $0x218] sm:$0xff]  }
 0x336   :  { %1973 = vmatprep.mubr.bf16.mxu1 %v1254_v39 }
 0x337   :  { %v1166_v19 = vpop.permute.xlu0 %1165  ;;  %v1132_v20 = vpop.permute.xlu1 %1131  ;;  %v1234_v25 = vld [vmem:[#allocation3 + $0xa8] sm:$0xff] }
 0x338   :  { %2743 = vmatpush3.bf16.msra.mxu1 %v2958_v8  ;;  %1177 = vst.msk [vmem:[#allocation3 + $0x30] sm:$0xff] %vm1060_vm6, %v1166_v19  ;;  %2767 = vmatpush3.bf16.msra.mxu0 %v2960_v16  ;;  %v1233_v31 = vld [vmem:[#allocation3 + $0xa0] sm:$0xff]  ;;  %v1265_v8 = vpack.c.bf16 %v1247_v46, %v3581_v7  ;;  %v2219_v19 = vpack.c.bf16 %v3267_v14, %v3262_v11 }
 0x339   :  { %1140 = vst.msk [vmem:[#allocation3 + $0x100] sm:$0xff] %vm1093_vm2, %v1132_v20  ;;  %2744 = vmatprep.subr.bf16.mxu1 %v2961_v17  ;;  %2768 = vmatprep.subr.bf16.mxu0 %v2963_v18  ;;  %v2984_v17 = vld [vmem:[#allocation10 + $0x8] sm:$0xff]   ;;  %v2985_v18 = vld [vmem:[#allocation9 + $0x210] sm:$0xff]   ;;  %v2986_v7 = vld [vmem:[#allocation10] sm:$0xff]  }
 0x33a   :  { %v2988_v20 = vld [vmem:[#allocation9 + $0x200] sm:$0xff]  }
 0x33b   :  { %v1130_v27 = vpop.permute.xlu0 %1129  ;;  %v1168_v28 = vpop.permute.xlu1 %1167  ;;  %v1243_v29 = vld [vmem:[#allocation3 + $0xf0] sm:$0xff] }
 0x33c   :  { %2745 = vmatpush3.bf16.msra.mxu1 %v2962_v21  ;;  %v1242_v33 = vld [vmem:[#allocation3 + $0xe8] sm:$0xff]  ;;  %1139 = vst.msk [vmem:[#allocation3 + $0xb8] sm:$0xff] %vm1093_vm2, %v1130_v27  ;;  %2769 = vmatpush3.bf16.msra.mxu0 %v2964_v22  ;;  %v1261_v6 = vpack.c.bf16 %v1243_v29, %v1234_v25 }
 0x33d   :  { %1178 = vst.msk [vmem:[#allocation3 + $0x78] sm:$0xff] %vm1060_vm6, %v1168_v28  ;;  %2746 = vmatprep.subr.bf16.mxu1 %v2965_v23  ;;  %v1260_v30 = vpack.c.bf16 %v1242_v33, %v1233_v31  ;;  %2770 = vmatprep.subr.bf16.mxu0 %v2967_v24 }
 0x33e   :  { %1932 = vmatprep.mubr.bf16.mxu0 %v1261_v6 }
 0x33f   :  { %v1170_v41 = vpop.permute.xlu0 %1169  ;;  %1933 = vmatmul.mubr.bf16.gmra.mxu0 %v1260_v30  ;;  %v1172_v42 = vpop.permute.xlu1 %1171 }
 0x340   :  { %2747 = vmatpush3.bf16.msra.mxu1 %v2966_v26  ;;  %1179 = vst.msk [vmem:[#allocation3 + $0xc0] sm:$0xff] %vm1060_vm6, %v1170_v41  ;;  %2771 = vmatpush3.bf16.msra.mxu0 %v2968_v34  ;;  %v1245_v40 = vld [vmem:[#allocation3 + $0x100] sm:$0xff] }
 0x341   :  { %1181 = vst.msk [vmem:[#allocation3 + $0x108] sm:$0x7f] %vm1180_vm8, %v1172_v42  ;;  %3001 = vmatprep.mubr.msk.bf16.mxu0 %vm2999_vm10, %v3000_v43  ;;  %2748 = vmatprep.subr.bf16.mxu1 %v2969_v35 }
 0x342   :  { %2772 = vmatprep.subr.bf16.mxu0 %v2971_v36 }
 0x343   :  { %v1195_v10 = vpop.permute.xlu0 %1194  ;;  %v1193_v48 = vpop.permute.xlu1 %1192  ;;  %v1236_v49 = vld [vmem:[#allocation3 + $0xb8] sm:$0xff] }
 0x344   :  { %2749 = vmatpush3.bf16.msra.mxu1 %v2970_v37  ;;  %v1205_v44 = vsel %vm3284_vm7, %v1195_v10, 0.0  ;;  %2773 = vmatpush3.bf16.msra.mxu0 %v2972_v55  ;;  %1208 = vst.msk [vmem:[#allocation3 + $0x40] sm:$0xff] %vm1093_vm2, %v1193_v48  ;;  %v1263_v50 = vpack.c.bf16 %v1245_v40, %v1236_v49  ;;  %v1228_v58 = vld [vmem:[#allocation3 + $0x78] sm:$0xff] }
 0x345   :  { %2818 = vmatprep.subr.bf16.mxu1 %v2973_v38  ;;  %1209 = vst.msk [vmem:[#allocation3 + $0x88] sm:$0xff] %vm1093_vm2, %v1205_v44  ;;  %2774 = vmatprep.subr.bf16.mxu0 %v2974_v61 }
 0x347   :  { %1974 = vmatmul.mubr.bf16.vlgmr.msra.gmra.mxu1 %v1253_v12  ;;  %v1199_v32 = vpop.permute.xlu0 %1198  ;;  %v1197_v45 = vpop.permute.xlu1 %1196  ;;  %v1219_v12 = vld [vmem:[#allocation3 + $0x30] sm:$0xff]  ;;  %v1237_v39 = vld [vmem:[#allocation3 + $0xc0] sm:$0xff] }
 0x348   :  { %1981 = vmatprep.mubr.bf16.mxu1 %v1263_v50  ;;  %2819 = vmatpush3.bf16.msra.mxu1 %v2973_v38  ;;  %v1207_v52 = vsel %vm3334_vm11, %v1199_v32, 0.0  ;;  %1210 = vst.msk [vmem:[#allocation3 + $0xd0] sm:$0xff] %vm1093_vm2, %v1197_v45  ;;  %v1255_v60 = vpack.c.bf16 %v1228_v58, %v1219_v12  ;;  %v1246_v16 = vld [vmem:[#allocation3 + $0x108] sm:$0xff] }
 0x349   :  { %2775 = vmatpush3.bf16.msra.mxu0 %v2975_v0  ;;  %2820 = vmatprep.subr.bf16.mxu1 %v2976_v3  ;;  %1212 = vst.msk [vmem:[#allocation3 + $0x118] sm:$0x7f] %vm1211_vm12, %v1207_v52  ;;  %v1264_v63 = vpack.c.bf16 %v1246_v16, %v1237_v39 }
 0x34a   :  { %2776 = vmatprep.subr.bf16.mxu0 %v2977_v51 }
 0x34b   :  { %v1221_v2 = vld [vmem:[#allocation3 + $0x40] sm:$0xff] }
 0x34c   :  { %2821 = vmatpush3.bf16.msra.mxu1 %v2976_v3  ;;  %v1230_v59 = vld [vmem:[#allocation3 + $0x88] sm:$0xff] }
 0x34d   :  { %2777 = vmatpush3.bf16.msra.mxu0 %v2978_v54  ;;  %2822 = vmatprep.subr.bf16.mxu1 %v2979_v53  ;;  %v1257_v57 = vpack.c.bf16 %v1230_v59, %v1221_v2 }
 0x34e   :  { %2838 = vmatprep.subr.bf16.mxu0 %v2980_v56 }
 0x34f   :  { %1982 = vmatmul.mubr.bf16.gmra.mxu1 %v1262_v15  ;;  %v2987_v15 = vld [vmem:[#allocation9 + $0x208] sm:$0xff]   ;;  %v1239_v4 = vld [vmem:[#allocation3 + $0xd0] sm:$0xff] }
 0x350   :  { %2023 = vmatmul.mubr.bf16.vlgmr.msra.gmra.mxu0 %v1255_v60  ;;  %2823 = vmatpush3.bf16.msra.mxu1 %v2979_v53  ;;  %v1248_v5 = vld [vmem:[#allocation3 + $0x118] sm:$0xff] }
 0x351   :  { %2030 = vmatprep.mubr.bf16.mxu0 %v1265_v8  ;;  %2834 = vmatprep.mubr.bf16.mxu1 %v1257_v57  ;;  %v1266_v21 = vpack.c.bf16 %v1248_v5, %v1239_v4 }
 0x352   :  { %2839 = vmatpush3.bf16.msra.mxu0 %v2980_v56  ;;  %2824 = vmatprep.subr.bf16.mxu1 %v2981_v62 }
 0x353   :  { %2840 = vmatprep.subr.bf16.mxu0 %v2982_v9 }
 0x354   :  { %2825 = vmatpush3.bf16.msra.mxu1 %v2981_v62 }
 0x355   :  { %2826 = vmatprep.subr.bf16.mxu1 %v2983_v13 }
 0x356   :  { %2841 = vmatpush3.bf16.msra.mxu0 %v2982_v9 }
 0x357   :  { %2842 = vmatprep.subr.bf16.mxu0 %v2984_v17 }
 0x358   :  { %2031 = vmatmul.mubr.bf16.gmra.mxu0 %v1264_v63  ;;  %2827 = vmatpush3.bf16.msra.mxu1 %v2983_v13 }
 0x359   :  { %2828 = vmatprep.subr.bf16.mxu1 %v2985_v18  ;;  %2846 = vmatprep.mubr.msk.bf16.mxu0 %vm281_vm9, %v2218_v47 }
 0x35a   :  { %2843 = vmatpush3.bf16.msra.mxu0 %v2984_v17 }
 0x35b   :  { %2844 = vmatprep.subr.bf16.mxu0 %v2986_v7 }
 0x35c   :  { %2829 = vmatpush3.bf16.msra.mxu1 %v2985_v18 }
 0x35d   :  { %2830 = vmatprep.subr.bf16.mxu1 %v2987_v15 }
 0x35e   :  { %2845 = vmatpush3.bf16.msra.mxu0 %v2986_v7 }
 0x360   :  { %2831 = vmatpush3.bf16.msra.mxu1 %v2987_v15 }
 0x361   :  { %2847 = vmatmul.mubr.msk.bf16.vlgmr.msra.gmra.mxu0 %vm281_vm9, %v2219_v19  ;;  %2832 = vmatprep.subr.bf16.mxu1 %v2988_v20 }
 0x364   :  { %2833 = vmatpush3.bf16.msra.mxu1 %v2988_v20 }
 0x367   :  { %2835 = vmatmul.mubr.bf16.vlgmr.msra.gmra.mxu1 %v1266_v21 }
 0x3e7   :  { %v2694_v24 = vpop.f32.mrf.mxu1 }
 0x3e9   :  { %v2695_v26 = vpop.f32.mrf.mxu1 }
 0x3ea   :  { %v2696_v20 = vadd.f32 %v2695_v26, %v2694_v24 }
 0x3eb   :  { %v2697_v27 = vpop.f32.mrf.mxu1 }
 0x3ed   :  { %v2698_v11 = vpop.f32.mrf.mxu1 }
 0x3ee   :  { %v2699_v63 = vadd.f32 %v2698_v11, %v2697_v27 }
 0x3ef   :  { %v2722_v22 = vpop.f32.mrf.mxu0 }
 0x3f1   :  { %v2723_v23 = vpop.f32.mrf.mxu0 }
 0x3f2   :  { %v3681_v25 = vadd.f32 %v2723_v23, %v2722_v22  ;;  %v3683_v29 = vpop.f32.mrf.mxu1 }
 0x3f3   :  { %v2725_v28 = vpop.f32.mrf.mxu0 }
 0x3f4   :  { %v2701_v33 = vpop.f32.mrf.mxu1 }
 0x3f5   :  { %v2726_v14 = vpop.f32.mrf.mxu0  ;;  %v2702_v27 = vadd.f32 %v2701_v33, %v3683_v29 }
 0x3f6   :  { %v3685_v30 = vpop.f32.mrf.mxu1  ;;  %v2727_v16 = vadd.f32 %v2726_v14, %v2725_v28 }
 0x3f8   :  { %v3689_v35 = vpop.f32.mrf.mxu1  ;;  %v1930_v4 = vadd.f32 %v2727_v16, %v2699_v63 }
 0x3f9   :  { %v2705_v29 = vadd.f32 %v3689_v35, %v3685_v30 }
 0x3ff   :  { %v2728_v31 = vpop.f32.mrf.mxu0 }
 0x401   :  { %v2729_v6 = vpop.f32.mrf.mxu0 }
 0x403   :  { %v3687_v34 = vpop.f32.mrf.mxu0 }
 0x405   :  { %v3691_v36 = vpop.f32.mrf.mxu0 }
 0x407   :  { %v2750_v41 = vpop.f32.mrf.mxu1 }
 0x409   :  { %v2751_v43 = vpop.f32.mrf.mxu1 }
 0x40a   :  { %v2752_v21 = vadd.f32 %v2751_v43, %v2750_v41 }
 0x40b   :  { %v2753_v61 = vpop.f32.mrf.mxu1 }
 0x40d   :  { %v2754_v49 = vpop.f32.mrf.mxu1 }
 0x40e   :  { %v2755_v7 = vadd.f32 %v2754_v49, %v2753_v61 }
 0x40f   :  { %v2756_v50 = vpop.f32.mrf.mxu1 }
 0x410   :  { %v2778_v42 = vpop.f32.mrf.mxu0 }
 0x411   :  { %v2757_v3 = vpop.f32.mrf.mxu1 }
 0x412   :  { %v2779_v37 = vpop.f32.mrf.mxu0  ;;  %v2758_v49 = vadd.f32 %v2757_v3, %v2756_v50 }
 0x413   :  { %v2759_v45 = vpop.f32.mrf.mxu1 }
 0x414   :  { %v2781_v55 = vpop.f32.mrf.mxu0 }
 0x415   :  { %v2760_v12 = vpop.f32.mrf.mxu1 }
 0x416   :  { %v2782_v38 = vpop.f32.mrf.mxu0 }
 0x417   :  { %v2783_v22 = vadd.f32 %v2782_v38, %v2781_v55 }
 0x418   :  { %v2784_v10 = vpop.f32.mrf.mxu0 }
 0x41a   :  { %v2785_v48 = vpop.f32.mrf.mxu0 }
 0x41c   :  { %v3693_v40 = vpop.f32.mrf.mxu0 }
 0x41e   :  { %v3695_v44 = vpop.f32.mrf.mxu0 }
 0x421   :  { %v3697_v0 = vpop.f32.mrf.mxu0 }
 0x422   :  { %v2318_v58 = vmul.f32 %v3697_v0, %v3697_v0 }
 0x423   :  { %v3699_v51 = vpop.f32.mrf.mxu0 }
 0x424   :  { %v2316_v54 = vmul.f32 %v3699_v51, %v3699_v51 }
 0x425   :  { %v3701_v32 = vpop.f32.mrf.mxu0 }
 0x426   :  { %v2319_v59 = vmul.f32 %v3701_v32, %v3701_v32 }
 0x427   :  { %v3703_v52 = vpop.f32.mrf.mxu0  ;;  %v2836_v62 = vpop.f32.mrf.mxu1 }
 0x428   :  { %v2307_v53 = vadd.f32 %v3703_v52, %v3699_v51  ;;  %v2317_v56 = vmul.f32 %v3703_v52, %v3703_v52 }
 0x429   :  { %v2073_v17 = vpop.f32.mrf.mxu1 }
 0x42a   :  { %v2308_v46 = vadd.f32 %v3697_v0, %v2307_v53  ;;  %v2320_v2 = vadd.f32 %v2317_v56, %v2316_v54  ;;  %v1927_v53 = vadd.f32 %v3681_v25, %v2696_v20  ;;  %v2730_v56 = vadd.f32 %v2729_v6, %v2728_v31 }
 0x42b   :  { %v2837_v5 = vpop.f32.mrf.mxu1  ;;  %v2733_v25 = vadd.f32 %v3691_v36, %v3687_v34  ;;  %v2786_v31 = vadd.f32 %v2785_v48, %v2784_v10  ;;  %v2789_v36 = vadd.f32 %v3695_v44, %v3693_v40 }
 0x42c   :  { %v2309_v60 = vadd.f32 %v3701_v32, %v2308_v46  ;;  %v2321_v57 = vadd.f32 %v2320_v2, %v2318_v58  ;;  %v1979_v58 = vadd.f32 %v2755_v7, %v1930_v4  ;;  %v2780_v46 = vadd.f32 %v2779_v37, %v2778_v42 }
 0x42d   :  { %v2076_v11 = vpop.f32.mrf.mxu1  ;;  %v1976_v61 = vadd.f32 %v2752_v21, %v1927_v53  ;;  %v1935_v26 = vadd.f32 %v2730_v56, %v2702_v27  ;;  %v2761_v37 = vadd.f32 %v2760_v12, %v2759_v45  ;;  %v1938_v34 = vadd.f32 %v2733_v25, %v2705_v29 }
 0x42e   :  { %v2310_v8 = vrot.slane %v2309_v60, 4  ;;  %v2322_v9 = vadd.f32 %v2321_v57, %v2319_v59  ;;  %v2028_v24 = vadd.f32 %v2783_v22, %v1979_v58 }
 0x42f   :  { %v2025_v41 = vadd.f32 %v2780_v46, %v1976_v61  ;;  %v1984_v33 = vadd.f32 %v2758_v49, %v1935_v26  ;;  %v1987_v10 = vadd.f32 %v2761_v37, %v1938_v34 }
 0x430   :  { %v2311_v13 = vadd.f32 %v2310_v8, %v2309_v60  ;;  %v2323_v39 = vrot.slane %v2322_v9, 4  ;;  %v3729_v42 = vadd.f32 %v2076_v11, %v2028_v24 }
 0x431   :  { %v3733_v43 = vadd.f32 %v2073_v17, %v2025_v41  ;;  %v2033_v55 = vadd.f32 %v2786_v31, %v1984_v33  ;;  %v2036_v35 = vadd.f32 %v2789_v36, %v1987_v10 }
 0x432   :  { %v2312_v18 = vrot.slane %v2311_v13, 2  ;;  %v2324_v47 = vadd.f32 %v2323_v39, %v2322_v9  ;;  %v2098_v2 = vmul.f32 %v3729_v42, %v3729_v42 }
 0x433   :  { %v2088_v38 = vadd.f32 %v3729_v42, %v3733_v43  ;;  %v3743_v30 = vadd.f32 %v2836_v62, %v2033_v55  ;;  %v3750_v50 = vadd.f32 %v2837_v5, %v2036_v35  ;;  %v2097_v12 = vmul.f32 %v3733_v43, %v3733_v43 }
 0x434   :  { %v2313_v15 = vadd.f32 %v2312_v18, %v2311_v13  ;;  %v2325_v19 = vrot.slane %v2324_v47, 2 }
 0x435   :  { %v2089_v48 = vadd.f32 %v2088_v38, %v3743_v30  ;;  %v2101_v60 = vadd.f32 %v2098_v2, %v2097_v12  ;;  %v2099_v57 = vmul.f32 %v3743_v30, %v3743_v30  ;;  %v2100_v9 = vmul.f32 %v3750_v50, %v3750_v50 }
 0x436   :  { %v2314_v23 = vrot.slane %v2313_v15, 1  ;;  %v2326_v54 = vadd.f32 %v2325_v19, %v2324_v47 }
 0x437   :  { %v2090_v40 = vadd.f32 %v2089_v48, %v3750_v50  ;;  %v2102_v8 = vadd.f32 %v2101_v60, %v2099_v57 }
 0x438   :  { %v3718_v28 = vadd.f32 %v2314_v23, %v2313_v15  ;;  %v2327_v14 = vrot.slane %v2326_v54, 1 }
 0x439   :  { %v2091_v44 = vrot.slane %v2090_v40, 4  ;;  %v2103_v39 = vadd.f32 %v2102_v8, %v2100_v9 }
 0x43a   :  { %2332 = vrot.lane.b32.xlu0 %v3718_v28, %s3143_s20  ;;  %2329 = vrot.lane.b32.xlu1 %v3718_v28, %s3136_s8  ;;  %v3727_v6 = vadd.f32 %v2327_v14, %v2326_v54 }
 0x43b   :  { %v2092_v3 = vadd.f32 %v2091_v44, %v2090_v40  ;;  %v2104_v16 = vrot.slane %v2103_v39, 4 }
 0x43d   :  { %v2093_v45 = vrot.slane %v2092_v3, 2  ;;  %v2105_v17 = vadd.f32 %v2104_v16, %v2103_v39 }
 0x43e   :  { %2335 = vrot.lane.b32.xlu0 %v3718_v28, %s3144_s22  ;;  %2375 = vrot.lane.b32.xlu1 %v3727_v6, %s3136_s8 }
 0x43f   :  { %v2094_v59 = vadd.f32 %v2093_v45, %v2092_v3  ;;  %v2106_v18 = vrot.slane %v2105_v17, 2 }
 0x441   :  { %v2095_v62 = vrot.slane %v2094_v59, 1  ;;  %v2107_v47 = vadd.f32 %v2106_v18, %v2105_v17 }
 0x442   :  { %2338 = vrot.lane.b32.xlu0 %v3718_v28, %s3145_s23  ;;  %2378 = vrot.lane.b32.xlu1 %v3727_v6, %s3143_s20 }
 0x443   :  { %v3789_v13 = vadd.f32 %v2095_v62, %v2094_v59  ;;  %v2108_v63 = vrot.slane %v2107_v47, 1 }
 0x445   :  { %v3815_v7 = vadd.f32 %v2108_v63, %v2107_v47 }
 0x446   :  { %2341 = vrot.lane.b32.xlu0 %v3718_v28, %s3146_s24  ;;  %2381 = vrot.lane.b32.xlu1 %v3727_v6, %s3144_s22 }
 0x44a   :  { %2344 = vrot.lane.b32.xlu0 %v3718_v28, %s3147_s25  ;;  %2384 = vrot.lane.b32.xlu1 %v3727_v6, %s3145_s23 }
 0x44e   :  { %2347 = vrot.lane.b32.xlu0 %v3718_v28, %s3148_s26  ;;  %2387 = vrot.lane.b32.xlu1 %v3727_v6, %s3146_s24 }
 0x452   :  { %2350 = vrot.lane.b32.xlu0 %v3718_v28, %s3131_s21  ;;  %2390 = vrot.lane.b32.xlu1 %v3727_v6, %s3147_s25 }
 0x456   :  { %2353 = vrot.lane.b32.xlu0 %v3718_v28, %s3149_s27  ;;  %2393 = vrot.lane.b32.xlu1 %v3727_v6, %s3148_s26 }
 0x45a   :  { %2356 = vrot.lane.b32.xlu0 %v3718_v28, %s3150_s28  ;;  %2396 = vrot.lane.b32.xlu1 %v3727_v6, %s3131_s21 }
 0x45e   :  { %2359 = vrot.lane.b32.xlu0 %v3718_v28, %s3151_s29  ;;  %2399 = vrot.lane.b32.xlu1 %v3727_v6, %s3149_s27 }
 0x462   :  { %2402 = vrot.lane.b32.xlu1 %v3727_v6, %s3150_s28  ;;  %2110 = vrot.lane.b32.xlu0 %v3789_v13, %s3136_s8 }
 0x466   :  { %2113 = vrot.lane.b32.xlu1 %v3789_v13, %s3143_s20  ;;  %2119 = vrot.lane.b32.xlu0 %v3789_v13, %s3145_s23 }
 0x46a   :  { %2116 = vrot.lane.b32.xlu1 %v3789_v13, %s3144_s22  ;;  %2122 = vrot.lane.b32.xlu0 %v3789_v13, %s3146_s24 }
 0x46e   :  { %2405 = vrot.lane.b32.xlu1 %v3727_v6, %s3151_s29  ;;  %2125 = vrot.lane.b32.xlu0 %v3789_v13, %s3147_s25 }
 0x472   :  { %2408 = vrot.lane.b32.xlu1 %v3727_v6, %s3152_s30  ;;  %2128 = vrot.lane.b32.xlu0 %v3789_v13, %s3148_s26 }
 0x476   :  { %2368 = vrot.lane.b32.xlu1 %v3718_v28, %s3154_s1  ;;  %2131 = vrot.lane.b32.xlu0 %v3789_v13, %s3131_s21 }
 0x47a   :  { %2162 = vrot.lane.b32.xlu1 %v3815_v7, %s3144_s22  ;;  %2134 = vrot.lane.b32.xlu0 %v3789_v13, %s3149_s27 }
 0x47e   :  { %2165 = vrot.lane.b32.xlu1 %v3815_v7, %s3145_s23  ;;  %2137 = vrot.lane.b32.xlu0 %v3789_v13, %s3150_s28 }
 0x482   :  { %2168 = vrot.lane.b32.xlu1 %v3815_v7, %s3146_s24  ;;  %2140 = vrot.lane.b32.xlu0 %v3789_v13, %s3151_s29 }
 0x486   :  { %2171 = vrot.lane.b32.xlu1 %v3815_v7, %s3147_s25  ;;  %2143 = vrot.lane.b32.xlu0 %v3789_v13, %s3152_s30 }
 0x48a   :  { %2174 = vrot.lane.b32.xlu1 %v3815_v7, %s3148_s26  ;;  %2146 = vrot.lane.b32.xlu0 %v3789_v13, %s3153_s6 }
 0x48e   :  { %2177 = vrot.lane.b32.xlu1 %v3815_v7, %s3131_s21  ;;  %2156 = vrot.lane.b32.xlu0 %v3815_v7, %s3136_s8  ;;  %s3157_s21 = smov [#allocation13]  }
 0x48f   :  { %s2486_s10 = sshll.u32 %s3157_s21, 4  ;;  %s2487_s10 = int_to_ptr.vmem [resolvable:$true] %s2486_s10 }
 0x490   :  { %s3102_s11 = scalar_lea.vmem %s2487_s10, 512  ;;  %p3107_p12 = scmp.lt.s32.totalorder %s2487_s10, %s2487_s10 }
 0x491   :  { %p3103_p11 = scmp.ne.s32.totalorder %s2487_s10, %s3102_s11  ;;  %p3108_p13 = scmp.lt.s32.totalorder %s3102_s11, %s3102_s11 }
 0x492   :  { %2180 = vrot.lane.b32.xlu1 %v3815_v7, %s3149_s27  ;;  %2159 = vrot.lane.b32.xlu0 %v3815_v7, %s3143_s20 }
 0x493   :  { %p3109_p0 = por %p3108_p13, %p3107_p12 }
 0x495   :  { %p3110_p1 = pnand %p3109_p0, %p3103_p11 }
 0x496   :  { %2183 = vrot.lane.b32.xlu1 %v3815_v7, %s3150_s28  ;;  %2149 = vrot.lane.b32.xlu0 %v3789_v13, %s3154_s1 }
 0x49a   :  { %2186 = vrot.lane.b32.xlu1 %v3815_v7, %s3151_s29  ;;  %2362 = vrot.lane.b32.xlu0 %v3718_v28, %s3152_s30 }
 0x49e   :  { %2189 = vrot.lane.b32.xlu1 %v3815_v7, %s3152_s30  ;;  %2152 = vrot.lane.b32.xlu0 %v3789_v13, %s3155_s9 }
 0x4a2   :  { %2192 = vrot.lane.b32.xlu1 %v3815_v7, %s3153_s6  ;;  %2365 = vrot.lane.b32.xlu0 %v3718_v28, %s3153_s6 }
 0x4a6   :  { %2195 = vrot.lane.b32.xlu1 %v3815_v7, %s3154_s1  ;;  %2411 = vrot.lane.b32.xlu0 %v3727_v6, %s3153_s6 }
 0x4aa   :  { %2371 = vrot.lane.b32.xlu1 %v3718_v28, %s3155_s9  ;;  %2198 = vrot.lane.b32.xlu0 %v3815_v7, %s3155_s9 }
 0x4ac   :  { %v2333_v15 = vpop.permute.xlu0 %2332  ;;  %v2330_v19 = vpop.permute.xlu1 %2329 }
 0x4ad   :  { %v2331_v20 = vadd.f32 %v2330_v19, %v3718_v28 }
 0x4ae   :  { %2417 = vrot.lane.b32.xlu1 %v3727_v6, %s3155_s9  ;;  %2414 = vrot.lane.b32.xlu0 %v3727_v6, %s3154_s1 }
 0x4af   :  { %v2334_v4 = vadd.f32 %v2333_v15, %v2331_v20 }
 0x4b0   :  { %v2336_v5 = vpop.permute.xlu0 %2335  ;;  %v2376_v21 = vpop.permute.xlu1 %2375 }
 0x4b1   :  { %v2337_v22 = vadd.f32 %v2336_v5, %v2334_v4  ;;  %v2377_v23 = vadd.f32 %v2376_v21, %v3727_v6 }
 0x4b4   :  { %v2339_v54 = vpop.permute.xlu0 %2338  ;;  %v2379_v53 = vpop.permute.xlu1 %2378 }
 0x4b5   :  { %v2340_v56 = vadd.f32 %v2339_v54, %v2337_v22  ;;  %v2380_v58 = vadd.f32 %v2379_v53, %v2377_v23 }
 0x4b8   :  { %v2342_v46 = vpop.permute.xlu0 %2341  ;;  %v2382_v14 = vpop.permute.xlu1 %2381 }
 0x4b9   :  { %v2343_v27 = vadd.f32 %v2342_v46, %v2340_v56  ;;  %v2383_v28 = vadd.f32 %v2382_v14, %v2380_v58 }
 0x4bc   :  { %v2345_v11 = vpop.permute.xlu0 %2344  ;;  %v2385_v61 = vpop.permute.xlu1 %2384 }
 0x4bd   :  { %v2346_v49 = vadd.f32 %v2345_v11, %v2343_v27  ;;  %v2386_v24 = vadd.f32 %v2385_v61, %v2383_v28 }
 0x4c0   :  { %v2348_v26 = vpop.permute.xlu0 %2347  ;;  %v2388_v25 = vpop.permute.xlu1 %2387 }
 0x4c1   :  { %v2349_v31 = vadd.f32 %v2348_v26, %v2346_v49  ;;  %v2389_v41 = vadd.f32 %v2388_v25, %v2386_v24 }
 0x4c4   :  { %v2351_v29 = vpop.permute.xlu0 %2350  ;;  %v2391_v33 = vpop.permute.xlu1 %2390 }
 0x4c5   :  { %v2352_v37 = vadd.f32 %v2351_v29, %v2349_v31  ;;  %v2392_v6 = vadd.f32 %v2391_v33, %v2389_v41 }
 0x4c8   :  { %v2354_v34 = vpop.permute.xlu0 %2353  ;;  %v2394_v36 = vpop.permute.xlu1 %2393 }
 0x4c9   :  { %v2355_v55 = vadd.f32 %v2354_v34, %v2352_v37  ;;  %v2395_v38 = vadd.f32 %v2394_v36, %v2392_v6 }
 0x4cc   :  { %v2357_v10 = vpop.permute.xlu0 %2356  ;;  %v2397_v35 = vpop.permute.xlu1 %2396 }
 0x4cd   :  { %v2358_v48 = vadd.f32 %v2357_v10, %v2355_v55  ;;  %v2398_v40 = vadd.f32 %v2397_v35, %v2395_v38 }
 0x4d0   :  { %v2360_v44 = vpop.permute.xlu0 %2359  ;;  %v2400_v3 = vpop.permute.xlu1 %2399 }
 0x4d1   :  { %v2361_v45 = vadd.f32 %v2360_v44, %v2358_v48  ;;  %v2401_v2 = vadd.f32 %v2400_v3, %v2398_v40 }
 0x4d4   :  { %v2403_v12 = vpop.permute.xlu1 %2402  ;;  %v2111_v59 = vpop.permute.xlu0 %2110 }
 0x4d5   :  { %v3875_v60 = vadd.f32 %v2403_v12, %v2401_v2  ;;  %v2112_v22 = vadd.f32 %v2111_v59, %v3789_v13 }
 0x4d8   :  { %v2114_v57 = vpop.permute.xlu1 %2113  ;;  %v2120_v62 = vpop.permute.xlu0 %2119 }
 0x4d9   :  { %v2115_v23 = vadd.f32 %v2114_v57, %v2112_v22 }
 0x4dc   :  { %v2117_v8 = vpop.permute.xlu1 %2116  ;;  %v2123_v9 = vpop.permute.xlu0 %2122 }
 0x4dd   :  { %v2118_v56 = vadd.f32 %v2117_v8, %v2115_v23 }
 0x4df   :  { %v2121_v14 = vadd.f32 %v2120_v62, %v2118_v56 }
 0x4e0   :  { %v2406_v39 = vpop.permute.xlu1 %2405  ;;  %v2126_v16 = vpop.permute.xlu0 %2125 }
 0x4e1   :  { %v2124_v11 = vadd.f32 %v2123_v9, %v2121_v14 }
 0x4e3   :  { %v2127_v26 = vadd.f32 %v2126_v16, %v2124_v11 }
 0x4e4   :  { %v2409_v17 = vpop.permute.xlu1 %2408  ;;  %v2129_v18 = vpop.permute.xlu0 %2128 }
 0x4e5   :  { %v2130_v13 = vadd.f32 %v2129_v18, %v2127_v26 }
 0x4e8   :  { %v2369_v47 = vpop.permute.xlu1 %2368  ;;  %v2132_v63 = vpop.permute.xlu0 %2131 }
 0x4e9   :  { %v2133_v37 = vadd.f32 %v2132_v63, %v2130_v13 }
 0x4ec   :  { %v2163_v15 = vpop.permute.xlu1 %2162  ;;  %v2135_v19 = vpop.permute.xlu0 %2134 }
 0x4ed   :  { %v2136_v55 = vadd.f32 %v2135_v19, %v2133_v37  ;;  %v2439_v37 = vsub.s32 2, %v3215_v1 }
 0x4f0   :  { %v2166_v20 = vpop.permute.xlu1 %2165  ;;  %v2138_v4 = vpop.permute.xlu0 %2137 }
 0x4f1   :  { %v2139_v10 = vadd.f32 %v2138_v4, %v2136_v55  ;;  %v2407_v4 = vadd.f32 %v2406_v39, %v3875_v60 }
 0x4f4   :  { %v2169_v5 = vpop.permute.xlu1 %2168  ;;  %v2141_v21 = vpop.permute.xlu0 %2140 }
 0x4f8   :  { %v2172_v54 = vpop.permute.xlu1 %2171  ;;  %v2144_v53 = vpop.permute.xlu0 %2143 }
 0x4fc   :  { %v2175_v58 = vpop.permute.xlu1 %2174  ;;  %v2147_v46 = vpop.permute.xlu0 %2146 }
 0x500   :  { %v2178_v27 = vpop.permute.xlu1 %2177  ;;  %v2157_v28 = vpop.permute.xlu0 %2156 }
 0x501   :  { %v2158_v61 = vadd.f32 %v2157_v28, %v3815_v7  ;;  %v2142_v7 = vadd.f32 %v2141_v21, %v2139_v10 }
 0x503   :  { %v2145_v3 = vadd.f32 %v2144_v53, %v2142_v7 }
 0x504   :  { %v2181_v49 = vpop.permute.xlu1 %2180  ;;  %v2160_v24 = vpop.permute.xlu0 %2159 }
 0x505   :  { %v2161_v25 = vadd.f32 %v2160_v24, %v2158_v61  ;;  %v2148_v57 = vadd.f32 %v2147_v46, %v2145_v3 }
 0x507   :  { %v2164_v31 = vadd.f32 %v2163_v15, %v2161_v25 }
 0x508   :  { %v2184_v41 = vpop.permute.xlu1 %2183  ;;  %v2150_v29 = vpop.permute.xlu0 %2149 }
 0x509   :  { %v2167_v33 = vadd.f32 %v2166_v20, %v2164_v31  ;;  %v2151_v9 = vadd.f32 %v2150_v29, %v2148_v57  ;;  %v2995_v29 = vld [vmem:[#allocation12] sm:$0x3f] }
 0x50b   :  { %v2170_v6 = vadd.f32 %v2169_v5, %v2167_v33 }
 0x50c   :  { %v2187_v34 = vpop.permute.xlu1 %2186  ;;  %v2363_v36 = vpop.permute.xlu0 %2362 }
 0x50d   :  { %v2173_v38 = vadd.f32 %v2172_v54, %v2170_v6  ;;  %v2364_v8 = vadd.f32 %v2363_v36, %v2361_v45  ;;  %v2410_v54 = vadd.f32 %v2409_v17, %v2407_v4  ;;  %v2455_v36 = vsub.s32 4, %v3215_v1 }
 0x50f   :  { %v2176_v35 = vadd.f32 %v2175_v58, %v2173_v38 }
 0x510   :  { %v2190_v48 = vpop.permute.xlu1 %2189  ;;  %v2153_v40 = vpop.permute.xlu0 %2152 }
 0x511   :  { %v2179_v44 = vadd.f32 %v2178_v27, %v2176_v35  ;;  %v2154_v20 = vadd.f32 %v2153_v40, %v2151_v9  ;;  %v2447_v35 = vsub.s32 3, %v3215_v1 }
 0x513   :  { %v2182_v2 = vadd.f32 %v2181_v49, %v2179_v44  ;;  %v2155_v53 = vmul.f32 0.001953125, %v2154_v20 }
 0x514   :  { %v2193_v12 = vpop.permute.xlu1 %2192  ;;  %v2366_v59 = vpop.permute.xlu0 %2365 }
 0x515   :  { %v2185_v62 = vadd.f32 %v2184_v41, %v2182_v2  ;;  %v2367_v18 = vadd.f32 %v2366_v59, %v2364_v8  ;;  %v2202_v27 = vmul.f32 %v2155_v53, %v2155_v53 }
 0x517   :  { %v2188_v16 = vadd.f32 %v2187_v34, %v2185_v62  ;;  %v2370_v22 = vadd.f32 %v2369_v47, %v2367_v18 }
 0x518   :  { %v2196_v63 = vpop.permute.xlu1 %2195  ;;  %v2412_v15 = vpop.permute.xlu0 %2411 }
 0x519   :  { %v2191_v19 = vadd.f32 %v2190_v48, %v2188_v16  ;;  %v2413_v46 = vadd.f32 %v2412_v15, %v2410_v54 }
 0x51b   :  { %v2194_v5 = vadd.f32 %v2193_v12, %v2191_v19  ;;  %v2467_v12 = vsub.s32 5, %v3215_v1 }
 0x51c   :  { %v2372_v21 = vpop.permute.xlu1 %2371  ;;  %v2199_v23 = vpop.permute.xlu0 %2198 }
 0x51d   :  { %v2197_v56 = vadd.f32 %v2196_v63, %v2194_v5  ;;  %v2373_v58 = vadd.f32 %v2372_v21, %v2370_v22 }
 0x51f   :  { %v2200_v14 = vadd.f32 %v2199_v23, %v2197_v56  ;;  %v2374_v28 = vmul.f32 0.001953125, %v2373_v58 }
 0x520   :  { %v2415_v45 = vpop.permute.xlu0 %2414  ;;  %v2418_v49 = vpop.permute.xlu1 %2417 }
 0x521   :  { %v2201_v11 = vmul.f32 0.001953125, %v2200_v14  ;;  %v2416_v61 = vadd.f32 %v2415_v45, %v2413_v46  ;;  %v2421_v25 = vmul.f32 %v2374_v28, %v2374_v28 }
 0x523   :  { %v2203_v24 = vsub.f32 %v2201_v11, %v2202_v27  ;;  %v2419_v26 = vadd.f32 %v2418_v49, %v2416_v61 }
 0x525   :  { %v2204_v60 = vadd.f32 1e-05, %v2203_v24  ;;  %v2420_v39 = vmul.f32 0.001953125, %v2419_v26 }
 0x527   :  { %2991 = vrsqrt.f32 %v2204_v60  ;;  %v2422_v47 = vsub.f32 %v2420_v39, %v2421_v25 }
 0x529   :  { %v2423_v31 = vadd.f32 1e-05, %v2422_v47 }
 0x52b   :  { %2993 = vrsqrt.f32 %v2423_v31 }
 0x534   :  { %v2992_v17 = vpop.eup %2991 }
 0x535   :  { %v2207_v41 = vrot.slane %v2992_v17, 6 }
 0x537   :  { %v2209_v13 = vmul.f32 %v2995_v29, %v2207_v41 }
 0x538   :  { %v2994_v33 = vpop.eup %2993 }
 0x539   :  { %v2211_v6 = vrot.slane %v2209_v13, 2  ;;  %v2426_v34 = vrot.slane %v2994_v33, 4  ;;  %v2440_v10 = vrot.slane %v2209_v13, %v2439_v37 }
 0x53b   :  { %v2213_v55 = vmul.f32 %v2211_v6, %v2155_v53  ;;  %v2428_v38 = vmul.f32 %v2995_v29, %v2426_v34  ;;  %v2441_v2 = vmul.f32 %v2440_v10, %v3733_v43  ;;  %v2442_v62 = vmul.f32 %v2440_v10, %v3729_v42 }
 0x53c   :  { %v2443_v8 = vmul.f32 %v2440_v10, %v3743_v30  ;;  %v2444_v9 = vmul.f32 %v2440_v10, %v3750_v50 }
 0x53d   :  { %v2215_v48 = vrot.slane %v2213_v55, 5  ;;  %v2430_v40 = vrot.slane %v2428_v38, 4  ;;  %v2456_v7 = vrot.slane %v2428_v38, %v2455_v36 }
 0x53f   :  { %v2217_v44 = vsub.f32 %v2995_v29, %v2215_v48  ;;  %v2432_v3 = vmul.f32 %v2430_v40, %v2374_v28  ;;  %v2457_v16 = vmul.f32 %v2456_v7, %v3699_v51  ;;  %v2458_v18 = vmul.f32 %v2456_v7, %v3703_v52 }
 0x540   :  { %v2459_v63 = vmul.f32 %v3697_v0, %v2456_v7  ;;  %v2460_v1 = vmul.f32 %v3701_v32, %v2456_v7 }
 0x541   :  { %v2448_v59 = vrot.slane %v2217_v44, %v2447_v35  ;;  %v2434_v57 = vrot.slane %v2432_v3, 3 }
 0x543   :  { %v2436_v15 = vsub.f32 %v2995_v29, %v2434_v57  ;;  %v2449_v19 = vadd.f32 %v2448_v59, %v2441_v2  ;;  %v2450_v20 = vadd.f32 %v2448_v59, %v2442_v62  ;;  %v2451_v43 = vadd.f32 %v2448_v59, %v2443_v8 }
 0x544   :  { %v2452_v4 = vadd.f32 %v2448_v59, %v2444_v9 }
 0x545   :  { %v2461_v5 = vadd.f32 %v2457_v16, %v2449_v19  ;;  %v2462_v22 = vadd.f32 %v2458_v18, %v2450_v20  ;;  %v2463_v42 = vadd.f32 %v2459_v63, %v2451_v43  ;;  %v2468_v21 = vrot.slane %v2436_v15, %v2467_v12 }
 0x546   :  { %v2464_v30 = vadd.f32 %v2460_v1, %v2452_v4 }
 0x547   :  { %v2469_v23 = vadd.f32 %v2468_v21, %v2461_v5  ;;  %v2470_v50 = vadd.f32 %v2468_v21, %v2462_v22  ;;  %v2471_v54 = vadd.f32 %v2468_v21, %v2463_v42 }
 0x548   :  { %v2472_v51 = vadd.f32 %v2468_v21, %v2464_v30 }
 0x549   :  { %v2473_v52 = vmax.f32 %v2469_v23, 0.0  ;;  %v2474_v0 = vmax.f32 %v2470_v50, 0.0  ;;  %v2475_v53 = vmax.f32 %v2471_v54, 0.0 }
 0x54a   :  { %v2476_v56 = vmax.f32 %v2472_v51, 0.0 }
 0x54b   :  { %2477 = vst [vmem:[#allocation13] sm:$0xff] %v2473_v52  ;;  %2478 = vst [vmem:[#allocation13 + $0x8] sm:$0xff] %v2474_v0 }
 0x54c   :  { %2479 = vst [vmem:[#allocation13 + $0x10] sm:$0xff] %v2475_v53  ;;  %2480 = vst [vmem:[#allocation13 + $0x18] sm:$0xff] %v2476_v56 }
 0x54d   :  { %3113 = shalt.err (!%p3110_p1)
}
 0x54e   :  { %2492 = dma.vmem_to_hbm [thread:$0]  %s2487_s10, 512, %s3903_s5, [#allocation6], %s3135_s7, %s3135_s7, %s3136_s8  }
 0x54f   :  { %3128 = dma.done.wait [#allocation6], 512  }
 0x550   :  { %3129 = vsyncadd [#allocation6], 4294966784 }
 0x551   :  { %2496 = vsyncpa [#allocation5], 1 }
 0x552   :  { %2497 = vsyncpa [#allocation8], 1 }
 0x553   :  { %2498 = vsyncpa [#allocation11], 1 }
 0x554   :  { %2499 = vsyncpa [#allocation6], 1 }

</bundles_post_ra>
